<compile_context>
chip_gen: v6e
topology: v6e:2x2x1
jax: 0.10.0
libtpu: 0.0.40
codegen_flags: <defaults>
</compile_context>

<pallas_src>
import functools

import jax
import jax.numpy as jnp
from jax import lax
from jax.experimental import pallas as pl
from jax.experimental.pallas import tpu as pltpu

EPS = 1e-5
_VMEM_LIMIT = 48 * 1024 * 1024   # fits v5e/v6e (128 MiB) and v7x (64 MiB physical)


def _one_hot_t(eb_ref, g_pad, tile_e):
    """(G_pad, tile_e) f32 one-hot graph membership from lane-major batch ids.

    Padded edges carry id == G_pad -> all-zero column: they contribute nothing
    to the statistics and gather zeros in the normalization."""
    iota = lax.broadcasted_iota(jnp.int32, (g_pad, tile_e), 0)
    return (iota == eb_ref[...]).astype(jnp.float32)


def _seg_sum(vals, oh_t):
    """Per-graph segment sum: (C, tile_e) x (G, tile_e) -> (C, G), contracting lanes."""
    return lax.dot_general(vals, oh_t, (((1,), (1,)), ((), ())),
                           preferred_element_type=jnp.float32)


def _finalize(sum_ref, sq_ref, cnt_row):
    """(C, G) [sum], [sum_sq] + (1, G) counts -> (mean, rstd); population var + eps."""
    mean = sum_ref[...] / cnt_row
    var = jnp.maximum(sq_ref[...] / cnt_row - mean * mean, 0.0)
    return mean, lax.rsqrt(var + EPS)


def _stats_kernel(eb_ref, x_ref, w1_ref, b1_ref, w2_ref, b2_ref,
                  mean1_ref, rstd1_ref, mean2_ref, rstd2_ref,
                  sum1_ref, sq1_ref, sum2_ref, sq2_ref, cnt_ref):
    phase = pl.program_id(0)
    tile = pl.program_id(1)
    n_tiles = pl.num_programs(1)
    g_pad = cnt_ref.shape[1]
    tile_e = x_ref.shape[1]

    oh_t = _one_hot_t(eb_ref, g_pad, tile_e)                        # (G_pad, tile_e)
    # Layer 1, feature-major h1[c, e]: bf16 operands, f32 accumulation.
    h1 = jnp.dot(w1_ref[...], x_ref[...],
                 preferred_element_type=jnp.float32) + b1_ref[...]   # (C1, tile_e)

    # ---- phase 0: per-graph counts + layer-1 sum / sum-of-squares ----
    @pl.when(phase == 0)
    def _():
        @pl.when(tile == 0)
        def _():
            sum1_ref[...] = jnp.zeros_like(sum1_ref)
            sq1_ref[...] = jnp.zeros_like(sq1_ref)
            cnt_ref[...] = jnp.zeros_like(cnt_ref)

        # Edge-count histogram as a matmul; 8 identical rows keep the MXU
        # M-dimension sublane-aligned (row 0 is used downstream).
        ones = jnp.ones((8, tile_e), jnp.float32)
        cnt_ref[...] += _seg_sum(ones, oh_t)
        sum1_ref[...] += _seg_sum(h1, oh_t)
        sq1_ref[...] += _seg_sum(h1 * h1, oh_t)

    # ---- phase 1: finalize layer-1 stats, recompute, accumulate layer-2 stats ----
    @pl.when(phase == 1)
    def _():
        @pl.when(tile == 0)
        def _():
            cnt = jnp.maximum(cnt_ref[0:1, :], 1.0)
            m, r = _finalize(sum1_ref, sq1_ref, cnt)
            mean1_ref[...] = m
            rstd1_ref[...] = r
            sum2_ref[...] = jnp.zeros_like(sum2_ref)
            sq2_ref[...] = jnp.zeros_like(sq2_ref)

        m1 = jnp.dot(mean1_ref[...], oh_t, preferred_element_type=jnp.float32)
        r1 = jnp.dot(rstd1_ref[...], oh_t, preferred_element_type=jnp.float32)
        h1n = jnp.maximum((h1 - m1) * r1, 0.0)
        h2 = jnp.dot(w2_ref[...], h1n.astype(jnp.bfloat16),
                     preferred_element_type=jnp.float32) + b2_ref[...]   # (C2, tile_e)
        sum2_ref[...] += _seg_sum(h2, oh_t)
        sq2_ref[...] += _seg_sum(h2 * h2, oh_t)

        @pl.when(tile == n_tiles - 1)
        def _():
            cnt = jnp.maximum(cnt_ref[0:1, :], 1.0)
            m, r = _finalize(sum2_ref, sq2_ref, cnt)
            mean2_ref[...] = m
            rstd2_ref[...] = r


def _forward_kernel(eb_ref, x_ref, w1_ref, b1_ref, w2_ref, b2_ref, w3_ref, b3_ref,
                    mean1_ref, rstd1_ref, mean2_ref, rstd2_ref, out_ref):
    g_pad = mean1_ref.shape[1]
    tile_e = x_ref.shape[1]

    oh_t = _one_hot_t(eb_ref, g_pad, tile_e)
    h1 = jnp.dot(w1_ref[...], x_ref[...],
                 preferred_element_type=jnp.float32) + b1_ref[...]
    m1 = jnp.dot(mean1_ref[...], oh_t, preferred_element_type=jnp.float32)
    r1 = jnp.dot(rstd1_ref[...], oh_t, preferred_element_type=jnp.float32)
    h1n = jnp.maximum((h1 - m1) * r1, 0.0)

    h2 = jnp.dot(w2_ref[...], h1n.astype(jnp.bfloat16),
                 preferred_element_type=jnp.float32) + b2_ref[...]
    m2 = jnp.dot(mean2_ref[...], oh_t, preferred_element_type=jnp.float32)
    r2 = jnp.dot(rstd2_ref[...], oh_t, preferred_element_type=jnp.float32)
    h2n = jnp.maximum((h2 - m2) * r2, 0.0)

    # Final Linear(H, 1): sublane reduce -> lane-dense (1, tile_e) output row.
    out = jnp.sum(h2n * w3_ref[...], axis=0, keepdims=True) + b3_ref[...]
    out_ref[...] = out.reshape(out_ref.shape).astype(out_ref.dtype)


@functools.partial(jax.jit, static_argnames=("num_graphs", "tile_e"))
def extractor_mlp_forward(emb, edge_index, batch, params, num_graphs, tile_e=1024):
    """ExtractorMLP forward (learn_edge_att=True), eval mode (Dropout = identity)."""
    assert tile_e % 128 == 0, "tile_e must be a multiple of 128"
    w1, b1, w2, b2, w3, b3 = params
    H = emb.shape[1]
    C1, C2 = 4 * H, H
    G_pad = max(8, ((num_graphs + 7) // 8) * 8)

    col, row = edge_index[0], edge_index[1]
    E = col.shape[0]
    # Feature-major edge features (2H, E) in bf16: halves the dominant HBM
    # stream and makes the edge axis the 128-lane axis in both kernels.
    # TODO(synk): fuse the emb[col]/emb[row] gather into the kernel (VMEM-resident
    # emb + in-kernel gather) so f12 is never materialized in HBM at all.
    f12_t = jnp.concatenate([emb[col], emb[row]], axis=-1).astype(jnp.bfloat16).T
    edge_batch = batch[col].astype(jnp.int32)

    num_tiles = max(1, -(-E // tile_e))
    e_pad = num_tiles * tile_e
    pad = e_pad - E
    f12_t = jnp.pad(f12_t, ((0, 0), (0, pad)))
    # Sentinel id == G_pad -> padded edges match no graph (all-zero one-hot column).
    eb = jnp.pad(edge_batch, (0, pad), constant_values=G_pad)[None, :]   # (1, E_pad)

    w1t = w1.T.astype(jnp.bfloat16)                      # (C1, 2H)
    w2t = w2.T.astype(jnp.bfloat16)                      # (C2, C1)
    b1c = b1.reshape(C1, 1).astype(jnp.float32)
    b2c = b2.reshape(C2, 1).astype(jnp.float32)
    w3c = w3.reshape(H, 1).astype(jnp.float32)
    b3c = b3.reshape(1, 1).astype(jnp.float32)

    const2 = lambda p, i: (0, 0)
    edge2 = lambda p, i: (0, i)

    # ---- call 1: per-graph InstanceNorm statistics (sequential accumulation) ----
    mean1, rstd1, mean2, rstd2 = pl.pallas_call(
        _stats_kernel,
        out_shape=(jax.ShapeDtypeStruct((C1, G_pad), jnp.float32),
                   jax.ShapeDtypeStruct((C1, G_pad), jnp.float32),
                   jax.ShapeDtypeStruct((C2, G_pad), jnp.float32),
                   jax.ShapeDtypeStruct((C2, G_pad), jnp.float32)),
        grid=(2, num_tiles),
        in_specs=[
            pl.BlockSpec((1, tile_e), edge2),            # batch ids (lane-major i32)
            pl.BlockSpec((2 * H, tile_e), edge2),        # f12^T (bf16)
            pl.BlockSpec((C1, 2 * H), const2),           # w1^T (bf16, resident)
            pl.BlockSpec((C1, 1), const2),               # b1
            pl.BlockSpec((C2, C1), const2),              # w2^T (bf16, resident)
            pl.BlockSpec((C2, 1), const2),               # b2
        ],
        out_specs=(pl.BlockSpec((C1, G_pad), const2),
                   pl.BlockSpec((C1, G_pad), const2),
                   pl.BlockSpec((C2, G_pad), const2),
                   pl.BlockSpec((C2, G_pad), const2)),
        scratch_shapes=[
            pltpu.VMEM((C1, G_pad), jnp.float32),        # layer-1 sum
            pltpu.VMEM((C1, G_pad), jnp.float32),        # layer-1 sum of squares
            pltpu.VMEM((C2, G_pad), jnp.float32),        # layer-2 sum
            pltpu.VMEM((C2, G_pad), jnp.float32),        # layer-2 sum of squares
            pltpu.VMEM((8, G_pad), jnp.float32),         # per-graph edge counts
        ],
        compiler_params=pltpu.CompilerParams(
            # Tile axis carries cross-tile (C, G) accumulators -> must stay sequential.
            dimension_semantics=("arbitrary", "arbitrary"),
            vmem_limit_bytes=_VMEM_LIMIT,
        ),
    )(eb, f12_t, w1t, b1c, w2t, b2c)

    const1 = lambda i: (0, 0)

    # ---- call 2: full forward with resident stat tables (parallel over E-tiles) ----
    out = pl.pallas_call(
        _forward_kernel,
        out_shape=jax.ShapeDtypeStruct((num_tiles, 1, tile_e), jnp.float32),
        grid=(num_tiles,),
        in_specs=[
            pl.BlockSpec((1, tile_e), lambda i: (0, i)),
            pl.BlockSpec((2 * H, tile_e), lambda i: (0, i)),
            pl.BlockSpec((C1, 2 * H), const1),
            pl.BlockSpec((C1, 1), const1),
            pl.BlockSpec((C2, C1), const1),
            pl.BlockSpec((C2, 1), const1),
            pl.BlockSpec((H, 1), const1),                # w3 (column, VPU reduce)
            pl.BlockSpec((1, 1), const1),                # b3
            pl.BlockSpec((C1, G_pad), const1),           # mean1
            pl.BlockSpec((C1, G_pad), const1),           # rstd1
            pl.BlockSpec((C2, G_pad), const1),           # mean2
            pl.BlockSpec((C2, G_pad), const1),           # rstd2
        ],
        out_specs=pl.BlockSpec((1, 1, tile_e), lambda i: (i, 0, 0)),   # lane-dense
        compiler_params=pltpu.CompilerParams(
            dimension_semantics=("parallel",),           # independent E-tiles (v7x 2 TCs)
            vmem_limit_bytes=_VMEM_LIMIT,
        ),
    )(eb, f12_t, w1t, b1c, w2t, b2c, w3c, b3c, mean1, rstd1, mean2, rstd2)

    return out.reshape(e_pad, 1)[:E]


def _init_linear(key, fan_in, fan_out):
    # matches torch.nn.Linear default init: U(-1/sqrt(fan_in), 1/sqrt(fan_in))
    kw, kb = jax.random.split(key)
    bound = 1.0 / jnp.sqrt(float(fan_in))
    w = jax.random.uniform(kw, (fan_in, fan_out), jnp.float32, -bound, bound)
    b = jax.random.uniform(kb, (1, fan_out), jnp.float32, -bound, bound)
    return w, b


def _reference(emb, edge_index, batch, params, num_graphs,
               matmul_dtype=jnp.float32):
    """Pure-JAX reference. matmul_dtype=bfloat16 mirrors the kernel's operand casts."""
    col, row = edge_index[0], edge_index[1]
    x = jnp.concatenate([emb[col], emb[row]], axis=-1)
    eb = batch[col]
    oh = jax.nn.one_hot(eb, num_graphs, dtype=jnp.float32)
    counts = jnp.maximum(oh.sum(0), 1.0)

    def mm(a, b):
        return jnp.dot(a.astype(matmul_dtype), b.astype(matmul_dtype),
                       preferred_element_type=jnp.float32)

    def inorm(h):
        mean = (oh.T @ h) / counts[:, None]
        c = h - mean[eb]
        var = (oh.T @ (c * c)) / counts[:, None]
        return c * lax.rsqrt(var[eb] + EPS)

    w1, b1, w2, b2, w3, b3 = params
    h = jnp.maximum(inorm(mm(x, w1) + b1), 0.0)
    h = jnp.maximum(inorm(mm(h, w2) + b2), 0.0)
    # Final layer in f32 in both variants (kernel does it on the VPU in f32).
    return jnp.dot(h, w3.astype(jnp.float32),
                   preferred_element_type=jnp.float32) + b3


if __name__ == "__main__":
    key = jax.random.PRNGKey(0)
    H = 32          # config.model.dim_hidden
    N = 48          # nodes
    E = 300         # edges  (2 E-tiles of 256 with padding)
    G = 3           # graphs in the batch

    k_emb, k_ei, k1, k2, k3 = jax.random.split(key, 5)
    emb = jax.random.normal(k_emb, (N, H), jnp.float32)
    edge_index = jax.random.randint(k_ei, (2, E), 0, N, jnp.int32)
    batch = jnp.repeat(jnp.arange(G, dtype=jnp.int32), N // G)   # node -> graph id

    # MLP([2H, 4H, H, 1]) parameters
    w1, b1 = _init_linear(k1, 2 * H, 4 * H)
    w2, b2 = _init_linear(k2, 4 * H, H)
    w3, b3 = _init_linear(k3, H, 1)
    params = (w1, b1, w2, b2, w3, b3)

    out = extractor_mlp_forward(emb, edge_index, batch, params,
                                num_graphs=G, tile_e=256)
    out = jax.block_until_ready(out)
    assert out.shape == (E, 1)

    # Tight check against a reference that mirrors the kernel's bf16 matmul operands.
    ref_bf16 = _reference(emb, edge_index, batch, params, G, jnp.bfloat16)
    assert jnp.allclose(out, ref_bf16, atol=1e-3, rtol=1e-3), \
        "mismatch vs bf16-matched reference"

    # Loose sanity check against the pure-f32 reference (bf16 rounding noise only).
    ref_f32 = _reference(emb, edge_index, batch, params, G, jnp.float32)
    assert jnp.allclose(out, ref_f32, atol=0.25), "gross mismatch vs f32 reference"

    # TODO(synk): Dropout is treated as identity (inference); training-time dropout
    # would use pltpu.prng_seed/prng_random_bits.
    print("KERNEL_OK")
</pallas_src>

<mosaic_0001>
module attributes {stable_mosaic.version = 11 : i64} {
  func.func @_forward_kernel(%arg0: i32, %arg1: memref<1x256xi32, #tpu.memory_space<vmem>>, %arg2: memref<64x256xbf16, #tpu.memory_space<vmem>>, %arg3: memref<128x64xbf16, #tpu.memory_space<vmem>>, %arg4: memref<128x1xf32, #tpu.memory_space<vmem>>, %arg5: memref<32x128xbf16, #tpu.memory_space<vmem>>, %arg6: memref<32x1xf32, #tpu.memory_space<vmem>>, %arg7: memref<32x1xf32, #tpu.memory_space<vmem>>, %arg8: memref<1x1xf32, #tpu.memory_space<vmem>>, %arg9: memref<128x8xf32, #tpu.memory_space<vmem>>, %arg10: memref<128x8xf32, #tpu.memory_space<vmem>>, %arg11: memref<32x8xf32, #tpu.memory_space<vmem>>, %arg12: memref<32x8xf32, #tpu.memory_space<vmem>>, %arg13: memref<1x1x256xf32, #tpu.memory_space<vmem>>) attributes {dimension_semantics = [#tpu.dimension_semantics<parallel>], iteration_bounds = array<i64: 2>, scalar_prefetch = 0 : i64, scratch_operands = 0 : i64, tpu.core_type = #tpu.core_type<tc>, window_params = [{transform_indices = @transform_0, window_bounds = array<i64: 1, 256>}, {transform_indices = @transform_1, window_bounds = array<i64: 64, 256>}, {pipeline_mode = #tpu.pipeline_mode<synchronous>, transform_indices = @transform_2, window_bounds = array<i64: 128, 64>}, {pipeline_mode = #tpu.pipeline_mode<synchronous>, transform_indices = @transform_3, window_bounds = array<i64: 128, 1>}, {pipeline_mode = #tpu.pipeline_mode<synchronous>, transform_indices = @transform_4, window_bounds = array<i64: 32, 128>}, {pipeline_mode = #tpu.pipeline_mode<synchronous>, transform_indices = @transform_5, window_bounds = array<i64: 32, 1>}, {pipeline_mode = #tpu.pipeline_mode<synchronous>, transform_indices = @transform_6, window_bounds = array<i64: 32, 1>}, {pipeline_mode = #tpu.pipeline_mode<synchronous>, transform_indices = @transform_7, window_bounds = array<i64: 1, 1>}, {pipeline_mode = #tpu.pipeline_mode<synchronous>, transform_indices = @transform_8, window_bounds = array<i64: 128, 8>}, {pipeline_mode = #tpu.pipeline_mode<synchronous>, transform_indices = @transform_9, window_bounds = array<i64: 128, 8>}, {pipeline_mode = #tpu.pipeline_mode<synchronous>, transform_indices = @transform_10, window_bounds = array<i64: 32, 8>}, {pipeline_mode = #tpu.pipeline_mode<synchronous>, transform_indices = @transform_11, window_bounds = array<i64: 32, 8>}, {transform_indices = @transform_12, window_bounds = array<i64: 1, 1, 256>}]} {
    %0 = tpu.iota {dimensions = array<i32: 0>} : vector<8x256xi32>
    %c0 = arith.constant 0 : index
    %c0_0 = arith.constant 0 : index
    %1 = vector.load %arg1[%c0, %c0_0] : memref<1x256xi32, #tpu.memory_space<vmem>>, vector<1x256xi32>
    %2 = vector.broadcast %1 : vector<1x256xi32> to vector<8x256xi32>
    %3 = arith.cmpi eq, %0, %2 : vector<8x256xi32>
    %4 = arith.extui %3 : vector<8x256xi1> to vector<8x256xi32>
    %5 = arith.sitofp %4 : vector<8x256xi32> to vector<8x256xf32>
    %c0_1 = arith.constant 0 : index
    %c0_2 = arith.constant 0 : index
    %6 = vector.load %arg3[%c0_1, %c0_2] : memref<128x64xbf16, #tpu.memory_space<vmem>>, vector<128x64xbf16>
    %c0_3 = arith.constant 0 : index
    %c0_4 = arith.constant 0 : index
    %7 = vector.load %arg2[%c0_3, %c0_4] : memref<64x256xbf16, #tpu.memory_space<vmem>>, vector<64x256xbf16>
    %cst = arith.constant dense<0.000000e+00> : vector<128x256xf32>
    %8 = tpu.matmul %6, %7, %cst {dimension_numbers = #tpu.dot_dimension_numbers<[1], [0], [0], [1], [0, 0, 1, 1], [], []>} : vector<128x64xbf16>, vector<64x256xbf16>, vector<128x256xf32> -> vector<128x256xf32>
    %c0_5 = arith.constant 0 : index
    %c0_6 = arith.constant 0 : index
    %9 = vector.load %arg4[%c0_5, %c0_6] : memref<128x1xf32, #tpu.memory_space<vmem>>, vector<128x1xf32>
    %10 = vector.broadcast %9 : vector<128x1xf32> to vector<128x256xf32>
    %11 = arith.addf %8, %10 : vector<128x256xf32>
    %c0_7 = arith.constant 0 : index
    %c0_8 = arith.constant 0 : index
    %12 = vector.load %arg9[%c0_7, %c0_8] : memref<128x8xf32, #tpu.memory_space<vmem>>, vector<128x8xf32>
    %cst_9 = arith.constant dense<0.000000e+00> : vector<128x256xf32>
    %13 = tpu.matmul %12, %5, %cst_9 {dimension_numbers = #tpu.dot_dimension_numbers<[1], [0], [0], [1], [0, 0, 1, 1], [], []>} : vector<128x8xf32>, vector<8x256xf32>, vector<128x256xf32> -> vector<128x256xf32>
    %c0_10 = arith.constant 0 : index
    %c0_11 = arith.constant 0 : index
    %14 = vector.load %arg10[%c0_10, %c0_11] : memref<128x8xf32, #tpu.memory_space<vmem>>, vector<128x8xf32>
    %cst_12 = arith.constant dense<0.000000e+00> : vector<128x256xf32>
    %15 = tpu.matmul %14, %5, %cst_12 {dimension_numbers = #tpu.dot_dimension_numbers<[1], [0], [0], [1], [0, 0, 1, 1], [], []>} : vector<128x8xf32>, vector<8x256xf32>, vector<128x256xf32> -> vector<128x256xf32>
    %16 = arith.subf %11, %13 : vector<128x256xf32>
    %17 = arith.mulf %16, %15 : vector<128x256xf32>
    %cst_13 = arith.constant 0.000000e+00 : f32
    %18 = vector.broadcast %cst_13 : f32 to vector<128x256xf32>
    %19 = arith.maximumf %17, %18 : vector<128x256xf32>
    %c0_14 = arith.constant 0 : index
    %c0_15 = arith.constant 0 : index
    %20 = vector.load %arg5[%c0_14, %c0_15] : memref<32x128xbf16, #tpu.memory_space<vmem>>, vector<32x128xbf16>
    %21 = arith.truncf %19 : vector<128x256xf32> to vector<128x256xbf16>
    %cst_16 = arith.constant dense<0.000000e+00> : vector<32x256xf32>
    %22 = tpu.matmul %20, %21, %cst_16 {dimension_numbers = #tpu.dot_dimension_numbers<[1], [0], [0], [1], [0, 0, 1, 1], [], []>} : vector<32x128xbf16>, vector<128x256xbf16>, vector<32x256xf32> -> vector<32x256xf32>
    %c0_17 = arith.constant 0 : index
    %c0_18 = arith.constant 0 : index
    %23 = vector.load %arg6[%c0_17, %c0_18] : memref<32x1xf32, #tpu.memory_space<vmem>>, vector<32x1xf32>
    %24 = vector.broadcast %23 : vector<32x1xf32> to vector<32x256xf32>
    %25 = arith.addf %22, %24 : vector<32x256xf32>
    %c0_19 = arith.constant 0 : index
    %c0_20 = arith.constant 0 : index
    %26 = vector.load %arg11[%c0_19, %c0_20] : memref<32x8xf32, #tpu.memory_space<vmem>>, vector<32x8xf32>
    %cst_21 = arith.constant dense<0.000000e+00> : vector<32x256xf32>
    %27 = tpu.matmul %26, %5, %cst_21 {dimension_numbers = #tpu.dot_dimension_numbers<[1], [0], [0], [1], [0, 0, 1, 1], [], []>} : vector<32x8xf32>, vector<8x256xf32>, vector<32x256xf32> -> vector<32x256xf32>
    %c0_22 = arith.constant 0 : index
    %c0_23 = arith.constant 0 : index
    %28 = vector.load %arg12[%c0_22, %c0_23] : memref<32x8xf32, #tpu.memory_space<vmem>>, vector<32x8xf32>
    %cst_24 = arith.constant dense<0.000000e+00> : vector<32x256xf32>
    %29 = tpu.matmul %28, %5, %cst_24 {dimension_numbers = #tpu.dot_dimension_numbers<[1], [0], [0], [1], [0, 0, 1, 1], [], []>} : vector<32x8xf32>, vector<8x256xf32>, vector<32x256xf32> -> vector<32x256xf32>
    %30 = arith.subf %25, %27 : vector<32x256xf32>
    %31 = arith.mulf %30, %29 : vector<32x256xf32>
    %cst_25 = arith.constant 0.000000e+00 : f32
    %32 = vector.broadcast %cst_25 : f32 to vector<32x256xf32>
    %33 = arith.maximumf %31, %32 : vector<32x256xf32>
    %c0_26 = arith.constant 0 : index
    %c0_27 = arith.constant 0 : index
    %34 = vector.load %arg7[%c0_26, %c0_27] : memref<32x1xf32, #tpu.memory_space<vmem>>, vector<32x1xf32>
    %35 = vector.broadcast %34 : vector<32x1xf32> to vector<32x256xf32>
    %36 = arith.mulf %33, %35 : vector<32x256xf32>
    %cst_28 = arith.constant dense<0.000000e+00> : vector<256xf32>
    %37 = vector.multi_reduction <add>, %36, %cst_28 [0] : vector<32x256xf32> to vector<256xf32>
    %38 = vector.shape_cast %37 : vector<256xf32> to vector<1x256xf32>
    %c0_29 = arith.constant 0 : index
    %c0_30 = arith.constant 0 : index
    %39 = vector.load %arg8[%c0_29, %c0_30] : memref<1x1xf32, #tpu.memory_space<vmem>>, vector<1x1xf32>
    %40 = vector.broadcast %39 : vector<1x1xf32> to vector<1x256xf32>
    %41 = arith.addf %38, %40 : vector<1x256xf32>
    %42 = vector.shape_cast %41 : vector<1x256xf32> to vector<1x1x256xf32>
    %c0_31 = arith.constant 0 : index
    %c0_32 = arith.constant 0 : index
    %c0_33 = arith.constant 0 : index
    %43 = vector.load %arg13[%c0_31, %c0_32, %c0_33] : memref<1x1x256xf32, #tpu.memory_space<vmem>>, vector<1x1x256xf32>
    tpu.vector_store %arg13[%c0_31, %c0_32, %c0_33], %42 {strides = array<i32>} : memref<1x1x256xf32, #tpu.memory_space<vmem>>, vector<1x1x256xf32>,
    return
  }
  func.func @transform_0(%arg0: i32) -> (i32, i32) {
    %c0_i32 = arith.constant 0 : i32
    %c0_i32_0 = arith.constant 0 : i32
    return %c0_i32, %arg0 : i32, i32
  }
  func.func @transform_1(%arg0: i32) -> (i32, i32) {
    %c0_i32 = arith.constant 0 : i32
    %c0_i32_0 = arith.constant 0 : i32
    return %c0_i32, %arg0 : i32, i32
  }
  func.func @transform_2(%arg0: i32) -> (i32, i32) {
    %c0_i32 = arith.constant 0 : i32
    %c0_i32_0 = arith.constant 0 : i32
    %c0_i32_1 = arith.constant 0 : i32
    return %c0_i32, %c0_i32_0 : i32, i32
  }
  func.func @transform_3(%arg0: i32) -> (i32, i32) {
    %c0_i32 = arith.constant 0 : i32
    %c0_i32_0 = arith.constant 0 : i32
    %c0_i32_1 = arith.constant 0 : i32
    return %c0_i32, %c0_i32_0 : i32, i32
  }
  func.func @transform_4(%arg0: i32) -> (i32, i32) {
    %c0_i32 = arith.constant 0 : i32
    %c0_i32_0 = arith.constant 0 : i32
    %c0_i32_1 = arith.constant 0 : i32
    return %c0_i32, %c0_i32_0 : i32, i32
  }
  func.func @transform_5(%arg0: i32) -> (i32, i32) {
    %c0_i32 = arith.constant 0 : i32
    %c0_i32_0 = arith.constant 0 : i32
    %c0_i32_1 = arith.constant 0 : i32
    return %c0_i32, %c0_i32_0 : i32, i32
  }
  func.func @transform_6(%arg0: i32) -> (i32, i32) {
    %c0_i32 = arith.constant 0 : i32
    %c0_i32_0 = arith.constant 0 : i32
    %c0_i32_1 = arith.constant 0 : i32
    return %c0_i32, %c0_i32_0 : i32, i32
  }
  func.func @transform_7(%arg0: i32) -> (i32, i32) {
    %c0_i32 = arith.constant 0 : i32
    %c0_i32_0 = arith.constant 0 : i32
    %c0_i32_1 = arith.constant 0 : i32
    return %c0_i32, %c0_i32_0 : i32, i32
  }
  func.func @transform_8(%arg0: i32) -> (i32, i32) {
    %c0_i32 = arith.constant 0 : i32
    %c0_i32_0 = arith.constant 0 : i32
    %c0_i32_1 = arith.constant 0 : i32
    return %c0_i32, %c0_i32_0 : i32, i32
  }
  func.func @transform_9(%arg0: i32) -> (i32, i32) {
    %c0_i32 = arith.constant 0 : i32
    %c0_i32_0 = arith.constant 0 : i32
    %c0_i32_1 = arith.constant 0 : i32
    return %c0_i32, %c0_i32_0 : i32, i32
  }
  func.func @transform_10(%arg0: i32) -> (i32, i32) {
    %c0_i32 = arith.constant 0 : i32
    %c0_i32_0 = arith.constant 0 : i32
    %c0_i32_1 = arith.constant 0 : i32
    return %c0_i32, %c0_i32_0 : i32, i32
  }
  func.func @transform_11(%arg0: i32) -> (i32, i32) {
    %c0_i32 = arith.constant 0 : i32
    %c0_i32_0 = arith.constant 0 : i32
    %c0_i32_1 = arith.constant 0 : i32
    return %c0_i32, %c0_i32_0 : i32, i32
  }
  func.func @transform_12(%arg0: i32) -> (i32, i32, i32) {
    %c0_i32 = arith.constant 0 : i32
    %c0_i32_0 = arith.constant 0 : i32
    %c0_i32_1 = arith.constant 0 : i32
    return %arg0, %c0_i32, %c0_i32_0 : i32, i32, i32
  }
}

module attributes {stable_mosaic.version = 11 : i64} {
  func.func @_stats_kernel(%arg0: i32, %arg1: i32, %arg2: memref<1x256xi32, #tpu.memory_space<vmem>>, %arg3: memref<64x256xbf16, #tpu.memory_space<vmem>>, %arg4: memref<128x64xbf16, #tpu.memory_space<vmem>>, %arg5: memref<128x1xf32, #tpu.memory_space<vmem>>, %arg6: memref<32x128xbf16, #tpu.memory_space<vmem>>, %arg7: memref<32x1xf32, #tpu.memory_space<vmem>>, %arg8: memref<128x8xf32, #tpu.memory_space<vmem>>, %arg9: memref<128x8xf32, #tpu.memory_space<vmem>>, %arg10: memref<32x8xf32, #tpu.memory_space<vmem>>, %arg11: memref<32x8xf32, #tpu.memory_space<vmem>>, %arg12: memref<128x8xf32, #tpu.memory_space<vmem>>, %arg13: memref<128x8xf32, #tpu.memory_space<vmem>>, %arg14: memref<32x8xf32, #tpu.memory_space<vmem>>, %arg15: memref<32x8xf32, #tpu.memory_space<vmem>>, %arg16: memref<8x8xf32, #tpu.memory_space<vmem>>) attributes {dimension_semantics = [#tpu.dimension_semantics<arbitrary>, #tpu.dimension_semantics<arbitrary>], iteration_bounds = array<i64: 2, 2>, scalar_prefetch = 0 : i64, scratch_operands = 5 : i64, tpu.core_type = #tpu.core_type<tc>, window_params = [{transform_indices = @transform_0, window_bounds = array<i64: 1, 256>}, {transform_indices = @transform_1, window_bounds = array<i64: 64, 256>}, {pipeline_mode = #tpu.pipeline_mode<synchronous>, transform_indices = @transform_2, window_bounds = array<i64: 128, 64>}, {pipeline_mode = #tpu.pipeline_mode<synchronous>, transform_indices = @transform_3, window_bounds = array<i64: 128, 1>}, {pipeline_mode = #tpu.pipeline_mode<synchronous>, transform_indices = @transform_4, window_bounds = array<i64: 32, 128>}, {pipeline_mode = #tpu.pipeline_mode<synchronous>, transform_indices = @transform_5, window_bounds = array<i64: 32, 1>}, {pipeline_mode = #tpu.pipeline_mode<synchronous>, transform_indices = @transform_6, window_bounds = array<i64: 128, 8>}, {pipeline_mode = #tpu.pipeline_mode<synchronous>, transform_indices = @transform_7, window_bounds = array<i64: 128, 8>}, {pipeline_mode = #tpu.pipeline_mode<synchronous>, transform_indices = @transform_8, window_bounds = array<i64: 32, 8>}, {pipeline_mode = #tpu.pipeline_mode<synchronous>, transform_indices = @transform_9, window_bounds = array<i64: 32, 8>}]} {
    %0 = tpu.iota {dimensions = array<i32: 0>} : vector<8x256xi32>
    %c0 = arith.constant 0 : index
    %c0_0 = arith.constant 0 : index
    %1 = vector.load %arg2[%c0, %c0_0] : memref<1x256xi32, #tpu.memory_space<vmem>>, vector<1x256xi32>
    %2 = vector.broadcast %1 : vector<1x256xi32> to vector<8x256xi32>
    %3 = arith.cmpi eq, %0, %2 : vector<8x256xi32>
    %4 = arith.extui %3 : vector<8x256xi1> to vector<8x256xi32>
    %5 = arith.sitofp %4 : vector<8x256xi32> to vector<8x256xf32>
    %c0_1 = arith.constant 0 : index
    %c0_2 = arith.constant 0 : index
    %6 = vector.load %arg4[%c0_1, %c0_2] : memref<128x64xbf16, #tpu.memory_space<vmem>>, vector<128x64xbf16>
    %c0_3 = arith.constant 0 : index
    %c0_4 = arith.constant 0 : index
    %7 = vector.load %arg3[%c0_3, %c0_4] : memref<64x256xbf16, #tpu.memory_space<vmem>>, vector<64x256xbf16>
    %cst = arith.constant dense<0.000000e+00> : vector<128x256xf32>
    %8 = tpu.matmul %6, %7, %cst {dimension_numbers = #tpu.dot_dimension_numbers<[1], [0], [0], [1], [0, 0, 1, 1], [], []>} : vector<128x64xbf16>, vector<64x256xbf16>, vector<128x256xf32> -> vector<128x256xf32>
    %c0_5 = arith.constant 0 : index
    %c0_6 = arith.constant 0 : index
    %9 = vector.load %arg5[%c0_5, %c0_6] : memref<128x1xf32, #tpu.memory_space<vmem>>, vector<128x1xf32>
    %10 = vector.broadcast %9 : vector<128x1xf32> to vector<128x256xf32>
    %11 = arith.addf %8, %10 : vector<128x256xf32>
    %c0_i32 = arith.constant 0 : i32
    %12 = arith.cmpi eq, %arg0, %c0_i32 : i32
    %13 = arith.extui %12 : i1 to i32
    %c0_i32_7 = arith.constant 0 : i32
    %14 = arith.cmpi ne, %13, %c0_i32_7 : i32
    scf.if %14 {
      %c0_i32_9 = arith.constant 0 : i32
      %18 = arith.cmpi eq, %arg1, %c0_i32_9 : i32
      %19 = arith.extui %18 : i1 to i32
      %c0_i32_10 = arith.constant 0 : i32
      %20 = arith.cmpi ne, %19, %c0_i32_10 : i32
      scf.if %20 {
        %cst_27 = arith.constant 0.000000e+00 : f32
        %35 = vector.broadcast %cst_27 : f32 to vector<128x8xf32>
        %c0_28 = arith.constant 0 : index
        %c0_29 = arith.constant 0 : index
        %36 = vector.load %arg12[%c0_28, %c0_29] : memref<128x8xf32, #tpu.memory_space<vmem>>, vector<128x8xf32>
        tpu.vector_store %arg12[%c0_28, %c0_29], %35 {strides = array<i32>} : memref<128x8xf32, #tpu.memory_space<vmem>>, vector<128x8xf32>,
        %cst_30 = arith.constant 0.000000e+00 : f32
        %37 = vector.broadcast %cst_30 : f32 to vector<128x8xf32>
        %c0_31 = arith.constant 0 : index
        %c0_32 = arith.constant 0 : index
        %38 = vector.load %arg13[%c0_31, %c0_32] : memref<128x8xf32, #tpu.memory_space<vmem>>, vector<128x8xf32>
        tpu.vector_store %arg13[%c0_31, %c0_32], %37 {strides = array<i32>} : memref<128x8xf32, #tpu.memory_space<vmem>>, vector<128x8xf32>,
        %cst_33 = arith.constant 0.000000e+00 : f32
        %39 = vector.broadcast %cst_33 : f32 to vector<8x8xf32>
        %c0_34 = arith.constant 0 : index
        %c0_35 = arith.constant 0 : index
        %40 = vector.load %arg16[%c0_34, %c0_35] : memref<8x8xf32, #tpu.memory_space<vmem>>, vector<8x8xf32>
        tpu.vector_store %arg16[%c0_34, %c0_35], %39 {strides = array<i32>} : memref<8x8xf32, #tpu.memory_space<vmem>>, vector<8x8xf32>,
      } else {
      }
      %cst_11 = arith.constant 1.000000e+00 : f32
      %21 = vector.broadcast %cst_11 : f32 to vector<8x256xf32>
      %c0_12 = arith.constant 0 : index
      %c0_13 = arith.constant 0 : index
      %22 = vector.load %arg16[%c0_12, %c0_13] : memref<8x8xf32, #tpu.memory_space<vmem>>, vector<8x8xf32>
      %cst_14 = arith.constant dense<0.000000e+00> : vector<8x8xf32>
      %23 = tpu.matmul %21, %5, %cst_14 {dimension_numbers = #tpu.dot_dimension_numbers<[1], [1], [0], [0], [0, 0, 1, 0], [], []>} : vector<8x256xf32>, vector<8x256xf32>, vector<8x8xf32> -> vector<8x8xf32>
      %24 = arith.addf %22, %23 : vector<8x8xf32>
      %c0_15 = arith.constant 0 : index
      %c0_16 = arith.constant 0 : index
      %25 = vector.load %arg16[%c0_15, %c0_16] : memref<8x8xf32, #tpu.memory_space<vmem>>, vector<8x8xf32>
      tpu.vector_store %arg16[%c0_15, %c0_16], %24 {strides = array<i32>} : memref<8x8xf32, #tpu.memory_space<vmem>>, vector<8x8xf32>,
      %c0_17 = arith.constant 0 : index
      %c0_18 = arith.constant 0 : index
      %26 = vector.load %arg12[%c0_17, %c0_18] : memref<128x8xf32, #tpu.memory_space<vmem>>, vector<128x8xf32>
      %cst_19 = arith.constant dense<0.000000e+00> : vector<128x8xf32>
      %27 = tpu.matmul %11, %5, %cst_19 {dimension_numbers = #tpu.dot_dimension_numbers<[1], [1], [0], [0], [0, 0, 1, 0], [], []>} : vector<128x256xf32>, vector<8x256xf32>, vector<128x8xf32> -> vector<128x8xf32>
      %28 = arith.addf %26, %27 : vector<128x8xf32>
      %c0_20 = arith.constant 0 : index
      %c0_21 = arith.constant 0 : index
      %29 = vector.load %arg12[%c0_20, %c0_21] : memref<128x8xf32, #tpu.memory_space<vmem>>, vector<128x8xf32>
      tpu.vector_store %arg12[%c0_20, %c0_21], %28 {strides = array<i32>} : memref<128x8xf32, #tpu.memory_space<vmem>>, vector<128x8xf32>,
      %c0_22 = arith.constant 0 : index
      %c0_23 = arith.constant 0 : index
      %30 = vector.load %arg13[%c0_22, %c0_23] : memref<128x8xf32, #tpu.memory_space<vmem>>, vector<128x8xf32>
      %31 = arith.mulf %11, %11 : vector<128x256xf32>
      %cst_24 = arith.constant dense<0.000000e+00> : vector<128x8xf32>
      %32 = tpu.matmul %31, %5, %cst_24 {dimension_numbers = #tpu.dot_dimension_numbers<[1], [1], [0], [0], [0, 0, 1, 0], [], []>} : vector<128x256xf32>, vector<8x256xf32>, vector<128x8xf32> -> vector<128x8xf32>
      %33 = arith.addf %30, %32 : vector<128x8xf32>
      %c0_25 = arith.constant 0 : index
      %c0_26 = arith.constant 0 : index
      %34 = vector.load %arg13[%c0_25, %c0_26] : memref<128x8xf32, #tpu.memory_space<vmem>>, vector<128x8xf32>
      tpu.vector_store %arg13[%c0_25, %c0_26], %33 {strides = array<i32>} : memref<128x8xf32, #tpu.memory_space<vmem>>, vector<128x8xf32>,
    } else {
    }
    %c1_i32 = arith.constant 1 : i32
    %15 = arith.cmpi eq, %arg0, %c1_i32 : i32
    %16 = arith.extui %15 : i1 to i32
    %c0_i32_8 = arith.constant 0 : i32
    %17 = arith.cmpi ne, %16, %c0_i32_8 : i32
    scf.if %17 {
      %c0_i32_9 = arith.constant 0 : i32
      %18 = arith.cmpi eq, %arg1, %c0_i32_9 : i32
      %19 = arith.extui %18 : i1 to i32
      %c0_i32_10 = arith.constant 0 : i32
      %20 = arith.cmpi ne, %19, %c0_i32_10 : i32
      scf.if %20 {
        %c0_35 = arith.constant 0 : index
        %c0_36 = arith.constant 0 : index
        %47 = vector.load %arg16[%c0_35, %c0_36] : memref<8x8xf32, #tpu.memory_space<vmem>>, vector<1x8xf32>
        %cst_37 = arith.constant 1.000000e+00 : f32
        %48 = vector.broadcast %cst_37 : f32 to vector<1x8xf32>
        %49 = arith.maximumf %47, %48 : vector<1x8xf32>
        %c0_38 = arith.constant 0 : index
        %c0_39 = arith.constant 0 : index
        %50 = vector.load %arg12[%c0_38, %c0_39] : memref<128x8xf32, #tpu.memory_space<vmem>>, vector<128x8xf32>
        %51 = vector.broadcast %49 : vector<1x8xf32> to vector<128x8xf32>
        %52 = arith.divf %50, %51 : vector<128x8xf32>
        %c0_40 = arith.constant 0 : index
        %c0_41 = arith.constant 0 : index
        %53 = vector.load %arg13[%c0_40, %c0_41] : memref<128x8xf32, #tpu.memory_space<vmem>>, vector<128x8xf32>
        %54 = vector.broadcast %49 : vector<1x8xf32> to vector<128x8xf32>
        %55 = arith.divf %53, %54 : vector<128x8xf32>
        %56 = arith.mulf %52, %52 : vector<128x8xf32>
        %57 = arith.subf %55, %56 : vector<128x8xf32>
        %cst_42 = arith.constant 0.000000e+00 : f32
        %58 = vector.broadcast %cst_42 : f32 to vector<128x8xf32>
        %59 = arith.maximumf %57, %58 : vector<128x8xf32>
        %cst_43 = arith.constant 9.99999974E-6 : f32
        %60 = vector.broadcast %cst_43 : f32 to vector<128x8xf32>
        %61 = arith.addf %59, %60 : vector<128x8xf32>
        %62 = math.rsqrt %61 : vector<128x8xf32>
        %c0_44 = arith.constant 0 : index
        %c0_45 = arith.constant 0 : index
        %63 = vector.load %arg8[%c0_44, %c0_45] : memref<128x8xf32, #tpu.memory_space<vmem>>, vector<128x8xf32>
        tpu.vector_store %arg8[%c0_44, %c0_45], %52 {strides = array<i32>} : memref<128x8xf32, #tpu.memory_space<vmem>>, vector<128x8xf32>,
        %c0_46 = arith.constant 0 : index
        %c0_47 = arith.constant 0 : index
        %64 = vector.load %arg9[%c0_46, %c0_47] : memref<128x8xf32, #tpu.memory_space<vmem>>, vector<128x8xf32>
        tpu.vector_store %arg9[%c0_46, %c0_47], %62 {strides = array<i32>} : memref<128x8xf32, #tpu.memory_space<vmem>>, vector<128x8xf32>,
        %cst_48 = arith.constant 0.000000e+00 : f32
        %65 = vector.broadcast %cst_48 : f32 to vector<32x8xf32>
        %c0_49 = arith.constant 0 : index
        %c0_50 = arith.constant 0 : index
        %66 = vector.load %arg14[%c0_49, %c0_50] : memref<32x8xf32, #tpu.memory_space<vmem>>, vector<32x8xf32>
        tpu.vector_store %arg14[%c0_49, %c0_50], %65 {strides = array<i32>} : memref<32x8xf32, #tpu.memory_space<vmem>>, vector<32x8xf32>,
        %cst_51 = arith.constant 0.000000e+00 : f32
        %67 = vector.broadcast %cst_51 : f32 to vector<32x8xf32>
        %c0_52 = arith.constant 0 : index
        %c0_53 = arith.constant 0 : index
        %68 = vector.load %arg15[%c0_52, %c0_53] : memref<32x8xf32, #tpu.memory_space<vmem>>, vector<32x8xf32>
        tpu.vector_store %arg15[%c0_52, %c0_53], %67 {strides = array<i32>} : memref<32x8xf32, #tpu.memory_space<vmem>>, vector<32x8xf32>,
      } else {
      }
      %c0_11 = arith.constant 0 : index
      %c0_12 = arith.constant 0 : index
      %21 = vector.load %arg8[%c0_11, %c0_12] : memref<128x8xf32, #tpu.memory_space<vmem>>, vector<128x8xf32>
      %cst_13 = arith.constant dense<0.000000e+00> : vector<128x256xf32>
      %22 = tpu.matmul %21, %5, %cst_13 {dimension_numbers = #tpu.dot_dimension_numbers<[1], [0], [0], [1], [0, 0, 1, 1], [], []>} : vector<128x8xf32>, vector<8x256xf32>, vector<128x256xf32> -> vector<128x256xf32>
      %c0_14 = arith.constant 0 : index
      %c0_15 = arith.constant 0 : index
      %23 = vector.load %arg9[%c0_14, %c0_15] : memref<128x8xf32, #tpu.memory_space<vmem>>, vector<128x8xf32>
      %cst_16 = arith.constant dense<0.000000e+00> : vector<128x256xf32>
      %24 = tpu.matmul %23, %5, %cst_16 {dimension_numbers = #tpu.dot_dimension_numbers<[1], [0], [0], [1], [0, 0, 1, 1], [], []>} : vector<128x8xf32>, vector<8x256xf32>, vector<128x256xf32> -> vector<128x256xf32>
      %25 = arith.subf %11, %22 : vector<128x256xf32>
      %26 = arith.mulf %25, %24 : vector<128x256xf32>
      %cst_17 = arith.constant 0.000000e+00 : f32
      %27 = vector.broadcast %cst_17 : f32 to vector<128x256xf32>
      %28 = arith.maximumf %26, %27 : vector<128x256xf32>
      %c0_18 = arith.constant 0 : index
      %c0_19 = arith.constant 0 : index
      %29 = vector.load %arg6[%c0_18, %c0_19] : memref<32x128xbf16, #tpu.memory_space<vmem>>, vector<32x128xbf16>
      %30 = arith.truncf %28 : vector<128x256xf32> to vector<128x256xbf16>
      %cst_20 = arith.constant dense<0.000000e+00> : vector<32x256xf32>
      %31 = tpu.matmul %29, %30, %cst_20 {dimension_numbers = #tpu.dot_dimension_numbers<[1], [0], [0], [1], [0, 0, 1, 1], [], []>} : vector<32x128xbf16>, vector<128x256xbf16>, vector<32x256xf32> -> vector<32x256xf32>
      %c0_21 = arith.constant 0 : index
      %c0_22 = arith.constant 0 : index
      %32 = vector.load %arg7[%c0_21, %c0_22] : memref<32x1xf32, #tpu.memory_space<vmem>>, vector<32x1xf32>
      %33 = vector.broadcast %32 : vector<32x1xf32> to vector<32x256xf32>
      %34 = arith.addf %31, %33 : vector<32x256xf32>
      %c0_23 = arith.constant 0 : index
      %c0_24 = arith.constant 0 : index
      %35 = vector.load %arg14[%c0_23, %c0_24] : memref<32x8xf32, #tpu.memory_space<vmem>>, vector<32x8xf32>
      %cst_25 = arith.constant dense<0.000000e+00> : vector<32x8xf32>
      %36 = tpu.matmul %34, %5, %cst_25 {dimension_numbers = #tpu.dot_dimension_numbers<[1], [1], [0], [0], [0, 0, 1, 0], [], []>} : vector<32x256xf32>, vector<8x256xf32>, vector<32x8xf32> -> vector<32x8xf32>
      %37 = arith.addf %35, %36 : vector<32x8xf32>
      %c0_26 = arith.constant 0 : index
      %c0_27 = arith.constant 0 : index
      %38 = vector.load %arg14[%c0_26, %c0_27] : memref<32x8xf32, #tpu.memory_space<vmem>>, vector<32x8xf32>
      tpu.vector_store %arg14[%c0_26, %c0_27], %37 {strides = array<i32>} : memref<32x8xf32, #tpu.memory_space<vmem>>, vector<32x8xf32>,
      %c0_28 = arith.constant 0 : index
      %c0_29 = arith.constant 0 : index
      %39 = vector.load %arg15[%c0_28, %c0_29] : memref<32x8xf32, #tpu.memory_space<vmem>>, vector<32x8xf32>
      %40 = arith.mulf %34, %34 : vector<32x256xf32>
      %cst_30 = arith.constant dense<0.000000e+00> : vector<32x8xf32>
      %41 = tpu.matmul %40, %5, %cst_30 {dimension_numbers = #tpu.dot_dimension_numbers<[1], [1], [0], [0], [0, 0, 1, 0], [], []>} : vector<32x256xf32>, vector<8x256xf32>, vector<32x8xf32> -> vector<32x8xf32>
      %42 = arith.addf %39, %41 : vector<32x8xf32>
      %c0_31 = arith.constant 0 : index
      %c0_32 = arith.constant 0 : index
      %43 = vector.load %arg15[%c0_31, %c0_32] : memref<32x8xf32, #tpu.memory_space<vmem>>, vector<32x8xf32>
      tpu.vector_store %arg15[%c0_31, %c0_32], %42 {strides = array<i32>} : memref<32x8xf32, #tpu.memory_space<vmem>>, vector<32x8xf32>,
      %c1_i32_33 = arith.constant 1 : i32
      %44 = arith.cmpi eq, %arg1, %c1_i32_33 : i32
      %45 = arith.extui %44 : i1 to i32
      %c0_i32_34 = arith.constant 0 : i32
      %46 = arith.cmpi ne, %45, %c0_i32_34 : i32
      scf.if %46 {
        %c0_35 = arith.constant 0 : index
        %c0_36 = arith.constant 0 : index
        %47 = vector.load %arg16[%c0_35, %c0_36] : memref<8x8xf32, #tpu.memory_space<vmem>>, vector<1x8xf32>
        %cst_37 = arith.constant 1.000000e+00 : f32
        %48 = vector.broadcast %cst_37 : f32 to vector<1x8xf32>
        %49 = arith.maximumf %47, %48 : vector<1x8xf32>
        %c0_38 = arith.constant 0 : index
        %c0_39 = arith.constant 0 : index
        %50 = vector.load %arg14[%c0_38, %c0_39] : memref<32x8xf32, #tpu.memory_space<vmem>>, vector<32x8xf32>
        %51 = vector.broadcast %49 : vector<1x8xf32> to vector<32x8xf32>
        %52 = arith.divf %50, %51 : vector<32x8xf32>
        %c0_40 = arith.constant 0 : index
        %c0_41 = arith.constant 0 : index
        %53 = vector.load %arg15[%c0_40, %c0_41] : memref<32x8xf32, #tpu.memory_space<vmem>>, vector<32x8xf32>
        %54 = vector.broadcast %49 : vector<1x8xf32> to vector<32x8xf32>
        %55 = arith.divf %53, %54 : vector<32x8xf32>
        %56 = arith.mulf %52, %52 : vector<32x8xf32>
        %57 = arith.subf %55, %56 : vector<32x8xf32>
        %cst_42 = arith.constant 0.000000e+00 : f32
        %58 = vector.broadcast %cst_42 : f32 to vector<32x8xf32>
        %59 = arith.maximumf %57, %58 : vector<32x8xf32>
        %cst_43 = arith.constant 9.99999974E-6 : f32
        %60 = vector.broadcast %cst_43 : f32 to vector<32x8xf32>
        %61 = arith.addf %59, %60 : vector<32x8xf32>
        %62 = math.rsqrt %61 : vector<32x8xf32>
        %c0_44 = arith.constant 0 : index
        %c0_45 = arith.constant 0 : index
        %63 = vector.load %arg10[%c0_44, %c0_45] : memref<32x8xf32, #tpu.memory_space<vmem>>, vector<32x8xf32>
        tpu.vector_store %arg10[%c0_44, %c0_45], %52 {strides = array<i32>} : memref<32x8xf32, #tpu.memory_space<vmem>>, vector<32x8xf32>,
        %c0_46 = arith.constant 0 : index
        %c0_47 = arith.constant 0 : index
        %64 = vector.load %arg11[%c0_46, %c0_47] : memref<32x8xf32, #tpu.memory_space<vmem>>, vector<32x8xf32>
        tpu.vector_store %arg11[%c0_46, %c0_47], %62 {strides = array<i32>} : memref<32x8xf32, #tpu.memory_space<vmem>>, vector<32x8xf32>,
      } else {
      }
    } else {
    }
    return
  }
  func.func @transform_0(%arg0: i32, %arg1: i32) -> (i32, i32) {
    %c0_i32 = arith.constant 0 : i32
    %c0_i32_0 = arith.constant 0 : i32
    return %c0_i32, %arg1 : i32, i32
  }
  func.func @transform_1(%arg0: i32, %arg1: i32) -> (i32, i32) {
    %c0_i32 = arith.constant 0 : i32
    %c0_i32_0 = arith.constant 0 : i32
    return %c0_i32, %arg1 : i32, i32
  }
  func.func @transform_2(%arg0: i32, %arg1: i32) -> (i32, i32) {
    %c0_i32 = arith.constant 0 : i32
    %c0_i32_0 = arith.constant 0 : i32
    %c0_i32_1 = arith.constant 0 : i32
    return %c0_i32, %c0_i32_0 : i32, i32
  }
  func.func @transform_3(%arg0: i32, %arg1: i32) -> (i32, i32) {
    %c0_i32 = arith.constant 0 : i32
    %c0_i32_0 = arith.constant 0 : i32
    %c0_i32_1 = arith.constant 0 : i32
    return %c0_i32, %c0_i32_0 : i32, i32
  }
  func.func @transform_4(%arg0: i32, %arg1: i32) -> (i32, i32) {
    %c0_i32 = arith.constant 0 : i32
    %c0_i32_0 = arith.constant 0 : i32
    %c0_i32_1 = arith.constant 0 : i32
    return %c0_i32, %c0_i32_0 : i32, i32
  }
  func.func @transform_5(%arg0: i32, %arg1: i32) -> (i32, i32) {
    %c0_i32 = arith.constant 0 : i32
    %c0_i32_0 = arith.constant 0 : i32
    %c0_i32_1 = arith.constant 0 : i32
    return %c0_i32, %c0_i32_0 : i32, i32
  }
  func.func @transform_6(%arg0: i32, %arg1: i32) -> (i32, i32) {
    %c0_i32 = arith.constant 0 : i32
    %c0_i32_0 = arith.constant 0 : i32
    %c0_i32_1 = arith.constant 0 : i32
    return %c0_i32, %c0_i32_0 : i32, i32
  }
  func.func @transform_7(%arg0: i32, %arg1: i32) -> (i32, i32) {
    %c0_i32 = arith.constant 0 : i32
    %c0_i32_0 = arith.constant 0 : i32
    %c0_i32_1 = arith.constant 0 : i32
    return %c0_i32, %c0_i32_0 : i32, i32
  }
  func.func @transform_8(%arg0: i32, %arg1: i32) -> (i32, i32) {
    %c0_i32 = arith.constant 0 : i32
    %c0_i32_0 = arith.constant 0 : i32
    %c0_i32_1 = arith.constant 0 : i32
    return %c0_i32, %c0_i32_0 : i32, i32
  }
  func.func @transform_9(%arg0: i32, %arg1: i32) -> (i32, i32) {
    %c0_i32 = arith.constant 0 : i32
    %c0_i32_0 = arith.constant 0 : i32
    %c0_i32_1 = arith.constant 0 : i32
    return %c0_i32, %c0_i32_0 : i32, i32
  }
}

</mosaic_0001>

<bundles_post_ra>
// kernel: extractor_mlp_forward.3
= control target key start
LH: loop header
LB: loop body
LE: loop exit
PB: predicated region body
PF: predicated region fallthrough
CT: control target
= control target key end

     0   :  { %s2792_s0 = inlined_call_operand.vmem [shape: s32[1,512], index: 0, kind: input, shape index: {}]   ;;  %s2793_s1 = inlined_call_operand.vmem [shape: bf16[64,512], index: 1, kind: input, shape index: {}]   ;;  %s2794_s2 = inlined_call_operand.vmem [shape: bf16[128,64], index: 2, kind: input, shape index: {}]   ;;  %s2795_s3 = inlined_call_operand.vmem [shape: f32[128,1], index: 3, kind: input, shape index: {}]   ;;  %s2796_s4 = inlined_call_operand.vmem [shape: bf16[32,128], index: 4, kind: input, shape index: {}]   ;;  %s2797_s5 = inlined_call_operand.vmem [shape: f32[32,1], index: 5, kind: input, shape index: {}]   ;;  %s2798_s6 = inlined_call_operand.vmem [shape: f32[32,1], index: 6, kind: input, shape index: {}]   ;;  %s2799_s7 = inlined_call_operand.<no memory space> [shape: f32[1,1], index: 7, kind: input, shape index: {}]   ;;  %s2800_s8 = inlined_call_operand.vmem [shape: f32[128,8], index: 8, kind: input, shape index: {}]   ;;  %s2801_s9 = inlined_call_operand.vmem [shape: f32[128,8], index: 9, kind: input, shape index: {}]   ;;  %s2802_s10 = inlined_call_operand.vmem [shape: f32[32,8], index: 10, kind: input, shape index: {}]   ;;  %s2803_s11 = inlined_call_operand.vmem [shape: f32[32,8], index: 11, kind: input, shape index: {}]   ;;  %s2804_s12 = inlined_call_operand.vmem [shape: f32[2,1,256], index: 12, kind: output, shape index: {}]  }
   0x1   :  { %v17_v0 = vstv %s2799_s7 }
   0x2   :  { %18 = vst [vmem:[#allocation2] sm:$0x1] %v17_v0 }
   0x3   :  { %s2135_s23 = smov 0   ;;  %s2137_s24 = smov 0  }
   0x4   :  { %s2139_s25 = smov 0  }
   0x5 LB: > { %s2151_s7 = sadd.s32 4294967295, %s2061_s25   ;;  %s2154_s26 = sadd.s32 1, %s2061_s25   ;;  %s2061_s25 = sphi %s2139_s25, %s2849_s25   ;;  %s2057_s24 = sphi %s2137_s24, %s2848_s24   ;;  %s2053_s23 = sphi %s2135_s23, %s2847_s23  }
   0x6   : > { %s54_s27 = ssub.s32 %s2061_s25, %s2154_s26  ;;  %s57_s28 = sadd.s32 1, %s2057_s24 }
   0x7   : > { %p55_p0 = scmp.eq.s32.totalorder %s54_s27, 0  ;;  %p64_p1 = scmp.ne.s32.totalorder %s2057_s24, %s2053_s23 }
   0x8   : > { %p65_p2 = scmp.eq.s32.totalorder %s2061_s25, 0  ;;  %p1900_p4 = scmp.ge.s32.totalorder %s2061_s25, 2 }
   0x9   : > { %s2163_s29 = scalar_select %p55_p0, %s2057_s24, %s57_s28  }
   0xa   : > { %p66_p3 = por %p65_p2, %p64_p1  ;;  %356 = sbr.rel (%p1900_p4) target bundleno = 23 (0x17), region = 56 }
   0xf   : > { %367 = sbr.rel (!%p66_p3) target bundleno = 23 (0x17), region = 64  ;;  %s369_s30 = sand.u32 (%p66_p3), 1, %s2057_s24  }
  0x10   : > { %s1986_s13 = sshll.u32 (%p66_p3), %s2061_s25, 3  ;;  %s1901_s14 = sshll.u32 (%p66_p3), %s369_s30, 6 }
  0x11   : > { %s374_s17 = scalar_lea.vmem (%p66_p3), %s2793_s1, %s1986_s13  ;;  %s371_s18 = scalar_lea.vmem (%p66_p3), [#allocation3], %s1901_s14 }
  0x12   : > { %v417_v1 = vld [vmem:[%s374_s17] sm:$0xff] (%p66_p3)  ;;  %v419_v2 = vld [vmem:[%s374_s17 + $0x10] sm:$0xff] (%p66_p3) }
  0x13   : > { %v421_v3 = vld [vmem:[%s374_s17 + $0x20] sm:$0xff] (%p66_p3)  ;;  %418 = vst [vmem:[%s371_s18] sm:$0xff] (%p66_p3), %v417_v1  ;;  %420 = vst [vmem:[%s371_s18 + $0x8] sm:$0xff] (%p66_p3), %v419_v2  ;;  %v423_v4 = vld [vmem:[%s374_s17 + $0x30] sm:$0xff] (%p66_p3) }
  0x14   : > { %422 = vst [vmem:[%s371_s18 + $0x10] sm:$0xff] %v421_v3  ;;  %v425_v5 = vld [vmem:[%s374_s17 + $0x40] sm:$0xff]  ;;  %v427_v6 = vld [vmem:[%s374_s17 + $0x50] sm:$0xff]  ;;  %424 = vst [vmem:[%s371_s18 + $0x18] sm:$0xff] %v423_v4 }
  0x15   : > { %426 = vst [vmem:[%s371_s18 + $0x20] sm:$0xff] %v425_v5  ;;  %428 = vst [vmem:[%s371_s18 + $0x28] sm:$0xff] %v427_v6  ;;  %v429_v7 = vld [vmem:[%s374_s17 + $0x60] sm:$0xff]  ;;  %v431_v8 = vld [vmem:[%s374_s17 + $0x70] sm:$0xff] }
  0x16   : > { %430 = vst [vmem:[%s371_s18 + $0x30] sm:$0xff] %v429_v7  ;;  %432 = vst [vmem:[%s371_s18 + $0x38] sm:$0xff] %v431_v8 }
  0x17 PF: > { %p1904_p5 = scmp.ge.s32.totalorder %s2061_s25, 1  ;;  %p437_p6 = scmp.lt.s32.totalorder %s2061_s25, 3 }
  0x19   : > { %p438_p7 = pnand %p1904_p5, %p437_p6 }
  0x1b   : > { %441 = sbr.rel (%p438_p7) target bundleno = 668 (0x29c), region = 102 }
  0x20   : > { %s444_s19 = sand.u32 1, %s2053_s23   ;;  %s1906_s20 = sshll.u32 %s2151_s7, 1  ;;  %v2805_v9 = vlaneseq  ;;  %v2807_v10 = vmov 0.0   ;;  %v2809_v12 = vmov 0   ;;  %v854_v23 = vld [vmem:[%s2800_s8] sm:$0xff]  ;;  %vm870_vm2 = vcmask 64512  }
  0x21   : > { %s1905_s21 = sshll.u32 %s444_s19, 6  ;;  %p489_p8 = scmp.lt.s32.totalorder %s1906_s20, 3  ;;  %983 = vmatprep.mubr.f32.mxu1 %v2807_v10  ;;  %773 = vmatprep.mubr.bf16.mxu0 %v2809_v12  ;;  %v2810_v24 = vmov 1.0   ;;  %v855_v27 = vld [vmem:[%s2800_s8 + $0x8] sm:$0xff]  ;;  %v856_v29 = vld [vmem:[%s2800_s8 + $0x10] sm:$0xff]  ;;  %v2029_v30 = vld [vmem:[%s2794_s2] sm:$0xff]  }
  0x22   : > { %v2177_v11 = vshrl.u32 %v2805_v9, 7  ;;  %2015 = vset.pattern.permute.xlu0 %v2809_v12  ;;  %s2181_s22 = scalar_lea.vmem [#allocation3], %s1905_s21  ;;  %2016 = vset.pattern.permute.xlu1 %v2809_v12  ;;  %v554_v31 = vld [vmem:[%s2795_s3 + $0x70] sm:$0xff]  ;;  %vm716_vm3 = vcmask 523264   ;;  %v552_v32 = vld [vmem:[%s2795_s3 + $0x60] sm:$0xff]  ;;  %v555_v33 = vld [vmem:[%s2795_s3 + $0x78] sm:$0xff] }
  0x23   : > { %v2017_v13 = vld [vmem:[%s2181_s22 + $0x34] ss:$8 sps:$4 sm:$0xff]   ;;  %s2851_s20 = smov (!%p489_p8, %s1906_s20), 3  ;;  %v2019_v14 = vld [vmem:[%s2181_s22 + $0x30] ss:$8 sps:$4 sm:$0xff]   ;;  %628 = vperm.xlu0 %2015, %v554_v31   ;;  %618 = vperm.xlu1 %2016, %v552_v32   ;;  %v553_v34 = vld [vmem:[%s2795_s3 + $0x68] sm:$0xff] }
  0x24   : > { %2820 = vst [vmem:[#allocation4_spill] sm:$0xff] %v2177_v11  ;;  %v508_v15 = vsub.s32 1, %v2177_v11  ;;  %v2806_v16 = vsub.s32 0, %v2177_v11  ;;  %749 = vmatprep.subr.bf16.mxu0 %v2017_v13  ;;  %v2020_v17 = vld [vmem:[%s2181_s22 + $0x24] ss:$8 sps:$4 sm:$0xff]   ;;  %s491_s27 = scalar_lea.vmem %s2792_s0, %s2851_s20  ;;  %v857_v35 = vld [vmem:[%s2800_s8 + $0x18] sm:$0xff] }
  0x25   : > { %750 = vmatpush1.bf16.msra.mxu0 %v2019_v14  ;;  %v501_v18 = vld [vmem:[%s491_s27] sm:$0x3]  ;;  %v2025_v25 = vld [vmem:[%s2181_s22 + $0x10] ss:$8 sps:$4 sm:$0xff]   ;;  %v2026_v26 = vld [vmem:[%s2181_s22 + $0x4] ss:$8 sps:$4 sm:$0xff]  }
  0x26   : > { %v2022_v19 = vld [vmem:[%s2181_s22 + $0x20] ss:$8 sps:$4 sm:$0xff]   ;;  %751 = vmatprep.subr.bf16.mxu0 %v2020_v17  ;;  %v2193_v20 = vrot.slane %v501_v18, %v508_v15  ;;  %v2197_v21 = vrot.slane %v501_v18, %v2806_v16  ;;  %v2023_v22 = vld [vmem:[%s2181_s22 + $0x14] ss:$8 sps:$4 sm:$0xff]   ;;  %p494_p9 = scmp.lt.s32.totalorder %s2151_s7, 1 }
  0x27   : > { %v2028_v28 = vld [vmem:[%s2181_s22] ss:$8 sps:$4 sm:$0xff]   ;;  %633 = vperm.xlu0 %2015, %v555_v33   ;;  %623 = vperm.xlu1 %2016, %v553_v34   ;;  %v550_v36 = vld [vmem:[%s2795_s3 + $0x50] sm:$0xff]  ;;  %v551_v37 = vld [vmem:[%s2795_s3 + $0x58] sm:$0xff] }
  0x28   : > { %2821 = vst [vmem:[#allocation5_spill] sm:$0xff] %v2193_v20  ;;  %2822 = vst [vmem:[#allocation6_spill] sm:$0xff] %v2197_v21  ;;  %vm511_vm0 = vcmp.eq.s32.totalorder %v2177_v11, %v2193_v20  ;;  %vm510_vm1 = vcmp.eq.s32.totalorder %v2177_v11, %v2197_v21  ;;  %v858_v38 = vld [vmem:[%s2800_s8 + $0x20] sm:$0xff]  ;;  %v2030_v39 = vld [vmem:[%s2794_s2 + $0x8] sm:$0xff]   ;;  %s2853_s7 = smov (!%p494_p9, %s2151_s7), 1 }
  0x29   : > { %1934 = vmatprep.subr.msk.mxu1 %vm511_vm0, %v2810_v24  ;;  %752 = vmatpush1.bf16.msra.mxu0 %v2022_v19  ;;  %v548_v40 = vld [vmem:[%s2795_s3 + $0x40] sm:$0xff]  ;;  %v549_v41 = vld [vmem:[%s2795_s3 + $0x48] sm:$0xff]  ;;  %v546_v43 = vld [vmem:[%s2795_s3 + $0x30] sm:$0xff]  ;;  %s1907_s25 = sshll.u32 %s2853_s7, 1 }
  0x2a   : > { %1935 = vmatpush1.msk.msra.mxu1 %vm510_vm1, %v2810_v24  ;;  %753 = vmatprep.subr.bf16.mxu0 %v2023_v22  ;;  %v859_v42 = vld [vmem:[%s2800_s8 + $0x28] sm:$0xff]  ;;  %v547_v44 = vld [vmem:[%s2795_s3 + $0x38] sm:$0xff]  ;;  %v860_v45 = vld [vmem:[%s2800_s8 + $0x30] sm:$0xff]  ;;  %s497_s30 = scalar_lea.vmem %s2804_s12, %s1907_s25 }
  0x2b   : > { %1936 = vmatmul.mubr.msk.f32.vlgmr.msra.gmra.mxu1 %vm870_vm2, %v854_v23  ;;  %1952 = vmatprep.subr.msk.mxu1 %vm511_vm0, %v2810_v24  ;;  %v2031_v46 = vld [vmem:[%s2794_s2 + $0x10] sm:$0xff]   ;;  %v544_v47 = vld [vmem:[%s2795_s3 + $0x20] sm:$0xff]  ;;  %v545_v48 = vld [vmem:[%s2795_s3 + $0x28] sm:$0xff] }
  0x2c   : > { %989 = vmatprep.mubr.f32.mxu1 %v2807_v10  ;;  %1953 = vmatpush1.msk.msra.mxu1 %vm510_vm1, %v2810_v24  ;;  %v861_v49 = vld [vmem:[%s2800_s8 + $0x38] sm:$0xff]  ;;  %v542_v50 = vld [vmem:[%s2795_s3 + $0x10] sm:$0xff]  ;;  %v862_v52 = vld [vmem:[%s2800_s8 + $0x40] sm:$0xff] }
  0x2d   : > { %754 = vmatpush1.bf16.msra.mxu0 %v2025_v25  ;;  %608 = vperm.xlu0 %2015, %v550_v36   ;;  %v543_v51 = vld [vmem:[%s2795_s3 + $0x18] sm:$0xff]  ;;  %v540_v54 = vld [vmem:[%s2795_s3] sm:$0xff]  ;;  %v541_v55 = vld [vmem:[%s2795_s3 + $0x8] sm:$0xff] }
  0x2e   : > { %755 = vmatprep.subr.bf16.mxu0 %v2026_v26  ;;  %613 = vperm.xlu1 %2016, %v551_v37   ;;  %v2032_v53 = vld [vmem:[%s2794_s2 + $0x18] sm:$0xff]   ;;  %v863_v56 = vld [vmem:[%s2800_s8 + $0x48] sm:$0xff]  ;;  %v1421_v57 = vld [vmem:[%s2797_s5] sm:$0xff] }
  0x2f   : > { %1937 = vmatmul.mubr.msk.f32.gmra.mxu1 %vm870_vm2, %v855_v27  ;;  %v1422_v58 = vld [vmem:[%s2797_s5 + $0x8] sm:$0xff]  ;;  %v864_v59 = vld [vmem:[%s2800_s8 + $0x50] sm:$0xff]  ;;  %v2033_v60 = vld [vmem:[%s2794_s2 + $0x20] sm:$0xff]  }
  0x30   : > { %995 = vmatprep.mubr.f32.mxu1 %v2807_v10  ;;  %v1423_v61 = vld [vmem:[%s2797_s5 + $0x10] sm:$0xff]  ;;  %v1424_v62 = vld [vmem:[%s2797_s5 + $0x18] sm:$0xff]  ;;  %v1744_v0 = vld [vmem:[%s2798_s6] sm:$0xff] }
  0x31   : > { %756 = vmatpush1.bf16.msra.mxu0 %v2028_v28  ;;  %598 = vperm.xlu0 %2015, %v548_v40   ;;  %v865_v63 = vld [vmem:[%s2800_s8 + $0x58] sm:$0xff]  ;;  %v1745_v1 = vld [vmem:[%s2798_s6 + $0x8] sm:$0xff]  ;;  %v866_v2 = vld [vmem:[%s2800_s8 + $0x60] sm:$0xff] }
  0x32   : > { %603 = vperm.xlu1 %2016, %v549_v41   ;;  %v2034_v3 = vld [vmem:[%s2794_s2 + $0x28] sm:$0xff]   ;;  %v1746_v4 = vld [vmem:[%s2798_s6 + $0x10] sm:$0xff]  ;;  %v1794_v6 = vld [vmem:[#allocation2] sm:$0x1] }
  0x33   : > { %1938 = vmatmul.mubr.msk.f32.gmra.mxu1 %vm870_vm2, %v856_v29  ;;  %v867_v5 = vld [vmem:[%s2800_s8 + $0x68] sm:$0xff]  ;;  %v868_v7 = vld [vmem:[%s2800_s8 + $0x70] sm:$0xff]  ;;  %v869_v13 = vld [vmem:[%s2800_s8 + $0x78] sm:$0xff] }
  0x34   : > { %1926 = vmatmul.mubr.msk.bf16.vlgmr.msra.gmra.mxu0 %vm716_vm3, %v2029_v30  ;;  %1001 = vmatprep.mubr.f32.mxu1 %v2807_v10  ;;  %v2035_v8 = vld [vmem:[%s2794_s2 + $0x30] sm:$0xff]   ;;  %v1080_v14 = vld [vmem:[%s2801_s9] sm:$0xff]  ;;  %v2036_v15 = vld [vmem:[%s2794_s2 + $0x38] sm:$0xff]  }
  0x35   : > { %783 = vmatprep.mubr.bf16.mxu0 %v2809_v12  ;;  %588 = vperm.xlu0 %2015, %v546_v43   ;;  %v1747_v17 = vld [vmem:[%s2798_s6 + $0x18] sm:$0xff]  ;;  %v1081_v18 = vld [vmem:[%s2801_s9 + $0x8] sm:$0xff]  ;;  %v1082_v19 = vld [vmem:[%s2801_s9 + $0x10] sm:$0xff] }
  0x36   : > { %593 = vperm.xlu1 %2016, %v547_v44   ;;  %v1083_v22 = vld [vmem:[%s2801_s9 + $0x18] sm:$0xff]  ;;  %v1084_v23 = vld [vmem:[%s2801_s9 + $0x20] sm:$0xff]  ;;  %v1085_v25 = vld [vmem:[%s2801_s9 + $0x28] sm:$0xff] }
  0x37   : > { %1939 = vmatmul.mubr.msk.f32.gmra.mxu1 %vm870_vm2, %v857_v35  ;;  %v1086_v26 = vld [vmem:[%s2801_s9 + $0x30] sm:$0xff]  ;;  %v1087_v27 = vld [vmem:[%s2801_s9 + $0x38] sm:$0xff]  ;;  %v1088_v28 = vld [vmem:[%s2801_s9 + $0x40] sm:$0xff] }
  0x38   : > { %1007 = vmatprep.mubr.f32.mxu1 %v2807_v10  ;;  %v1089_v29 = vld [vmem:[%s2801_s9 + $0x48] sm:$0xff]  ;;  %v1090_v30 = vld [vmem:[%s2801_s9 + $0x50] sm:$0xff]  ;;  %v1091_v31 = vld [vmem:[%s2801_s9 + $0x58] sm:$0xff] }
  0x39   : > { %578 = vperm.xlu0 %2015, %v544_v47   ;;  %v1092_v32 = vld [vmem:[%s2801_s9 + $0x60] sm:$0xff]  ;;  %v1093_v33 = vld [vmem:[%s2801_s9 + $0x68] sm:$0xff]  ;;  %v1094_v34 = vld [vmem:[%s2801_s9 + $0x70] sm:$0xff] }
  0x3a   : > { %583 = vperm.xlu1 %2016, %v545_v48   ;;  %v1095_v35 = vld [vmem:[%s2801_s9 + $0x78] sm:$0xff] }
  0x3b   : > { %1940 = vmatmul.mubr.msk.f32.gmra.mxu1 %vm870_vm2, %v858_v38 }
  0x3c   : > { %1927 = vmatmul.mubr.msk.bf16.gmra.mxu0 %vm716_vm3, %v2030_v39  ;;  %1013 = vmatprep.mubr.f32.mxu1 %v2807_v10 }
  0x3d   : > { %793 = vmatprep.mubr.bf16.mxu0 %v2809_v12  ;;  %568 = vperm.xlu0 %2015, %v542_v50  }
  0x3e   : > { %573 = vperm.xlu1 %2016, %v543_v51  }
  0x3f   : > { %1941 = vmatmul.mubr.msk.f32.gmra.mxu1 %vm870_vm2, %v859_v42 }
  0x40   : > { %1019 = vmatprep.mubr.f32.mxu1 %v2807_v10 }
  0x41   : > { %558 = vperm.xlu0 %2015, %v540_v54  }
  0x42   : > { %563 = vperm.xlu1 %2016, %v541_v55  }
  0x43   : > { %1942 = vmatmul.mubr.msk.f32.gmra.mxu1 %vm870_vm2, %v860_v45 }
  0x44   : > { %1928 = vmatmul.mubr.msk.bf16.gmra.mxu0 %vm716_vm3, %v2031_v46  ;;  %1025 = vmatprep.mubr.f32.mxu1 %v2807_v10 }
  0x45   : > { %803 = vmatprep.mubr.bf16.mxu0 %v2809_v12  ;;  %1427 = vperm.xlu0 %2015, %v1421_v57  }
  0x46   : > { %1432 = vperm.xlu1 %2016, %v1422_v58  }
  0x47   : > { %1943 = vmatmul.mubr.msk.f32.gmra.mxu1 %vm870_vm2, %v861_v49 }
  0x48   : > { %1031 = vmatprep.mubr.f32.mxu1 %v2807_v10 }
  0x49   : > { %1437 = vperm.xlu0 %2015, %v1423_v61  }
  0x4a   : > { %1442 = vperm.xlu1 %2016, %v1424_v62  }
  0x4b   : > { %1944 = vmatmul.mubr.msk.f32.gmra.mxu1 %vm870_vm2, %v862_v52 }
  0x4c   : > { %1929 = vmatmul.mubr.msk.bf16.gmra.mxu0 %vm716_vm3, %v2032_v53  ;;  %1037 = vmatprep.mubr.f32.mxu1 %v2807_v10 }
  0x4d   : > { %813 = vmatprep.mubr.bf16.mxu0 %v2809_v12  ;;  %1750 = vperm.xlu0 %2015, %v1744_v0  }
  0x4e   : > { %1755 = vperm.xlu1 %2016, %v1745_v1  }
  0x4f   : > { %1945 = vmatmul.mubr.msk.f32.gmra.mxu1 %vm870_vm2, %v863_v56 }
  0x50   : > { %1043 = vmatprep.mubr.f32.mxu1 %v2807_v10 }
  0x51   : > { %1760 = vperm.xlu0 %2015, %v1746_v4  }
  0x52   : > { %1765 = vperm.xlu1 %2016, %v1747_v17  }
  0x53   : > { %1946 = vmatmul.mubr.msk.f32.gmra.mxu1 %vm870_vm2, %v864_v59 }
  0x54   : > { %1930 = vmatmul.mubr.msk.bf16.gmra.mxu0 %vm716_vm3, %v2033_v60  ;;  %1049 = vmatprep.mubr.f32.mxu1 %v2807_v10 }
  0x55   : > { %823 = vmatprep.mubr.bf16.mxu0 %v2809_v12  ;;  %1797 = vperm.xlu0 %2015, %v1794_v6  }
  0x57   : > { %1947 = vmatmul.mubr.msk.f32.gmra.mxu1 %vm870_vm2, %v865_v63 }
  0x58   : > { %1055 = vmatprep.mubr.f32.mxu1 %v2807_v10 }
  0x5b   : > { %1948 = vmatmul.mubr.msk.f32.gmra.mxu1 %vm870_vm2, %v866_v2 }
  0x5c   : > { %1931 = vmatmul.mubr.msk.bf16.gmra.mxu0 %vm716_vm3, %v2034_v3  ;;  %1061 = vmatprep.mubr.f32.mxu1 %v2807_v10 }
  0x5d   : > { %833 = vmatprep.mubr.bf16.mxu0 %v2809_v12 }
  0x5f   : > { %1949 = vmatmul.mubr.msk.f32.gmra.mxu1 %vm870_vm2, %v867_v5 }
  0x60   : > { %1067 = vmatprep.mubr.f32.mxu1 %v2807_v10 }
  0x63   : > { %1950 = vmatmul.mubr.msk.f32.gmra.mxu1 %vm870_vm2, %v868_v7 }
  0x64   : > { %1932 = vmatmul.mubr.msk.bf16.gmra.mxu0 %vm716_vm3, %v2035_v8  ;;  %1073 = vmatprep.mubr.f32.mxu1 %v2807_v10 }
  0x65   : > { %843 = vmatprep.mubr.bf16.mxu0 %v2809_v12 }
  0x67   : > { %1951 = vmatmul.mubr.msk.f32.gmra.mxu1 %vm870_vm2, %v869_v13 }
  0x68   : > { %1208 = vmatprep.mubr.f32.mxu1 %v2807_v10 }
  0x6b   : > { %1954 = vmatmul.mubr.msk.f32.vlgmr.msra.gmra.mxu1 %vm870_vm2, %v1080_v14 }
  0x6c   : > { %1933 = vmatmul.mubr.msk.bf16.gmra.mxu0 %vm716_vm3, %v2036_v15  ;;  %1214 = vmatprep.mubr.f32.mxu1 %v2807_v10 }
  0x6d   : > { %1489 = vmatprep.mubr.bf16.mxu0 %v2809_v12 }
  0x6f   : > { %1955 = vmatmul.mubr.msk.f32.gmra.mxu1 %vm870_vm2, %v1081_v18 }
  0x70   : > { %1220 = vmatprep.mubr.f32.mxu1 %v2807_v10 }
  0x73   : > { %1956 = vmatmul.mubr.msk.f32.gmra.mxu1 %vm870_vm2, %v1082_v19 }
  0x74   : > { %1226 = vmatprep.mubr.f32.mxu1 %v2807_v10 }
  0x77   : > { %1957 = vmatmul.mubr.msk.f32.gmra.mxu1 %vm870_vm2, %v1083_v22 }
  0x78   : > { %1232 = vmatprep.mubr.f32.mxu1 %v2807_v10 }
  0x7b   : > { %1958 = vmatmul.mubr.msk.f32.gmra.mxu1 %vm870_vm2, %v1084_v23 }
  0x7c   : > { %1238 = vmatprep.mubr.f32.mxu1 %v2807_v10 }
  0x7f   : > { %1959 = vmatmul.mubr.msk.f32.gmra.mxu1 %vm870_vm2, %v1085_v25 }
  0x80   : > { %1244 = vmatprep.mubr.f32.mxu1 %v2807_v10 }
  0x83   : > { %1960 = vmatmul.mubr.msk.f32.gmra.mxu1 %vm870_vm2, %v1086_v26 }
  0x84   : > { %1250 = vmatprep.mubr.f32.mxu1 %v2807_v10 }
  0x87   : > { %1961 = vmatmul.mubr.msk.f32.gmra.mxu1 %vm870_vm2, %v1087_v27 }
  0x88   : > { %1256 = vmatprep.mubr.f32.mxu1 %v2807_v10 }
  0x8b   : > { %1962 = vmatmul.mubr.msk.f32.gmra.mxu1 %vm870_vm2, %v1088_v28 }
  0x8c   : > { %1262 = vmatprep.mubr.f32.mxu1 %v2807_v10 }
  0x8f   : > { %1963 = vmatmul.mubr.msk.f32.gmra.mxu1 %vm870_vm2, %v1089_v29 }
  0x90   : > { %1268 = vmatprep.mubr.f32.mxu1 %v2807_v10 }
  0x93   : > { %1964 = vmatmul.mubr.msk.f32.gmra.mxu1 %vm870_vm2, %v1090_v30 }
  0x94   : > { %1274 = vmatprep.mubr.f32.mxu1 %v2807_v10 }
  0x97   : > { %1965 = vmatmul.mubr.msk.f32.gmra.mxu1 %vm870_vm2, %v1091_v31 }
  0x98   : > { %1280 = vmatprep.mubr.f32.mxu1 %v2807_v10 }
  0x9b   : > { %1966 = vmatmul.mubr.msk.f32.gmra.mxu1 %vm870_vm2, %v1092_v32 }
  0x9c   : > { %1286 = vmatprep.mubr.f32.mxu1 %v2807_v10 }
  0x9e   : > { %v2494_v36 = vpop.permute.xlu0 %628  ;;  %v2496_v37 = vpop.permute.xlu1 %618 }
  0x9f   : > { %1967 = vmatmul.mubr.msk.f32.gmra.mxu1 %vm870_vm2, %v1093_v33  ;;  %2823 = vst [vmem:[#allocation7_spill] sm:$0xff] %v2494_v36 }
  0xa0   : > { %1292 = vmatprep.mubr.f32.mxu1 %v2807_v10 }
  0xa2   : > { %v2498_v38 = vpop.permute.xlu0 %633  ;;  %v2500_v39 = vpop.permute.xlu1 %623 }
  0xa3   : > { %1968 = vmatmul.mubr.msk.f32.gmra.mxu1 %vm870_vm2, %v1094_v34  ;;  %2824 = vst [vmem:[#allocation8_spill] sm:$0xff] %v2498_v38 }
  0xa4   : > { %1298 = vmatprep.mubr.f32.mxu1 %v2807_v10 }
  0xa7   : > { %1969 = vmatmul.mubr.msk.f32.gmra.mxu1 %vm870_vm2, %v1095_v35 }
  0xa8   : > { %v2502_v40 = vpop.permute.xlu0 %608 }
  0xa9   : > { %v2504_v41 = vpop.permute.xlu1 %613 }
  0xac   : > { %v2506_v42 = vpop.permute.xlu0 %598 }
  0xad   : > { %v2508_v43 = vpop.permute.xlu1 %603 }
  0xb0   : > { %v2510_v44 = vpop.permute.xlu0 %588 }
  0xb1   : > { %v2512_v45 = vpop.permute.xlu1 %593 }
  0xb4   : > { %v2514_v46 = vpop.permute.xlu0 %578 }
  0xb5   : > { %v2516_v47 = vpop.permute.xlu1 %583 }
  0xb8   : > { %v569_v49 = vpop.permute.xlu0 %568 }
  0xb9   : > { %v574_v52 = vpop.permute.xlu1 %573 }
  0xbc   : > { %v559_v54 = vpop.permute.xlu0 %558 }
  0xbd   : > { %v564_v60 = vpop.permute.xlu1 %563 }
  0xeb   : > { %v2518_v48 = vpop.f32.mrf.mxu1 }
  0xed   : > { %v2520_v50 = vpop.f32.mrf.mxu1 }
  0xef   : > { %v2522_v51 = vpop.f32.mrf.mxu1 }
  0xf1   : > { %v2524_v53 = vpop.f32.mrf.mxu1 }
  0xf3   : > { %v2526_v55 = vpop.f32.mrf.mxu1 }
  0xf4   : > { %v775_v56 = vpop.f32.mrf.mxu0 }
  0xf5   : > { %v2528_v57 = vadd.f32 %v775_v56, %v559_v54  ;;  %v2530_v58 = vpop.f32.mrf.mxu1 }
  0xf6   : > { %v777_v59 = vpop.f32.mrf.mxu0 }
  0xf7   : > { %v2532_v61 = vadd.f32 %v777_v59, %v559_v54  ;;  %v2534_v62 = vpop.f32.mrf.mxu1  ;;  %v1305_v63 = vsub.f32 %v2528_v57, %v2518_v48 }
  0xf8   : > { %v779_v0 = vpop.f32.mrf.mxu0 }
  0xf9   : > { %v780_v1 = vadd.f32 %v779_v0, %v564_v60  ;;  %v2538_v2 = vpop.f32.mrf.mxu1  ;;  %v1306_v3 = vsub.f32 %v2532_v61, %v2520_v50 }
  0xfa   : > { %v781_v4 = vpop.f32.mrf.mxu0 }
  0xfb   : > { %v2542_v5 = vadd.f32 %v781_v4, %v564_v60  ;;  %v2544_v6 = vpop.f32.mrf.mxu1  ;;  %v1307_v7 = vsub.f32 %v780_v1, %v2522_v51 }
  0xfc   : > { %v785_v8 = vpop.f32.mrf.mxu0 }
  0xfd   : > { %v2547_v13 = vadd.f32 %v785_v8, %v569_v49  ;;  %v2549_v14 = vpop.f32.mrf.mxu1  ;;  %v1308_v15 = vsub.f32 %v2542_v5, %v2524_v53 }
  0xfe   : > { %v787_v17 = vpop.f32.mrf.mxu0 }
  0xff   : > { %v2553_v18 = vadd.f32 %v787_v17, %v569_v49  ;;  %v2555_v19 = vpop.f32.mrf.mxu1  ;;  %v1309_v22 = vsub.f32 %v2547_v13, %v2526_v55 }
 0x100   : > { %v789_v23 = vpop.f32.mrf.mxu0 }
 0x101   : > { %v790_v25 = vadd.f32 %v789_v23, %v574_v52  ;;  %v2559_v26 = vpop.f32.mrf.mxu1  ;;  %v1310_v27 = vsub.f32 %v2553_v18, %v2530_v58 }
 0x102   : > { %v791_v28 = vpop.f32.mrf.mxu0 }
 0x103   : > { %v2563_v29 = vadd.f32 %v791_v28, %v574_v52  ;;  %v2565_v30 = vpop.f32.mrf.mxu1  ;;  %v1311_v31 = vsub.f32 %v790_v25, %v2534_v62 }
 0x104   : > { %v795_v32 = vpop.f32.mrf.mxu0 }
 0x105   : > { %v2569_v33 = vadd.f32 %v795_v32, %v2514_v46  ;;  %v2571_v34 = vpop.f32.mrf.mxu1  ;;  %v1312_v35 = vsub.f32 %v2563_v29, %v2538_v2 }
 0x106   : > { %v797_v50 = vpop.f32.mrf.mxu0 }
 0x107   : > { %v2575_v48 = vpop.f32.mrf.mxu1  ;;  %v1313_v49 = vsub.f32 %v2569_v33, %v2544_v6 }
 0x108   : > { %v799_v53 = vpop.f32.mrf.mxu0 }
 0x109   : > { %v2579_v51 = vpop.f32.mrf.mxu1 }
 0x10a   : > { %v801_v56 = vpop.f32.mrf.mxu0 }
 0x10b   : > { %v2581_v52 = vpop.f32.mrf.mxu1 }
 0x10c   : > { %v805_v59 = vpop.f32.mrf.mxu0 }
 0x10d   : > { %v2583_v54 = vpop.f32.mrf.mxu1 }
 0x10e   : > { %v807_v62 = vpop.f32.mrf.mxu0 }
 0x10f   : > { %v2585_v55 = vpop.f32.mrf.mxu1 }
 0x110   : > { %v809_v2 = vpop.f32.mrf.mxu0 }
 0x111   : > { %v2587_v57 = vpop.f32.mrf.mxu1 }
 0x112   : > { %v2603_v6 = vpop.f32.mrf.mxu0 }
 0x113   : > { %v2589_v58 = vpop.f32.mrf.mxu1 }
 0x114   : > { %v2609_v17 = vpop.f32.mrf.mxu0 }
 0x115   : > { %v2591_v60 = vpop.f32.mrf.mxu1 }
 0x116   : > { %v2615_v25 = vpop.f32.mrf.mxu0 }
 0x117   : > { %v2593_v61 = vpop.f32.mrf.mxu1 }
 0x118   : > { %v2619_v33 = vpop.f32.mrf.mxu0 }
 0x119   : > { %v2595_v0 = vpop.f32.mrf.mxu1 }
 0x11a   : > { %v2621_v24 = vpop.f32.mrf.mxu0 }
 0x11b   : > { %v2597_v1 = vpop.f32.mrf.mxu1 }
 0x11c   : > { %v2625_v36 = vpop.f32.mrf.mxu0 }
 0x11d   : > { %v2599_v4 = vpop.f32.mrf.mxu1 }
 0x11f   : > { %v2601_v5 = vpop.f32.mrf.mxu1 }
 0x120   : > { %2825 = vst [vmem:[#allocation9_spill] sm:$0xff] %v2601_v5  ;;  %v2630_v5 = vpop.f32.mrf.mxu0 }
 0x121   : > { %v2605_v8 = vpop.f32.mrf.mxu1 }
 0x122   : > { %2826 = vst [vmem:[#allocation10_spill] sm:$0xff] %v2605_v8 }
 0x123   : > { %v2607_v13 = vpop.f32.mrf.mxu1 }
 0x124   : > { %2827 = vst [vmem:[#allocation11_spill] sm:$0xff] %v2607_v13 }
 0x125   : > { %v2611_v18 = vpop.f32.mrf.mxu1 }
 0x126   : > { %2828 = vst [vmem:[#allocation12_spill] sm:$0xff] %v2611_v18 }
 0x127   : > { %v2613_v23 = vpop.f32.mrf.mxu1 }
 0x128   : > { %2829 = vst [vmem:[#allocation13_spill] sm:$0xff] %v2613_v23 }
 0x129   : > { %v2617_v28 = vpop.f32.mrf.mxu1 }
 0x12a   : > { %2830 = vst [vmem:[#allocation14_spill] sm:$0xff] %v2617_v28 }
 0x12b   : > { %v1210_v29 = vpop.f32.mrf.mxu1 }
 0x12c   : > { %v1337_v32 = vmul.f32 %v1305_v63, %v1210_v29 }
 0x12d   : > { %v1212_v9 = vpop.f32.mrf.mxu1 }
 0x12e   : > { %v1338_v16 = vmul.f32 %v1306_v3, %v1212_v9  ;;  %v1369_v20 = vmax.f32 %v1337_v32, 0.0 }
 0x12f   : > { %v1216_v10 = vpop.f32.mrf.mxu1 }
 0x130   : > { %v1339_v12 = vmul.f32 %v1307_v7, %v1216_v10  ;;  %v1370_v23 = vmax.f32 %v1338_v16, 0.0  ;;  %v798_v7 = vadd.f32 %v797_v50, %v2514_v46 }
 0x131   : > { %v1218_v21 = vpop.f32.mrf.mxu1 }
 0x132   : > { %v1371_v11 = vmax.f32 %v1339_v12, 0.0  ;;  %v1340_v18 = vmul.f32 %v1308_v15, %v1218_v21  ;;  %v800_v21 = vadd.f32 %v799_v53, %v2516_v47  ;;  %v802_v15 = vadd.f32 %v801_v56, %v2516_v47 }
 0x133   : > { %v1222_v13 = vpop.f32.mrf.mxu1  ;;  %v1314_v46 = vsub.f32 %v798_v7, %v2549_v14  ;;  %v806_v53 = vadd.f32 %v805_v59, %v2510_v44  ;;  %v808_v56 = vadd.f32 %v807_v62, %v2510_v44 }
 0x134   : > { %v2623_v38 = vpack.c.bf16 %v1371_v11, %v1369_v20  ;;  %v1372_v8 = vmax.f32 %v1340_v18, 0.0  ;;  %v1341_v28 = vmul.f32 %v1309_v22, %v1222_v13  ;;  %v1315_v50 = vsub.f32 %v800_v21, %v2555_v19 }
 0x135   : > { %v1224_v63 = vpop.f32.mrf.mxu1  ;;  %v1316_v47 = vsub.f32 %v802_v15, %v2559_v26  ;;  %v1317_v14 = vsub.f32 %v806_v53, %v2565_v30  ;;  %v812_v19 = vadd.f32 %v2603_v6, %v2512_v45  ;;  %v818_v6 = vadd.f32 %v2615_v25, %v2506_v42 }
 0x136   : > { %v2627_v29 = vpack.c.bf16 %v1372_v8, %v1370_v23  ;;  %v1342_v9 = vmul.f32 %v1310_v27, %v1224_v63  ;;  %v1373_v16 = vmax.f32 %v1341_v28, 0.0  ;;  %v829_v23 = vpop.f32.mrf.mxu0 }
 0x137   : > { %v1228_v3 = vpop.f32.mrf.mxu1 }
 0x138   : > { %v1343_v10 = vmul.f32 %v1311_v31, %v1228_v3  ;;  %v1374_v13 = vmax.f32 %v1342_v9, 0.0  ;;  %v831_v9 = vpop.f32.mrf.mxu0 }
 0x139   : > { %v1230_v12 = vpop.f32.mrf.mxu1 }
 0x13a   : > { %v1375_v11 = vmax.f32 %v1343_v10, 0.0  ;;  %v1344_v20 = vmul.f32 %v1312_v35, %v1230_v12  ;;  %v835_v26 = vpop.f32.mrf.mxu0 }
 0x13b   : > { %v1234_v22 = vpop.f32.mrf.mxu1 }
 0x13c   : > { %v2634_v18 = vpack.c.bf16 %v1375_v11, %v1373_v16  ;;  %v1376_v8 = vmax.f32 %v1344_v20, 0.0  ;;  %v1345_v27 = vmul.f32 %v1313_v49, %v1234_v22  ;;  %v810_v49 = vadd.f32 %v809_v2, %v2512_v45 }
 0x13d   : > { %v1236_v31 = vpop.f32.mrf.mxu1  ;;  %v1318_v2 = vsub.f32 %v808_v56, %v2571_v34  ;;  %v816_v22 = vadd.f32 %v2609_v17, %v2506_v42  ;;  %v1320_v45 = vsub.f32 %v812_v19, %v2579_v51  ;;  %v822_v17 = vadd.f32 %v2621_v24, %v2508_v43 }
 0x13e   : > { %v2636_v32 = vpack.c.bf16 %v1376_v8, %v1374_v13  ;;  %v1346_v35 = vmul.f32 %v1314_v46, %v1236_v31  ;;  %v1377_v10 = vmax.f32 %v1345_v27, 0.0  ;;  %v1319_v15 = vsub.f32 %v810_v49, %v2575_v48  ;;  %v837_v27 = vpop.f32.mrf.mxu0 }
 0x13f   : > { %v1240_v28 = vpop.f32.mrf.mxu1  ;;  %v820_v46 = vadd.f32 %v2619_v33, %v2508_v43  ;;  %v1322_v33 = vsub.f32 %v818_v6, %v2583_v54  ;;  %v826_v49 = vadd.f32 %v2625_v36, %v2502_v40  ;;  %v1324_v24 = vsub.f32 %v822_v17, %v2587_v57 }
 0x140   : > { %v1347_v63 = vmul.f32 %v1315_v50, %v1240_v28  ;;  %v1378_v59 = vmax.f32 %v1346_v35, 0.0  ;;  %v1321_v28 = vsub.f32 %v816_v22, %v2581_v52  ;;  %v828_v43 = vadd.f32 %v2630_v5, %v2502_v40 }
 0x141   : > { %v1242_v3 = vpop.f32.mrf.mxu1  ;;  %v832_v36 = vadd.f32 %v831_v9, %v2504_v41  ;;  %v838_v9 = vadd.f32 %v837_v27, %v2496_v37  ;;  %v2831_v27 = vld [vmem:[#allocation9_spill] sm:$0xff] }
 0x142   : > { %v1379_v12 = vmax.f32 %v1347_v63, 0.0  ;;  %v1348_v16 = vmul.f32 %v1316_v47, %v1242_v3  ;;  %v839_v47 = vpop.f32.mrf.mxu0  ;;  %v1323_v3 = vsub.f32 %v820_v46, %v2585_v55  ;;  %v1325_v55 = vsub.f32 %v826_v49, %v2589_v58 }
 0x143   : > { %v1246_v11 = vpop.f32.mrf.mxu1  ;;  %v1326_v5 = vsub.f32 %v828_v43, %v2591_v60 }
 0x144   : > { %v2647_v7 = vpack.c.bf16 %v1379_v12, %v1377_v10  ;;  %v1380_v21 = vmax.f32 %v1348_v16, 0.0  ;;  %v1349_v62 = vmul.f32 %v1317_v14, %v1246_v11  ;;  %v841_v16 = vpop.f32.mrf.mxu0  ;;  %v830_v14 = vadd.f32 %v829_v23, %v2504_v41 }
 0x145   : > { %v1248_v20 = vpop.f32.mrf.mxu1  ;;  %v1328_v41 = vsub.f32 %v832_v36, %v2595_v0 }
 0x146   : > { %v2649_v44 = vpack.c.bf16 %v1380_v21, %v1378_v59  ;;  %v1350_v13 = vmul.f32 %v1318_v2, %v1248_v20  ;;  %v1381_v50 = vmax.f32 %v1349_v62, 0.0  ;;  %v845_v57 = vpop.f32.mrf.mxu0  ;;  %v1327_v23 = vsub.f32 %v830_v14, %v2593_v61 }
 0x147   : > { %v1252_v30 = vpop.f32.mrf.mxu1  ;;  %v842_v61 = vadd.f32 %v841_v16, %v2500_v39 }
 0x148   : > { %v1351_v8 = vmul.f32 %v1319_v15, %v1252_v30  ;;  %v1382_v35 = vmax.f32 %v1350_v13, 0.0  ;;  %v836_v30 = vadd.f32 %v835_v26, %v2496_v37  ;;  %v1330_v37 = vsub.f32 %v838_v9, %v2599_v4  ;;  %v2835_v4 = vld [vmem:[#allocation11_spill] sm:$0xff] }
 0x149   : > { %v1254_v31 = vpop.f32.mrf.mxu1 }
 0x14a   : > { %v1383_v34 = vmax.f32 %v1351_v8, 0.0  ;;  %v1352_v53 = vmul.f32 %v1320_v45, %v1254_v31  ;;  %v847_v45 = vpop.f32.mrf.mxu0  ;;  %v840_v31 = vadd.f32 %v839_v47, %v2500_v39  ;;  %v1329_v60 = vsub.f32 %v836_v30, %v2597_v1  ;;  %v2832_v47 = vld [vmem:[#allocation7_spill] sm:$0xff] }
 0x14b   : > { %v1258_v48 = vpop.f32.mrf.mxu1  ;;  %v848_v39 = vadd.f32 %v847_v45, %v2832_v47 }
 0x14c   : > { %v2663_v63 = vpack.c.bf16 %v1383_v34, %v1381_v50  ;;  %v1384_v51 = vmax.f32 %v1352_v53, 0.0  ;;  %v1353_v56 = vmul.f32 %v1321_v28, %v1258_v48  ;;  %v849_v17 = vpop.f32.mrf.mxu0 }
 0x14d   : > { %v1260_v42 = vpop.f32.mrf.mxu1 }
 0x14e   : > { %v2665_v25 = vpack.c.bf16 %v1384_v51, %v1382_v35  ;;  %v1354_v10 = vmul.f32 %v1322_v33, %v1260_v42  ;;  %v1385_v19 = vmax.f32 %v1353_v56, 0.0  ;;  %v1331_v42 = vsub.f32 %v840_v31, %v2831_v27 }
 0x14f   : > { %v1264_v52 = vpop.f32.mrf.mxu1  ;;  %v846_v56 = vadd.f32 %v845_v57, %v2832_v47 }
 0x150   : > { %v1355_v12 = vmul.f32 %v1323_v3, %v1264_v52  ;;  %v1386_v20 = vmax.f32 %v1354_v10, 0.0  ;;  %v2833_v52 = vld [vmem:[#allocation10_spill] sm:$0xff]  ;;  %v851_v10 = vpop.f32.mrf.mxu0 }
 0x151   : > { %v1266_v11 = vpop.f32.mrf.mxu1  ;;  %v1332_v1 = vsub.f32 %v842_v61, %v2833_v52  ;;  %v1513_v61 = vld [vmem:[%s2802_s10 + $0x18] sm:$0xff] }
 0x152   : > { %v1387_v59 = vmax.f32 %v1355_v12, 0.0  ;;  %v1356_v54 = vmul.f32 %v1324_v24, %v1266_v11  ;;  %v2834_v24 = vld [vmem:[#allocation8_spill] sm:$0xff] }
 0x153   : > { %v1270_v21 = vpop.f32.mrf.mxu1  ;;  %v850_v43 = vadd.f32 %v849_v17, %v2834_v24  ;;  %v1618_v17 = vld [vmem:[%s2803_s11 + $0x18] sm:$0xff] }
 0x154   : > { %v2677_v62 = vpack.c.bf16 %v1387_v59, %v1385_v19  ;;  %v1388_v2 = vmax.f32 %v1356_v54, 0.0  ;;  %v1357_v40 = vmul.f32 %v1325_v55, %v1270_v21  ;;  %v1333_v59 = vsub.f32 %v846_v56, %v2835_v4 }
 0x155   : > { %v1272_v15 = vpop.f32.mrf.mxu1  ;;  %v852_v54 = vadd.f32 %v851_v10, %v2834_v24  ;;  %v1433_v24 = vpop.permute.xlu1 %1432 }
 0x156   : > { %v2679_v22 = vpack.c.bf16 %v1388_v2, %v1386_v20  ;;  %v1358_v8 = vmul.f32 %v1326_v5, %v1272_v15  ;;  %v1389_v46 = vmax.f32 %v1357_v40, 0.0  ;;  %v2836_v15 = vld [vmem:[#allocation12_spill] sm:$0xff]  ;;  %v2837_v5 = vld [vmem:[#allocation13_spill] sm:$0xff] }
 0x157   : > { %v1276_v13 = vpop.f32.mrf.mxu1  ;;  %v1334_v40 = vsub.f32 %v848_v39, %v2836_v15  ;;  %v1428_v39 = vpop.permute.xlu0 %1427 }
 0x158   : > { %v1359_v58 = vmul.f32 %v1327_v23, %v1276_v13  ;;  %v1390_v26 = vmax.f32 %v1358_v8, 0.0  ;;  %v1335_v23 = vsub.f32 %v850_v43, %v2837_v5 }
 0x159   : > { %v1278_v6 = vpop.f32.mrf.mxu1 }
 0x15a   : > { %v1391_v50 = vmax.f32 %v1359_v58, 0.0  ;;  %v1360_v34 = vmul.f32 %v1328_v41, %v1278_v6  ;;  %v2838_v58 = vld [vmem:[#allocation14_spill] sm:$0xff] }
 0x15b   : > { %v1282_v53 = vpop.f32.mrf.mxu1  ;;  %v1336_v41 = vsub.f32 %v852_v54, %v2838_v58 }
 0x15c   : > { %v1415_v48 = vpack.c.bf16 %v1391_v50, %v1389_v46  ;;  %v1392_v28 = vmax.f32 %v1360_v34, 0.0  ;;  %v1361_v51 = vmul.f32 %v1329_v60, %v1282_v53 }
 0x15d   : > { %v1284_v35 = vpop.f32.mrf.mxu1 }
 0x15e   : > { %v1416_v0 = vpack.c.bf16 %v1392_v28, %v1390_v26  ;;  %v1362_v3 = vmul.f32 %v1330_v37, %v1284_v35  ;;  %v1393_v16 = vmax.f32 %v1361_v51, 0.0  ;;  %v1615_v26 = vld [vmem:[%s2803_s11] sm:$0xff]  ;;  %v1617_v28 = vld [vmem:[%s2803_s11 + $0x10] sm:$0xff] }
 0x15f   : > { %v1288_v33 = vpop.f32.mrf.mxu1 }
 0x160   : > { %v1363_v49 = vmul.f32 %v1331_v42, %v1288_v33  ;;  %v1394_v21 = vmax.f32 %v1362_v3, 0.0 }
 0x161   : > { %v1290_v12 = vpop.f32.mrf.mxu1 }
 0x162   : > { %v1395_v11 = vmax.f32 %v1363_v49, 0.0  ;;  %v1364_v14 = vmul.f32 %v1332_v1, %v1290_v12 }
 0x163   : > { %v1294_v19 = vpop.f32.mrf.mxu1 }
 0x164   : > { %v1417_v55 = vpack.c.bf16 %v1395_v11, %v1393_v16  ;;  %v1396_v36 = vmax.f32 %v1364_v14, 0.0  ;;  %v1365_v57 = vmul.f32 %v1333_v59, %v1294_v19  ;;  %v1438_v16 = vpop.permute.xlu0 %1437 }
 0x165   : > { %v1296_v20 = vpop.f32.mrf.mxu1 }
 0x166   : > { %v1418_v2 = vpack.c.bf16 %v1396_v36, %v1394_v21  ;;  %v1366_v13 = vmul.f32 %v1334_v40, %v1296_v20  ;;  %v1397_v45 = vmax.f32 %v1365_v57, 0.0  ;;  %v1443_v36 = vpop.permute.xlu1 %1442 }
 0x167   : > { %v1300_v30 = vpop.f32.mrf.mxu1 }
 0x168   : > { %v1367_v8 = vmul.f32 %v1335_v23, %v1300_v30  ;;  %v1398_v46 = vmax.f32 %v1366_v13, 0.0  ;;  %v1751_v23 = vpop.permute.xlu0 %1750 }
 0x169   : > { %v1302_v9 = vpop.f32.mrf.mxu1 }
 0x16a   : > { %v1399_v6 = vmax.f32 %v1367_v8, 0.0  ;;  %v1368_v31 = vmul.f32 %v1336_v41, %v1302_v9 }
 0x16c   : > { %v1419_v50 = vpack.c.bf16 %v1399_v6, %v1397_v45  ;;  %v1400_v34 = vmax.f32 %v1368_v31, 0.0 }
 0x16e   : > { %v1420_v53 = vpack.c.bf16 %v1400_v34, %v1398_v46 }
 0x170   : > { %1457 = vmatprep.subr.bf16.mxu0 %v1420_v53  ;;  %v1756_v53 = vpop.permute.xlu1 %1755 }
 0x171   : > { %1458 = vmatpush1.bf16.msra.mxu0 %v1419_v50 }
 0x172   : > { %1459 = vmatprep.subr.bf16.mxu0 %v1418_v2 }
 0x175   : > { %1460 = vmatpush1.bf16.msra.mxu0 %v1417_v55 }
 0x176   : > { %1461 = vmatprep.subr.bf16.mxu0 %v1416_v0 }
 0x179   : > { %1462 = vmatpush1.bf16.msra.mxu0 %v1415_v48  ;;  %v1616_v48 = vld [vmem:[%s2803_s11 + $0x8] sm:$0xff] }
 0x17a   : > { %1463 = vmatprep.subr.bf16.mxu0 %v2679_v22  ;;  %v2037_v22 = vld [vmem:[%s2796_s4] sm:$0xff]  }
 0x17d   : > { %1464 = vmatpush1.bf16.msra.mxu0 %v2677_v62  ;;  %v2839_v62 = vmov 1.0  }
 0x17e   : > { %1465 = vmatprep.subr.bf16.mxu0 %v2665_v25  ;;  %v2840_v25 = vld [vmem:[#allocation4_spill] sm:$0xff] }
 0x181   : > { %1466 = vmatpush1.bf16.msra.mxu0 %v2663_v63  ;;  %v1512_v63 = vld [vmem:[%s2802_s10 + $0x10] sm:$0xff] }
 0x182   : > { %1467 = vmatprep.subr.bf16.mxu0 %v2649_v44  ;;  %v2842_v44 = vmov 0  }
 0x185   : > { %1468 = vmatpush1.bf16.msra.mxu0 %v2647_v7  ;;  %v1511_v7 = vld [vmem:[%s2802_s10 + $0x8] sm:$0xff] }
 0x186   : > { %1469 = vmatprep.subr.bf16.mxu0 %v2636_v32 }
 0x189   : > { %1470 = vmatpush1.bf16.msra.mxu0 %v2634_v18  ;;  %v1510_v18 = vld [vmem:[%s2802_s10] sm:$0xff] }
 0x18a   : > { %1471 = vmatprep.subr.bf16.mxu0 %v2627_v29  ;;  %v2844_v29 = vmov 0.0  }
 0x18d   : > { %1472 = vmatpush1.bf16.msra.mxu0 %v2623_v38  ;;  %v2038_v38 = vld [vmem:[%s2796_s4 + $0x8] sm:$0xff]  }
 0x18e   : > { %1972 = vmatprep.subr.msk.mxu0 %vm511_vm0, %v2839_v62 }
 0x190   : > { %1490 = vmatmul.mubr.bf16.vlgmr.msra.gmra.mxu0 %v2037_v22 }
 0x191   : > { %1499 = vmatprep.mubr.bf16.mxu0 %v2842_v44  ;;  %1973 = vmatpush1.msk.msra.mxu0 %vm510_vm1, %v2839_v62 }
 0x192   : > { %1978 = vmatprep.subr.msk.mxu0 %vm511_vm0, %v2839_v62 }
 0x198   : > { %1500 = vmatmul.mubr.bf16.gmra.mxu0 %v2038_v38 }
 0x199   : > { %1590 = vmatprep.mubr.f32.mxu0 %v2844_v29 }
 0x1a0   : > { %1974 = vmatmul.mubr.msk.f32.vlgmr.msra.gmra.mxu0 %vm870_vm2, %v1510_v18  ;;  %v1761_v18 = vpop.permute.xlu0 %1760 }
 0x1a1   : > { %1596 = vmatprep.mubr.f32.mxu0 %v2844_v29  ;;  %1979 = vmatpush1.msk.msra.mxu0 %vm510_vm1, %v2839_v62 }
 0x1a4   : > { %1975 = vmatmul.mubr.msk.f32.gmra.mxu0 %vm870_vm2, %v1511_v7 }
 0x1a5   : > { %1602 = vmatprep.mubr.f32.mxu0 %v2844_v29 }
 0x1a8   : > { %1976 = vmatmul.mubr.msk.f32.gmra.mxu0 %vm870_vm2, %v1512_v63 }
 0x1a9   : > { %1608 = vmatprep.mubr.f32.mxu0 %v2844_v29 }
 0x1ac   : > { %1977 = vmatmul.mubr.msk.f32.gmra.mxu0 %vm870_vm2, %v1513_v61 }
 0x1ad   : > { %1695 = vmatprep.mubr.f32.mxu0 %v2844_v29 }
 0x1b0   : > { %1980 = vmatmul.mubr.msk.f32.vlgmr.msra.gmra.mxu0 %vm870_vm2, %v1615_v26 }
 0x1b1   : > { %1701 = vmatprep.mubr.f32.mxu0 %v2844_v29 }
 0x1b4   : > { %1981 = vmatmul.mubr.msk.f32.gmra.mxu0 %vm870_vm2, %v1616_v48 }
 0x1b5   : > { %1707 = vmatprep.mubr.f32.mxu0 %v2844_v29 }
 0x1b8   : > { %1982 = vmatmul.mubr.msk.f32.gmra.mxu0 %vm870_vm2, %v1617_v28 }
 0x1b9   : > { %1713 = vmatprep.mubr.f32.mxu0 %v2844_v29 }
 0x1bc   : > { %1983 = vmatmul.mubr.msk.f32.gmra.mxu0 %vm870_vm2, %v1618_v17 }
 0x250   : > { %v1491_v35 = vpop.f32.mrf.mxu0 }
 0x251   : > { %v1492_v11 = vadd.f32 %v1491_v35, %v1428_v39 }
 0x252   : > { %v1493_v0 = vpop.f32.mrf.mxu0 }
 0x253   : > { %v1494_v4 = vadd.f32 %v1493_v0, %v1428_v39 }
 0x254   : > { %v1495_v51 = vpop.f32.mrf.mxu0 }
 0x255   : > { %v1496_v19 = vadd.f32 %v1495_v51, %v1433_v24 }
 0x256   : > { %v1497_v37 = vpop.f32.mrf.mxu0 }
 0x257   : > { %v1498_v21 = vadd.f32 %v1497_v37, %v1433_v24 }
 0x258   : > { %v1501_v27 = vpop.f32.mrf.mxu0 }
 0x259   : > { %v1502_v15 = vadd.f32 %v1501_v27, %v1438_v16 }
 0x25a   : > { %v1503_v42 = vpop.f32.mrf.mxu0 }
 0x25b   : > { %v1504_v8 = vadd.f32 %v1503_v42, %v1438_v16 }
 0x25c   : > { %v1505_v47 = vpop.f32.mrf.mxu0 }
 0x25d   : > { %v1506_v31 = vadd.f32 %v1505_v47, %v1443_v36  ;;  %v1766_v47 = vpop.permute.xlu1 %1765 }
 0x25e   : > { %v1507_v56 = vpop.f32.mrf.mxu0 }
 0x25f   : > { %v1508_v22 = vadd.f32 %v1507_v56, %v1443_v36 }
 0x260   : > { %v1592_v33 = vpop.f32.mrf.mxu0 }
 0x261   : > { %v1720_v59 = vsub.f32 %v1492_v11, %v1592_v33 }
 0x262   : > { %v1594_v3 = vpop.f32.mrf.mxu0 }
 0x263   : > { %v1721_v20 = vsub.f32 %v1494_v4, %v1594_v3  ;;  %v2066_v4 = vmov 1966171168  }
 0x264   : > { %v1598_v49 = vpop.f32.mrf.mxu0 }
 0x265   : > { %v1722_v55 = vsub.f32 %v1496_v19, %v1598_v49 }
 0x266   : > { %v1600_v52 = vpop.f32.mrf.mxu0 }
 0x267   : > { %v1723_v40 = vsub.f32 %v1498_v21, %v1600_v52 }
 0x268   : > { %v1604_v1 = vpop.f32.mrf.mxu0 }
 0x269   : > { %v1724_v58 = vsub.f32 %v1502_v15, %v1604_v1 }
 0x26a   : > { %v1606_v10 = vpop.f32.mrf.mxu0 }
 0x26b   : > { %v1725_v46 = vsub.f32 %v1504_v8, %v1606_v10 }
 0x26c   : > { %v1610_v12 = vpop.f32.mrf.mxu0 }
 0x26d   : > { %v1726_v44 = vsub.f32 %v1506_v31, %v1610_v12 }
 0x26e   : > { %v1612_v43 = vpop.f32.mrf.mxu0 }
 0x26f   : > { %v1727_v7 = vsub.f32 %v1508_v22, %v1612_v43 }
 0x270   : > { %v1697_v14 = vpop.f32.mrf.mxu0 }
 0x271   : > { %v1728_v2 = vmul.f32 %v1720_v59, %v1697_v14  ;;  %v1810_v59 = vunpack.c.l.s4 %v2066_v4 }
 0x272   : > { %v1699_v54 = vpop.f32.mrf.mxu0 }
 0x273   : > { %v1729_v30 = vmul.f32 %v1721_v20, %v1699_v54  ;;  %v1736_v45 = vmax.f32 %v1728_v2, 0.0  ;;  %v1811_v2 = vunpack.c.0.s8 %v1810_v59 }
 0x274   : > { %v1703_v57 = vpop.f32.mrf.mxu0 }
 0x275   : > { %v1730_v5 = vmul.f32 %v1722_v55, %v1703_v57  ;;  %v1737_v62 = vmax.f32 %v1729_v30, 0.0  ;;  %v1768_v63 = vmul.f32 %v1751_v23, %v1736_v45  ;;  %v1798_v55 = vpop.permute.xlu0 %1797  ;;  %v2845_v57 = vsub.s32 0, %v2840_v25 }
 0x276   : > { %v1705_v13 = vpop.f32.mrf.mxu0  ;;  %v1814_v30 = vsub.s32 %v1811_v2, %v2840_v25 }
 0x277   : > { %v1738_v41 = vmax.f32 %v1730_v5, 0.0  ;;  %v1731_v9 = vmul.f32 %v1723_v40, %v1705_v13  ;;  %v1769_v35 = vmul.f32 %v1751_v23, %v1737_v62  ;;  %v1803_v15 = vrot.slane %v1798_v55, %v2845_v57 }
 0x278   : > { %v1709_v6 = vpop.f32.mrf.mxu0 }
 0x279   : > { %v1739_v50 = vmax.f32 %v1731_v9, 0.0  ;;  %v1732_v34 = vmul.f32 %v1724_v58, %v1709_v6  ;;  %v1770_v32 = vmul.f32 %v1756_v53, %v1738_v41  ;;  %v2846_v58 = vlaneseq }
 0x27a   : > { %v1711_v60 = vpop.f32.mrf.mxu0 }
 0x27b   : > { %v1740_v38 = vmax.f32 %v1732_v34, 0.0  ;;  %v1733_v29 = vmul.f32 %v1725_v46, %v1711_v60  ;;  %v1771_v26 = vmul.f32 %v1756_v53, %v1739_v50  ;;  %v1776_v51 = vadd.f32 %v1770_v32, %v1768_v63 }
 0x27c   : > { %v1715_v61 = vpop.f32.mrf.mxu0  ;;  %vm1826_vm4 = vcmp.lt.s32.totalorder %v2846_v58, 256 }
 0x27d   : > { %v1772_v48 = vmul.f32 %v1761_v18, %v1740_v38  ;;  %v1741_v28 = vmax.f32 %v1733_v29, 0.0  ;;  %v1734_v17 = vmul.f32 %v1726_v44, %v1715_v61  ;;  %v1785_v56 = vadd.f32 %v1771_v26, %v1769_v35 }
 0x27e   : > { %v1717_v0 = vpop.f32.mrf.mxu0 }
 0x27f   : > { %v1773_v37 = vmul.f32 %v1761_v18, %v1741_v28  ;;  %v1742_v27 = vmax.f32 %v1734_v17, 0.0  ;;  %v1735_v42 = vmul.f32 %v1727_v7, %v1717_v0  ;;  %v1777_v33 = vadd.f32 %v1776_v51, %v1772_v48 }
 0x281   : > { %v1774_v3 = vmul.f32 %v1766_v47, %v1742_v27  ;;  %v1743_v49 = vmax.f32 %v1735_v42, 0.0  ;;  %v1786_v52 = vadd.f32 %v1785_v56, %v1773_v37 }
 0x283   : > { %v1778_v1 = vadd.f32 %v1777_v33, %v1774_v3  ;;  %v1775_v39 = vmul.f32 %v1766_v47, %v1743_v49 }
 0x285   : > { %v1779_v10 = vrot.slane %v1778_v1, 4  ;;  %v1787_v12 = vadd.f32 %v1786_v52, %v1775_v39 }
 0x287   : > { %v1780_v24 = vadd.f32 %v1779_v10, %v1778_v1  ;;  %v1788_v43 = vrot.slane %v1787_v12, 4 }
 0x289   : > { %v1781_v16 = vrot.slane %v1780_v24, 2  ;;  %v1789_v11 = vadd.f32 %v1788_v43, %v1787_v12 }
 0x28b   : > { %v1782_v14 = vadd.f32 %v1781_v16, %v1780_v24  ;;  %v1790_v19 = vrot.slane %v1789_v11, 2 }
 0x28d   : > { %v1783_v54 = vrot.slane %v1782_v14, 1  ;;  %v1791_v21 = vadd.f32 %v1790_v19, %v1789_v11 }
 0x28f   : > { %v1784_v36 = vadd.f32 %v1783_v54, %v1782_v14  ;;  %v1792_v20 = vrot.slane %v1791_v21, 1 }
 0x291   : > { %v1793_v40 = vadd.f32 %v1792_v20, %v1791_v21  ;;  %v1804_v5 = vadd.f32 %v1803_v15, %v1784_v36 }
 0x293   : > { %v1805_v23 = vadd.f32 %v1803_v15, %v1793_v40 }
 0x295   : > { %v1808_v13 = vcombine.low %v1804_v5, %v1805_v23 }
 0x297   : > { %v1815_v8 = vrot.slane %v1808_v13, %v1814_v30 }
 0x299   : > { %v1822_v41 = vrot.slane %v1815_v8, %v1814_v30 }
 0x29b   : > { %1828 = vst.msk [vmem:[%s497_s30] sm:$0x3] %vm1826_vm4, %v1822_v41 }
 0x29c PF: > { %p21_p10 = scmp.ge.s32.totalorder %s2154_s26, 4   ;;  %s2847_s23 = smov %s2057_s24 }
 0x29d   : > { %s2848_s24 = smov %s2163_s29  ;;  %s2849_s25 = smov %s2154_s26 }
 0x29e   :  { %23 = sbr.rel (!%p21_p10) target bundleno = 5 (0x5), region = 144 }

// kernel: extractor_mlp_forward.2
= control target key start
LH: loop header
LB: loop body
LE: loop exit
PB: predicated region body
PF: predicated region fallthrough
CT: control target
= control target key end

     0   :  { %s2828_s30 = smov 0   ;;  %s2830_s10 = smov 0   ;;  %s3814_s0 = inlined_call_operand.vmem [shape: s32[1,512], index: 0, kind: input, shape index: {}]   ;;  %s3815_s1 = inlined_call_operand.vmem [shape: bf16[64,512], index: 1, kind: input, shape index: {}]   ;;  %s3816_s2 = inlined_call_operand.vmem [shape: bf16[128,64], index: 2, kind: input, shape index: {}]   ;;  %s3817_s3 = inlined_call_operand.vmem [shape: f32[128,1], index: 3, kind: input, shape index: {}]   ;;  %s3818_s4 = inlined_call_operand.vmem [shape: bf16[32,128], index: 4, kind: input, shape index: {}]   ;;  %s3819_s5 = inlined_call_operand.vmem [shape: f32[32,1], index: 5, kind: input, shape index: {}]   ;;  %s3820_s6 = inlined_call_operand.vmem [shape: f32[128,8], index: 6, kind: output, shape index: {0}]   ;;  %s3821_s7 = inlined_call_operand.vmem [shape: f32[128,8], index: 7, kind: output, shape index: {1}]   ;;  %s3822_s8 = inlined_call_operand.vmem [shape: f32[32,8], index: 8, kind: output, shape index: {2}]   ;;  %s3823_s9 = inlined_call_operand.vmem [shape: f32[32,8], index: 9, kind: output, shape index: {3}]  }
   0x1   :  { %s2832_s11 = smov 0   ;;  %s2834_s12 = smov 0  }
   0x2   :  { %s2836_s13 = smov 0   ;;  %s2838_s14 = smov 0  }
   0x3   :  { %s2840_s15 = smov 0  }
   0x4 LB: > { %s29_s16 = sadd.s32 1, %s2761_s13  ;;  %s32_s17 = sadd.s32 1, %s2765_s14  ;;  %s2769_s15 = sphi %s2840_s15, %s20_s15   ;;  %s2765_s14 = sphi %s2838_s14, %s3891_s14   ;;  %s2761_s13 = sphi %s2836_s13, %s3890_s13   ;;  %s2757_s12 = sphi %s2834_s12, %s3889_s12   ;;  %s2753_s11 = sphi %s2832_s11, %s3888_s11   ;;  %s2749_s10 = sphi %s2830_s10, %s3887_s10   ;;  %s2745_s30 = sphi %s2828_s30, %s3886_s30  }
   0x5   : > { %p30_p0 = scmp.ge.s32.totalorder %s29_s16, 2  ;;  %s65_s18 = sadd.s32 1, %s2749_s10 }
   0x6   : > { %p72_p1 = scmp.ne.s32.totalorder %s2749_s10, %s2745_s30  ;;  %p73_p2 = scmp.eq.s32.totalorder %s2769_s15, 0 }
   0x7   : > { %s3893_s16 = smov (%p30_p0, %s29_s16), 0  ;;  %s3895_s17 = smov (!%p30_p0, %s32_s17), %s2765_s14 }
   0x8   : > { %s62_s19 = ssub.s32 %s2761_s13, %s3893_s16  ;;  %p74_p3 = por %p73_p2, %p72_p1 }
   0x9   : > { %p34_p4 = scmp.ge.s32.totalorder %s3895_s17, 2  ;;  %p63_p5 = scmp.eq.s32.totalorder %s62_s19, 0 }
   0xa   : > { %p2483_p6 = scmp.ge.s32.totalorder %s2769_s15, 4 }
   0xb   : > { %s3897_s17 = smov (%p34_p4, %s3895_s17), 0 }
   0xc   : > { %s2877_s20 = scalar_select %p63_p5, %s2749_s10, %s65_s18  }
   0xd   : > { %278 = sbr.rel (%p2483_p6) target bundleno = 26 (0x1a), region = 32 }
  0x12   : > { %289 = sbr.rel (!%p74_p3) target bundleno = 26 (0x1a), region = 40  ;;  %s291_s21 = sand.u32 (%p74_p3), 1, %s2749_s10  }
  0x13   : > { %s2571_s22 = sshll.u32 (%p74_p3), %s2761_s13, 3  ;;  %s2484_s23 = sshll.u32 (%p74_p3), %s291_s21, 6 }
  0x14   : > { %s296_s26 = scalar_lea.vmem (%p74_p3), %s3815_s1, %s2571_s22  ;;  %s293_s27 = scalar_lea.vmem (%p74_p3), [#allocation7], %s2484_s23 }
  0x15   : > { %v339_v0 = vld [vmem:[%s296_s26] sm:$0xff] (%p74_p3)  ;;  %v341_v1 = vld [vmem:[%s296_s26 + $0x10] sm:$0xff] (%p74_p3) }
  0x16   : > { %v343_v2 = vld [vmem:[%s296_s26 + $0x20] sm:$0xff] (%p74_p3)  ;;  %340 = vst [vmem:[%s293_s27] sm:$0xff] (%p74_p3), %v339_v0  ;;  %342 = vst [vmem:[%s293_s27 + $0x8] sm:$0xff] (%p74_p3), %v341_v1  ;;  %v345_v3 = vld [vmem:[%s296_s26 + $0x30] sm:$0xff] (%p74_p3) }
  0x17   : > { %344 = vst [vmem:[%s293_s27 + $0x10] sm:$0xff] %v343_v2  ;;  %v347_v4 = vld [vmem:[%s296_s26 + $0x40] sm:$0xff]  ;;  %v349_v5 = vld [vmem:[%s296_s26 + $0x50] sm:$0xff]  ;;  %346 = vst [vmem:[%s293_s27 + $0x18] sm:$0xff] %v345_v3 }
  0x18   : > { %348 = vst [vmem:[%s293_s27 + $0x20] sm:$0xff] %v347_v4  ;;  %350 = vst [vmem:[%s293_s27 + $0x28] sm:$0xff] %v349_v5  ;;  %v351_v6 = vld [vmem:[%s296_s26 + $0x60] sm:$0xff]  ;;  %v353_v7 = vld [vmem:[%s296_s26 + $0x70] sm:$0xff] }
  0x19   : > { %352 = vst [vmem:[%s293_s27 + $0x30] sm:$0xff] %v351_v6  ;;  %354 = vst [vmem:[%s293_s27 + $0x38] sm:$0xff] %v353_v7 }
  0x1a PF: > { %p2487_p7 = scmp.ge.s32.totalorder %s2769_s15, 1  ;;  %p359_p8 = scmp.lt.s32.totalorder %s2769_s15, 5 }
  0x1c   : > { %p360_p9 = pnand %p2487_p7, %p359_p8 }
  0x1e   : > { %363 = sbr.rel (%p360_p9) target bundleno = 1407 (0x57f), region = 78 }
  0x23   : > { %s366_s28 = sand.u32 1, %s2745_s30   ;;  %s2489_s29 = sshll.u32 %s2753_s11, 1  ;;  %v407_v8 = vlaneseq  ;;  %v2771_v9 = vmov 0   ;;  %v3835_v21 = vmov 0  ;;  %v3838_v22 = vmov 0  ;;  %v450_v26 = vld [vmem:[%s3817_s3 + $0x10] sm:$0xff] }
  0x24   : > { %s2488_s18 = sshll.u32 %s366_s28, 6  ;;  %p401_p10 = scmp.lt.s32.totalorder %s2489_s29, 3  ;;  %681 = vmatprep.mubr.bf16.mxu0 %v2771_v9  ;;  %721 = vmatprep.mubr.bf16.mxu1 %v2771_v9  ;;  %v448_v27 = vld [vmem:[%s3817_s3] sm:$0xff]  ;;  %v451_v30 = vld [vmem:[%s3817_s3 + $0x18] sm:$0xff]  ;;  %v449_v31 = vld [vmem:[%s3817_s3 + $0x8] sm:$0xff]  ;;  %vm624_vm2 = vcmask 523264  }
  0x25   : > { %v408_v10 = vshrl.u32 %v407_v8, 7  ;;  %2646 = vset.pattern.permute.xlu1 %v2771_v9  ;;  %2645 = vset.pattern.permute.xlu0 %v2771_v9  ;;  %s368_s19 = scalar_lea.vmem [#allocation7], %s2488_s18  ;;  %v2659_v28 = vld [vmem:[%s3816_s2] sm:$0xff]   ;;  %v453_v32 = vld [vmem:[%s3817_s3 + $0x28] sm:$0xff]  ;;  %v455_v36 = vld [vmem:[%s3817_s3 + $0x38] sm:$0xff]  ;;  %p2516_p11 = scmp.ne.s32.totalorder %s2757_s12, 0 }
  0x26   : > { %s3899_s29 = smov (!%p401_p10, %s2489_s29), 3  ;;  %v2647_v11 = vld [vmem:[%s368_s19 + $0x34] ss:$8 sps:$4 sm:$0xff]   ;;  %v2649_v14 = vld [vmem:[%s368_s19 + $0x30] ss:$8 sps:$4 sm:$0xff]   ;;  %476 = vperm.xlu1 %2646, %v450_v26   ;;  %466 = vperm.xlu0 %2645, %v448_v27   ;;  %v2661_v34 = vld [vmem:[%s3816_s2 + $0x8] sm:$0xff]  }
  0x27   : > { %v2893_v12 = vsub.s32 0, %v408_v10  ;;  %v416_v13 = vsub.s32 1, %v408_v10  ;;  %s403_s22 = scalar_lea.vmem %s3814_s0, %s3899_s29  ;;  %657 = vmatprep.subr.bf16.mxu0 %v2647_v11  ;;  %2572 = vmatprep.subr.bf16.mxu1 %v2647_v11  ;;  %v2650_v15 = vld [vmem:[%s368_s19 + $0x24] ss:$8 sps:$4 sm:$0xff]   ;;  %v2652_v17 = vld [vmem:[%s368_s19 + $0x20] ss:$8 sps:$4 sm:$0xff]  }
  0x28   : > { %v409_v16 = vld [vmem:[%s403_s22] sm:$0x3]  ;;  %658 = vmatpush1.bf16.msra.mxu0 %v2649_v14  ;;  %2576 = vmatpush1.bf16.msra.mxu1 %v2649_v14  ;;  %v2653_v20 = vld [vmem:[%s368_s19 + $0x14] ss:$8 sps:$4 sm:$0xff]   ;;  %v2656_v24 = vld [vmem:[%s368_s19 + $0x4] ss:$8 sps:$4 sm:$0xff]  }
  0x29   : > { %3834 = vst [vmem:[#allocation8_spill] sm:$0xff] %v2893_v12  ;;  %v413_v18 = vrot.slane %v409_v16, %v2893_v12  ;;  %v417_v19 = vrot.slane %v409_v16, %v416_v13  ;;  %659 = vmatprep.subr.bf16.mxu0 %v2650_v15  ;;  %2573 = vmatprep.subr.bf16.mxu1 %v2650_v15  ;;  %v2655_v23 = vld [vmem:[%s368_s19 + $0x10] ss:$8 sps:$4 sm:$0xff]   ;;  %v2658_v25 = vld [vmem:[%s368_s19] ss:$8 sps:$4 sm:$0xff]   ;;  %p2517_p12 = scmp.ne.s32.totalorder (!%p2516_p11), %s2753_s11, 0 }
  0x2a   : > { %v2660_v29 = vld [vmem:[%s3816_s2 + $0x20] sm:$0xff]   ;;  %481 = vperm.xlu1 %2646, %v451_v30   ;;  %471 = vperm.xlu0 %2645, %v449_v31   ;;  %v2662_v35 = vld [vmem:[%s3816_s2 + $0x28] sm:$0xff]   ;;  %v454_v37 = vld [vmem:[%s3817_s3 + $0x30] sm:$0xff] }
  0x2b   : > { %vm2899_vm0 = vcmp.eq.s32.totalorder %v408_v10, %v413_v18  ;;  %vm2903_vm1 = vcmp.eq.s32.totalorder %v408_v10, %v417_v19  ;;  %v452_v33 = vld [vmem:[%s3817_s3 + $0x20] sm:$0xff]  ;;  %v457_v38 = vld [vmem:[%s3817_s3 + $0x48] sm:$0xff]  ;;  %v2663_v40 = vld [vmem:[%s3816_s2 + $0x10] sm:$0xff]  }
  0x2c   : > { %v3836_v21 = vsel %vm2899_vm0, 4294967295, %v3835_v21  ;;  %v3839_v22 = vsel %vm2903_vm1, 4294967295, %v3838_v22  ;;  %660 = vmatpush1.bf16.msra.mxu0 %v2652_v17  ;;  %2577 = vmatpush1.bf16.msra.mxu1 %v2652_v17  ;;  %v456_v39 = vld [vmem:[%s3817_s3 + $0x40] sm:$0xff]  ;;  %v2664_v41 = vld [vmem:[%s3816_s2 + $0x30] sm:$0xff]   ;;  %v459_v42 = vld [vmem:[%s3817_s3 + $0x58] sm:$0xff] }
  0x2d   : > { %3837 = vst [vmem:[#allocation9_spill] sm:$0xff] %v3836_v21  ;;  %3840 = vst [vmem:[#allocation10_spill] sm:$0xff] %v3839_v22  ;;  %661 = vmatprep.subr.bf16.mxu0 %v2653_v20  ;;  %2574 = vmatprep.subr.bf16.mxu1 %v2653_v20  ;;  %v458_v43 = vld [vmem:[%s3817_s3 + $0x50] sm:$0xff]  ;;  %v461_v44 = vld [vmem:[%s3817_s3 + $0x68] sm:$0xff] }
  0x2e   : > { %491 = vperm.xlu1 %2646, %v453_v32   ;;  %486 = vperm.xlu0 %2645, %v452_v33   ;;  %v460_v45 = vld [vmem:[%s3817_s3 + $0x60] sm:$0xff]  ;;  %v2665_v46 = vld [vmem:[%s3816_s2 + $0x18] sm:$0xff]   ;;  %v462_v49 = vld [vmem:[%s3817_s3 + $0x70] sm:$0xff] }
  0x2f   : > { %v2666_v47 = vld [vmem:[%s3816_s2 + $0x38] sm:$0xff]  }
  0x30   : > { %662 = vmatpush1.bf16.msra.mxu0 %v2655_v23  ;;  %2578 = vmatpush1.bf16.msra.mxu1 %v2655_v23  ;;  %v463_v48 = vld [vmem:[%s3817_s3 + $0x78] sm:$0xff] }
  0x31   : > { %663 = vmatprep.subr.bf16.mxu0 %v2656_v24  ;;  %2575 = vmatprep.subr.bf16.mxu1 %v2656_v24 }
  0x32   : > { %501 = vperm.xlu1 %2646, %v455_v36   ;;  %496 = vperm.xlu0 %2645, %v454_v37  }
  0x34   : > { %664 = vmatpush1.bf16.msra.mxu0 %v2658_v25  ;;  %2579 = vmatpush1.bf16.msra.mxu1 %v2658_v25 }
  0x36   : > { %511 = vperm.xlu1 %2646, %v457_v38   ;;  %506 = vperm.xlu0 %2645, %v456_v39  }
  0x37   : > { %2508 = vmatmul.mubr.msk.bf16.vlgmr.msra.gmra.mxu0 %vm624_vm2, %v2659_v28  ;;  %2512 = vmatmul.mubr.msk.bf16.vlgmr.msra.gmra.mxu1 %vm624_vm2, %v2660_v29 }
  0x38   : > { %691 = vmatprep.mubr.bf16.mxu0 %v2771_v9  ;;  %731 = vmatprep.mubr.bf16.mxu1 %v2771_v9 }
  0x3a   : > { %521 = vperm.xlu1 %2646, %v459_v42   ;;  %516 = vperm.xlu0 %2645, %v458_v43  }
  0x3e   : > { %531 = vperm.xlu1 %2646, %v461_v44   ;;  %526 = vperm.xlu0 %2645, %v460_v45  }
  0x3f   : > { %2509 = vmatmul.mubr.msk.bf16.gmra.mxu0 %vm624_vm2, %v2661_v34  ;;  %2513 = vmatmul.mubr.msk.bf16.gmra.mxu1 %vm624_vm2, %v2662_v35 }
  0x40   : > { %701 = vmatprep.mubr.bf16.mxu0 %v2771_v9  ;;  %741 = vmatprep.mubr.bf16.mxu1 %v2771_v9 }
  0x42   : > { %541 = vperm.xlu1 %2646, %v463_v48   ;;  %536 = vperm.xlu0 %2645, %v462_v49  }
  0x47   : > { %2510 = vmatmul.mubr.msk.bf16.gmra.mxu0 %vm624_vm2, %v2663_v40  ;;  %2514 = vmatmul.mubr.msk.bf16.gmra.mxu1 %vm624_vm2, %v2664_v41 }
  0x48   : > { %711 = vmatprep.mubr.bf16.mxu0 %v2771_v9  ;;  %751 = vmatprep.mubr.bf16.mxu1 %v2771_v9 }
  0x4f   : > { %2511 = vmatmul.mubr.msk.bf16.gmra.mxu0 %vm624_vm2, %v2665_v46  ;;  %2515 = vmatmul.mubr.msk.bf16.gmra.mxu1 %vm624_vm2, %v2666_v47 }
  0xa1   : > { %v467_v50 = vpop.permute.xlu0 %466  ;;  %v477_v51 = vpop.permute.xlu1 %476 }
  0xa5   : > { %v472_v52 = vpop.permute.xlu0 %471  ;;  %v482_v53 = vpop.permute.xlu1 %481 }
  0xa9   : > { %v487_v54 = vpop.permute.xlu0 %486  ;;  %v492_v55 = vpop.permute.xlu1 %491 }
  0xad   : > { %v2993_v56 = vpop.permute.xlu0 %496  ;;  %v2995_v57 = vpop.permute.xlu1 %501 }
  0xb1   : > { %v507_v58 = vpop.permute.xlu0 %506  ;;  %v512_v1 = vpop.permute.xlu1 %511 }
  0xb5   : > { %v517_v10 = vpop.permute.xlu0 %516  ;;  %v522_v20 = vpop.permute.xlu1 %521 }
  0xb9   : > { %v527_v31 = vpop.permute.xlu0 %526  ;;  %v532_v40 = vpop.permute.xlu1 %531 }
  0xbd   : > { %v537_v49 = vpop.permute.xlu0 %536 }
  0xf7   : > { %v683_v59 = vpop.f32.mrf.mxu0  ;;  %v723_v60 = vpop.f32.mrf.mxu1 }
  0xf8   : > { %v2997_v61 = vadd.f32 %v683_v59, %v467_v50  ;;  %v2999_v62 = vadd.f32 %v723_v60, %v507_v58 }
  0xf9   : > { %v685_v63 = vpop.f32.mrf.mxu0  ;;  %v725_v0 = vpop.f32.mrf.mxu1 }
  0xfa   : > { %v3001_v2 = vadd.f32 %v685_v63, %v467_v50  ;;  %v3003_v3 = vadd.f32 %v725_v0, %v507_v58  ;;  %v542_v63 = vpop.permute.xlu1 %541 }
  0xfb   : > { %v687_v4 = vpop.f32.mrf.mxu0  ;;  %v727_v5 = vpop.f32.mrf.mxu1 }
  0xfc   : > { %v3005_v6 = vadd.f32 %v687_v4, %v472_v52  ;;  %v3007_v7 = vadd.f32 %v727_v5, %v512_v1 }
  0xfd   : > { %v689_v8 = vpop.f32.mrf.mxu0  ;;  %v729_v9 = vpop.f32.mrf.mxu1 }
  0xfe   : > { %v3009_v11 = vadd.f32 %v689_v8, %v472_v52  ;;  %v3011_v13 = vadd.f32 %v729_v9, %v512_v1 }
  0xff   : > { %v693_v14 = vpop.f32.mrf.mxu0  ;;  %v733_v15 = vpop.f32.mrf.mxu1 }
 0x100   : > { %v3013_v16 = vadd.f32 %v693_v14, %v477_v51  ;;  %v3015_v17 = vadd.f32 %v733_v15, %v517_v10 }
 0x101   : > { %v695_v18 = vpop.f32.mrf.mxu0  ;;  %v735_v19 = vpop.f32.mrf.mxu1 }
 0x102   : > { %v3017_v23 = vadd.f32 %v695_v18, %v477_v51  ;;  %v3019_v24 = vadd.f32 %v735_v19, %v517_v10 }
 0x103   : > { %v697_v25 = vpop.f32.mrf.mxu0  ;;  %v737_v26 = vpop.f32.mrf.mxu1 }
 0x104   : > { %v3021_v27 = vadd.f32 %v697_v25, %v482_v53  ;;  %v3023_v28 = vadd.f32 %v737_v26, %v522_v20 }
 0x105   : > { %v699_v29 = vpop.f32.mrf.mxu0  ;;  %v739_v30 = vpop.f32.mrf.mxu1 }
 0x106   : > { %v3025_v32 = vadd.f32 %v699_v29, %v482_v53  ;;  %v3027_v33 = vadd.f32 %v739_v30, %v522_v20 }
 0x107   : > { %v703_v34 = vpop.f32.mrf.mxu0  ;;  %v743_v35 = vpop.f32.mrf.mxu1 }
 0x108   : > { %v3029_v36 = vadd.f32 %v703_v34, %v487_v54  ;;  %v3031_v37 = vadd.f32 %v743_v35, %v527_v31 }
 0x109   : > { %v705_v38 = vpop.f32.mrf.mxu0  ;;  %v745_v39 = vpop.f32.mrf.mxu1 }
 0x10a   : > { %3841 = vst [vmem:[#allocation11_spill] sm:$0xff] %v3029_v36  ;;  %v3033_v41 = vadd.f32 %v705_v38, %v487_v54  ;;  %v3035_v42 = vadd.f32 %v745_v39, %v527_v31 }
 0x10b   : > { %v707_v43 = vpop.f32.mrf.mxu0  ;;  %v747_v44 = vpop.f32.mrf.mxu1 }
 0x10c   : > { %3842 = vst [vmem:[#allocation12_spill] sm:$0xff] %v3033_v41  ;;  %v3037_v45 = vadd.f32 %v707_v43, %v492_v55  ;;  %v3039_v46 = vadd.f32 %v747_v44, %v532_v40 }
 0x10d   : > { %v709_v47 = vpop.f32.mrf.mxu0  ;;  %v749_v48 = vpop.f32.mrf.mxu1 }
 0x10e   : > { %3843 = vst [vmem:[#allocation13_spill] sm:$0xff] %v3037_v45  ;;  %v3041_v50 = vadd.f32 %v709_v47, %v492_v55  ;;  %v3043_v51 = vadd.f32 %v749_v48, %v532_v40 }
 0x10f   : > { %v713_v52 = vpop.f32.mrf.mxu0  ;;  %v753_v53 = vpop.f32.mrf.mxu1 }
 0x110   : > { %v3046_v54 = vadd.f32 %v713_v52, %v2993_v56  ;;  %v3048_v58 = vadd.f32 %v753_v53, %v537_v49 }
 0x111   : > { %v715_v59 = vpop.f32.mrf.mxu0  ;;  %v755_v60 = vpop.f32.mrf.mxu1 }
 0x112   : > { %3844 = vst [vmem:[#allocation14_spill] sm:$0xff] %v3046_v54  ;;  %v3051_v0 = vadd.f32 %v715_v59, %v2993_v56  ;;  %v3053_v1 = vadd.f32 %v755_v60, %v537_v49  ;;  %765 = sbr.rel (%p2516_p11) target bundleno = 567 (0x237), region = 86 }
 0x113   : > { %v717_v4 = vpop.f32.mrf.mxu0  ;;  %v757_v55 = vpop.f32.mrf.mxu1 }
 0x114   : > { %v3056_v5 = vadd.f32 %v717_v4, %v2995_v57  ;;  %v3058_v8 = vadd.f32 %v757_v55, %v542_v63 }
 0x115   : > { %v719_v9 = vpop.f32.mrf.mxu0  ;;  %v759_v10 = vpop.f32.mrf.mxu1 }
 0x116   : > { %v3061_v14 = vadd.f32 %v719_v9, %v2995_v57  ;;  %v3063_v15 = vadd.f32 %v759_v10, %v542_v63 }
 0x117   : > { %769 = sbr.rel (%p2517_p12) target bundleno = 302 (0x12e), region = 90 }
 0x11c   : > { %vm770_vm3 = vcmask 64512   ;;  %v2772_v56 = vmov 0.0  }
 0x11d   : > { %771 = vst.msk [vmem:[#allocation2] sm:$0xff] %vm770_vm3, %v2772_v56  ;;  %772 = vst.msk [vmem:[#allocation2 + $0x8] sm:$0xff] %vm770_vm3, %v2772_v56 }
 0x11e   : > { %773 = vst.msk [vmem:[#allocation2 + $0x10] sm:$0xff] %vm770_vm3, %v2772_v56  ;;  %774 = vst.msk [vmem:[#allocation2 + $0x18] sm:$0xff] %vm770_vm3, %v2772_v56 }
 0x11f   : > { %775 = vst.msk [vmem:[#allocation2 + $0x20] sm:$0xff] %vm770_vm3, %v2772_v56  ;;  %776 = vst.msk [vmem:[#allocation2 + $0x28] sm:$0xff] %vm770_vm3, %v2772_v56 }
 0x120   : > { %777 = vst.msk [vmem:[#allocation2 + $0x30] sm:$0xff] %vm770_vm3, %v2772_v56  ;;  %778 = vst.msk [vmem:[#allocation2 + $0x38] sm:$0xff] %vm770_vm3, %v2772_v56 }
 0x121   : > { %779 = vst.msk [vmem:[#allocation2 + $0x40] sm:$0xff] %vm770_vm3, %v2772_v56  ;;  %780 = vst.msk [vmem:[#allocation2 + $0x48] sm:$0xff] %vm770_vm3, %v2772_v56 }
 0x122   : > { %781 = vst.msk [vmem:[#allocation2 + $0x50] sm:$0xff] %vm770_vm3, %v2772_v56  ;;  %782 = vst.msk [vmem:[#allocation2 + $0x58] sm:$0xff] %vm770_vm3, %v2772_v56 }
 0x123   : > { %783 = vst.msk [vmem:[#allocation2 + $0x60] sm:$0xff] %vm770_vm3, %v2772_v56  ;;  %784 = vst.msk [vmem:[#allocation2 + $0x68] sm:$0xff] %vm770_vm3, %v2772_v56 }
 0x124   : > { %785 = vst.msk [vmem:[#allocation2 + $0x70] sm:$0xff] %vm770_vm3, %v2772_v56  ;;  %786 = vst.msk [vmem:[#allocation2 + $0x78] sm:$0xff] %vm770_vm3, %v2772_v56 }
 0x125   : > { %787 = vst.msk [vmem:[#allocation3] sm:$0xff] %vm770_vm3, %v2772_v56  ;;  %788 = vst.msk [vmem:[#allocation3 + $0x8] sm:$0xff] %vm770_vm3, %v2772_v56 }
 0x126   : > { %789 = vst.msk [vmem:[#allocation3 + $0x10] sm:$0xff] %vm770_vm3, %v2772_v56  ;;  %790 = vst.msk [vmem:[#allocation3 + $0x18] sm:$0xff] %vm770_vm3, %v2772_v56 }
 0x127   : > { %791 = vst.msk [vmem:[#allocation3 + $0x20] sm:$0xff] %vm770_vm3, %v2772_v56  ;;  %792 = vst.msk [vmem:[#allocation3 + $0x28] sm:$0xff] %vm770_vm3, %v2772_v56 }
 0x128   : > { %793 = vst.msk [vmem:[#allocation3 + $0x30] sm:$0xff] %vm770_vm3, %v2772_v56  ;;  %794 = vst.msk [vmem:[#allocation3 + $0x38] sm:$0xff] %vm770_vm3, %v2772_v56 }
 0x129   : > { %795 = vst.msk [vmem:[#allocation3 + $0x40] sm:$0xff] %vm770_vm3, %v2772_v56  ;;  %796 = vst.msk [vmem:[#allocation3 + $0x48] sm:$0xff] %vm770_vm3, %v2772_v56 }
 0x12a   : > { %797 = vst.msk [vmem:[#allocation3 + $0x50] sm:$0xff] %vm770_vm3, %v2772_v56  ;;  %798 = vst.msk [vmem:[#allocation3 + $0x58] sm:$0xff] %vm770_vm3, %v2772_v56 }
 0x12b   : > { %799 = vst.msk [vmem:[#allocation3 + $0x60] sm:$0xff] %vm770_vm3, %v2772_v56  ;;  %800 = vst.msk [vmem:[#allocation3 + $0x68] sm:$0xff] %vm770_vm3, %v2772_v56 }
 0x12c   : > { %801 = vst.msk [vmem:[#allocation3 + $0x70] sm:$0xff] %vm770_vm3, %v2772_v56  ;;  %802 = vst.msk [vmem:[#allocation3 + $0x78] sm:$0xff] %vm770_vm3, %v2772_v56 }
 0x12d   : > { %803 = vst.msk [vmem:[#allocation6] sm:$0xff] %vm770_vm3, %v2772_v56 }
 0x12e PF: > { %958 = vmatprep.mubr.f32.mxu1 %v3001_v2  ;;  %v2773_v57 = vmov 1.0   ;;  %v1088_v18 = vmul.f32 %v3001_v2, %v3001_v2  ;;  %v1087_v19 = vmul.f32 %v2997_v61, %v2997_v61  ;;  %v1090_v20 = vmul.f32 %v3009_v11, %v3009_v11 }
 0x12f   : > { %2518 = vmatprep.subr.msk.mxu0 %vm2903_vm1, %v2773_v57  ;;  %869 = vmatprep.mubr.f32.mxu0 %v2773_v57  ;;  %v1089_v25 = vmul.f32 %v3005_v6, %v3005_v6  ;;  %v1092_v26 = vmul.f32 %v3017_v23, %v3017_v23  ;;  %v1091_v29 = vmul.f32 %v3013_v16, %v3013_v16  ;;  %vm876_vm4 = vcmask 64512  }
 0x130   : > { %2519 = vmatpush1.xpose.msk.msra.mxu0 %vm2899_vm0, %v2773_v57  ;;  %2520 = vmatprep.subr.msk.mxu1 %vm2903_vm1, %v2773_v57  ;;  %v1094_v30 = vmul.f32 %v3025_v32, %v3025_v32  ;;  %v1093_v31 = vmul.f32 %v3021_v27, %v3021_v27  ;;  %v1096_v34 = vmul.f32 %v3033_v41, %v3033_v41 }
 0x131   : > { %2521 = vmatpush1.xpose.msk.msra.mxu1 %vm2899_vm0, %v2773_v57  ;;  %2522 = vmatprep.subr.msk.mxu0 %vm2903_vm1, %v2773_v57  ;;  %v1095_v35 = vmul.f32 %v3029_v36, %v3029_v36  ;;  %v1098_v38 = vmul.f32 %v3041_v50, %v3041_v50  ;;  %v1097_v39 = vmul.f32 %v3037_v45, %v3037_v45 }
 0x132   : > { %v1100_v40 = vmul.f32 %v3051_v0, %v3051_v0  ;;  %v1099_v43 = vmul.f32 %v3046_v54, %v3046_v54  ;;  %v1102_v44 = vmul.f32 %v3061_v14, %v3061_v14  ;;  %v1101_v47 = vmul.f32 %v3056_v5, %v3056_v5 }
 0x133   : > { %870 = vmatmul.mubr.f32.vlgmr.msra.gmra.mxu0 %v2773_v57  ;;  %v1104_v48 = vmul.f32 %v3003_v3, %v3003_v3  ;;  %v1103_v49 = vmul.f32 %v2999_v62, %v2999_v62  ;;  %v1106_v52 = vmul.f32 %v3011_v13, %v3011_v13  ;;  %v1105_v53 = vmul.f32 %v3007_v7, %v3007_v7 }
 0x134   : > { %2523 = vmatpush1.xpose.msk.msra.mxu0 %vm2899_vm0, %v2773_v57  ;;  %959 = vmatmul.mubr.f32.vlgmr.msra.gmra.mxu1 %v2997_v61  ;;  %v1108_v59 = vmul.f32 %v3019_v24, %v3019_v24  ;;  %v1107_v60 = vmul.f32 %v3015_v17, %v3015_v17  ;;  %v1110_v63 = vmul.f32 %v3027_v33, %v3027_v33 }
 0x135   : > { %1183 = vmatprep.mubr.f32.mxu0 %v1088_v18  ;;  %963 = vmatprep.mubr.f32.mxu1 %v3009_v11  ;;  %v1109_v4 = vmul.f32 %v3023_v28, %v3023_v28  ;;  %v1112_v55 = vmul.f32 %v3035_v42, %v3035_v42  ;;  %v1111_v9 = vmul.f32 %v3031_v37, %v3031_v37 }
 0x136   : > { %v1114_v10 = vmul.f32 %v3043_v51, %v3043_v51  ;;  %v1113_v56 = vmul.f32 %v3039_v46, %v3039_v46  ;;  %v1116_v57 = vmul.f32 %v3053_v1, %v3053_v1  ;;  %v1115_v18 = vmul.f32 %v3048_v58, %v3048_v58 }
 0x137   : > { %1184 = vmatmul.mubr.f32.vlgmr.msra.gmra.mxu0 %v1087_v19  ;;  %v1118_v19 = vmul.f32 %v3063_v15, %v3063_v15 }
 0x138   : > { %964 = vmatmul.mubr.f32.gmra.mxu1 %v3005_v6  ;;  %1188 = vmatprep.mubr.f32.mxu0 %v1090_v20  ;;  %v1117_v20 = vmul.f32 %v3058_v8, %v3058_v8 }
 0x139   : > { %968 = vmatprep.mubr.f32.mxu1 %v3017_v23 }
 0x13b   : > { %1189 = vmatmul.mubr.f32.gmra.mxu0 %v1089_v25  ;;  %v804_v25 = vld [vmem:[#allocation6] sm:$0xff] }
 0x13c   : > { %969 = vmatmul.mubr.f32.gmra.mxu1 %v3013_v16  ;;  %1193 = vmatprep.mubr.f32.mxu0 %v1092_v26  ;;  %v878_v26 = vld [vmem:[#allocation2] sm:$0xff] }
 0x13d   : > { %973 = vmatprep.mubr.f32.mxu1 %v3025_v32 }
 0x13f   : > { %1194 = vmatmul.mubr.f32.gmra.mxu0 %v1091_v29 }
 0x140   : > { %974 = vmatmul.mubr.f32.gmra.mxu1 %v3021_v27  ;;  %1198 = vmatprep.mubr.f32.mxu0 %v1094_v30 }
 0x141   : > { %978 = vmatprep.mubr.f32.mxu1 %v3033_v41 }
 0x143   : > { %1199 = vmatmul.mubr.f32.gmra.mxu0 %v1093_v31 }
 0x144   : > { %979 = vmatmul.mubr.f32.gmra.mxu1 %v3029_v36  ;;  %1203 = vmatprep.mubr.f32.mxu0 %v1096_v34 }
 0x145   : > { %983 = vmatprep.mubr.f32.mxu1 %v3041_v50 }
 0x147   : > { %1204 = vmatmul.mubr.f32.gmra.mxu0 %v1095_v35 }
 0x148   : > { %984 = vmatmul.mubr.f32.gmra.mxu1 %v3037_v45  ;;  %1208 = vmatprep.mubr.f32.mxu0 %v1098_v38  ;;  %v1071_v38 = vld [vmem:[#allocation3] sm:$0xff] }
 0x149   : > { %988 = vmatprep.mubr.f32.mxu1 %v3051_v0 }
 0x14b   : > { %1209 = vmatmul.mubr.f32.gmra.mxu0 %v1097_v39 }
 0x14c   : > { %989 = vmatmul.mubr.f32.gmra.mxu1 %v3046_v54  ;;  %1213 = vmatprep.mubr.f32.mxu0 %v1100_v40  ;;  %v879_v40 = vld [vmem:[#allocation2 + $0x8] sm:$0xff] }
 0x14d   : > { %993 = vmatprep.mubr.f32.mxu1 %v3061_v14 }
 0x14f   : > { %1214 = vmatmul.mubr.f32.gmra.mxu0 %v1099_v43 }
 0x150   : > { %994 = vmatmul.mubr.f32.gmra.mxu1 %v3056_v5  ;;  %1218 = vmatprep.mubr.f32.mxu0 %v1102_v44 }
 0x151   : > { %998 = vmatprep.mubr.f32.mxu1 %v3003_v3 }
 0x153   : > { %1219 = vmatmul.mubr.f32.gmra.mxu0 %v1101_v47 }
 0x154   : > { %999 = vmatmul.mubr.f32.gmra.mxu1 %v2999_v62  ;;  %1223 = vmatprep.mubr.f32.mxu0 %v1104_v48 }
 0x155   : > { %1003 = vmatprep.mubr.f32.mxu1 %v3011_v13 }
 0x157   : > { %1224 = vmatmul.mubr.f32.gmra.mxu0 %v1103_v49 }
 0x158   : > { %1004 = vmatmul.mubr.f32.gmra.mxu1 %v3007_v7  ;;  %1228 = vmatprep.mubr.f32.mxu0 %v1106_v52  ;;  %v1072_v52 = vld [vmem:[#allocation3 + $0x8] sm:$0xff] }
 0x159   : > { %1008 = vmatprep.mubr.f32.mxu1 %v3019_v24 }
 0x15b   : > { %1229 = vmatmul.mubr.f32.gmra.mxu0 %v1105_v53 }
 0x15c   : > { %1009 = vmatmul.mubr.f32.gmra.mxu1 %v3015_v17  ;;  %1233 = vmatprep.mubr.f32.mxu0 %v1108_v59  ;;  %v880_v59 = vld [vmem:[#allocation2 + $0x10] sm:$0xff] }
 0x15d   : > { %1013 = vmatprep.mubr.f32.mxu1 %v3027_v33 }
 0x15f   : > { %1234 = vmatmul.mubr.f32.gmra.mxu0 %v1107_v60 }
 0x160   : > { %1014 = vmatmul.mubr.f32.gmra.mxu1 %v3023_v28  ;;  %1238 = vmatprep.mubr.f32.mxu0 %v1110_v63 }
 0x161   : > { %1018 = vmatprep.mubr.f32.mxu1 %v3035_v42 }
 0x163   : > { %1239 = vmatmul.mubr.f32.gmra.mxu0 %v1109_v4 }
 0x164   : > { %1019 = vmatmul.mubr.f32.gmra.mxu1 %v3031_v37  ;;  %1243 = vmatprep.mubr.f32.mxu0 %v1112_v55 }
 0x165   : > { %1023 = vmatprep.mubr.f32.mxu1 %v3043_v51 }
 0x167   : > { %1244 = vmatmul.mubr.f32.gmra.mxu0 %v1111_v9 }
 0x168   : > { %1024 = vmatmul.mubr.f32.gmra.mxu1 %v3039_v46  ;;  %1248 = vmatprep.mubr.f32.mxu0 %v1114_v10  ;;  %v1073_v10 = vld [vmem:[#allocation3 + $0x10] sm:$0xff] }
 0x169   : > { %1028 = vmatprep.mubr.f32.mxu1 %v3053_v1 }
 0x16b   : > { %1249 = vmatmul.mubr.f32.gmra.mxu0 %v1113_v56 }
 0x16c   : > { %1029 = vmatmul.mubr.f32.gmra.mxu1 %v3048_v58  ;;  %1253 = vmatprep.mubr.f32.mxu0 %v1116_v57  ;;  %v881_v57 = vld [vmem:[#allocation2 + $0x18] sm:$0xff] }
 0x16d   : > { %1033 = vmatprep.mubr.f32.mxu1 %v3063_v15 }
 0x16f   : > { %1254 = vmatmul.mubr.f32.gmra.mxu0 %v1115_v18 }
 0x170   : > { %1034 = vmatmul.mubr.f32.gmra.mxu1 %v3058_v8  ;;  %1258 = vmatprep.mubr.f32.mxu0 %v1118_v19 }
 0x173   : > { %1259 = vmatmul.mubr.f32.gmra.mxu0 %v1117_v20 }
 0x1f3   : > { %v871_v29 = vpop.f32.mrf.mxu0 }
 0x1f4   : > { %v875_v30 = vadd.f32 %v871_v29, %v804_v25  ;;  %v960_v31 = vpop.f32.mrf.mxu1  ;;  %v1074_v29 = vld [vmem:[#allocation3 + $0x18] sm:$0xff] }
 0x1f5   : > { %v873_v34 = vpop.f32.mrf.mxu0  ;;  %v1039_v35 = vadd.f32 %v960_v31, %v878_v26  ;;  %v882_v31 = vld [vmem:[#allocation2 + $0x20] sm:$0xff] }
 0x1f6   : > { %877 = vst.msk [vmem:[#allocation6] sm:$0xff] %vm876_vm4, %v875_v30  ;;  %v962_v39 = vpop.f32.mrf.mxu1 }
 0x1f7   : > { %1055 = vst.msk [vmem:[#allocation2] sm:$0xff] %vm876_vm4, %v1039_v35  ;;  %v1185_v43 = vpop.f32.mrf.mxu0 }
 0x1f8   : > { %v1264_v44 = vadd.f32 %v1185_v43, %v1071_v38  ;;  %v965_v47 = vpop.f32.mrf.mxu1  ;;  %v1075_v43 = vld [vmem:[#allocation3 + $0x20] sm:$0xff] }
 0x1f9   : > { %v1187_v48 = vpop.f32.mrf.mxu0  ;;  %v1040_v49 = vadd.f32 %v965_v47, %v879_v40  ;;  %v883_v47 = vld [vmem:[#allocation2 + $0x28] sm:$0xff] }
 0x1fa   : > { %1280 = vst.msk [vmem:[#allocation3] sm:$0xff] %vm876_vm4, %v1264_v44  ;;  %v967_v53 = vpop.f32.mrf.mxu1 }
 0x1fb   : > { %1056 = vst.msk [vmem:[#allocation2 + $0x8] sm:$0xff] %vm876_vm4, %v1040_v49  ;;  %v1190_v60 = vpop.f32.mrf.mxu0 }
 0x1fc   : > { %v1265_v63 = vadd.f32 %v1190_v60, %v1072_v52  ;;  %v970_v4 = vpop.f32.mrf.mxu1  ;;  %v1076_v60 = vld [vmem:[#allocation3 + $0x28] sm:$0xff] }
 0x1fd   : > { %v1192_v55 = vpop.f32.mrf.mxu0  ;;  %v1041_v9 = vadd.f32 %v970_v4, %v880_v59  ;;  %v884_v4 = vld [vmem:[#allocation2 + $0x30] sm:$0xff] }
 0x1fe   : > { %1281 = vst.msk [vmem:[#allocation3 + $0x8] sm:$0xff] %vm876_vm4, %v1265_v63  ;;  %v972_v56 = vpop.f32.mrf.mxu1 }
 0x1ff   : > { %1057 = vst.msk [vmem:[#allocation2 + $0x10] sm:$0xff] %vm876_vm4, %v1041_v9  ;;  %v1195_v18 = vpop.f32.mrf.mxu0 }
 0x200   : > { %v1266_v19 = vadd.f32 %v1195_v18, %v1073_v10  ;;  %v975_v20 = vpop.f32.mrf.mxu1  ;;  %v1077_v18 = vld [vmem:[#allocation3 + $0x30] sm:$0xff] }
 0x201   : > { %v1197_v25 = vpop.f32.mrf.mxu0  ;;  %v1042_v26 = vadd.f32 %v975_v20, %v881_v57  ;;  %v885_v20 = vld [vmem:[#allocation2 + $0x38] sm:$0xff] }
 0x202   : > { %1282 = vst.msk [vmem:[#allocation3 + $0x10] sm:$0xff] %vm876_vm4, %v1266_v19  ;;  %v977_v30 = vpop.f32.mrf.mxu1 }
 0x203   : > { %1058 = vst.msk [vmem:[#allocation2 + $0x18] sm:$0xff] %vm876_vm4, %v1042_v26  ;;  %v1200_v34 = vpop.f32.mrf.mxu0 }
 0x204   : > { %v1267_v35 = vadd.f32 %v1200_v34, %v1074_v29  ;;  %v980_v38 = vpop.f32.mrf.mxu1  ;;  %v1078_v34 = vld [vmem:[#allocation3 + $0x38] sm:$0xff] }
 0x205   : > { %v1202_v39 = vpop.f32.mrf.mxu0  ;;  %v1043_v40 = vadd.f32 %v980_v38, %v882_v31  ;;  %v886_v38 = vld [vmem:[#allocation2 + $0x40] sm:$0xff] }
 0x206   : > { %1283 = vst.msk [vmem:[#allocation3 + $0x18] sm:$0xff] %vm876_vm4, %v1267_v35  ;;  %v982_v44 = vpop.f32.mrf.mxu1 }
 0x207   : > { %1059 = vst.msk [vmem:[#allocation2 + $0x20] sm:$0xff] %vm876_vm4, %v1043_v40  ;;  %v1205_v48 = vpop.f32.mrf.mxu0 }
 0x208   : > { %v1268_v49 = vadd.f32 %v1205_v48, %v1075_v43  ;;  %v985_v52 = vpop.f32.mrf.mxu1  ;;  %v1079_v48 = vld [vmem:[#allocation3 + $0x40] sm:$0xff] }
 0x209   : > { %v1207_v53 = vpop.f32.mrf.mxu0  ;;  %v1044_v59 = vadd.f32 %v985_v52, %v883_v47  ;;  %v887_v52 = vld [vmem:[#allocation2 + $0x48] sm:$0xff] }
 0x20a   : > { %1284 = vst.msk [vmem:[#allocation3 + $0x20] sm:$0xff] %vm876_vm4, %v1268_v49  ;;  %v987_v63 = vpop.f32.mrf.mxu1 }
 0x20b   : > { %1060 = vst.msk [vmem:[#allocation2 + $0x28] sm:$0xff] %vm876_vm4, %v1044_v59  ;;  %v1210_v55 = vpop.f32.mrf.mxu0 }
 0x20c   : > { %v1269_v9 = vadd.f32 %v1210_v55, %v1076_v60  ;;  %v990_v10 = vpop.f32.mrf.mxu1  ;;  %v1080_v55 = vld [vmem:[#allocation3 + $0x48] sm:$0xff] }
 0x20d   : > { %v1212_v56 = vpop.f32.mrf.mxu0  ;;  %v1045_v57 = vadd.f32 %v990_v10, %v884_v4  ;;  %v888_v10 = vld [vmem:[#allocation2 + $0x50] sm:$0xff] }
 0x20e   : > { %1285 = vst.msk [vmem:[#allocation3 + $0x28] sm:$0xff] %vm876_vm4, %v1269_v9  ;;  %v992_v19 = vpop.f32.mrf.mxu1 }
 0x20f   : > { %1061 = vst.msk [vmem:[#allocation2 + $0x30] sm:$0xff] %vm876_vm4, %v1045_v57  ;;  %v1215_v25 = vpop.f32.mrf.mxu0 }
 0x210   : > { %v1270_v26 = vadd.f32 %v1215_v25, %v1077_v18  ;;  %v995_v29 = vpop.f32.mrf.mxu1  ;;  %v1081_v25 = vld [vmem:[#allocation3 + $0x50] sm:$0xff] }
 0x211   : > { %v1217_v30 = vpop.f32.mrf.mxu0  ;;  %v1046_v31 = vadd.f32 %v995_v29, %v885_v20  ;;  %v889_v29 = vld [vmem:[#allocation2 + $0x58] sm:$0xff] }
 0x212   : > { %1286 = vst.msk [vmem:[#allocation3 + $0x30] sm:$0xff] %vm876_vm4, %v1270_v26  ;;  %v997_v35 = vpop.f32.mrf.mxu1 }
 0x213   : > { %1062 = vst.msk [vmem:[#allocation2 + $0x38] sm:$0xff] %vm876_vm4, %v1046_v31  ;;  %v1220_v39 = vpop.f32.mrf.mxu0 }
 0x214   : > { %v1271_v40 = vadd.f32 %v1220_v39, %v1078_v34  ;;  %v1000_v43 = vpop.f32.mrf.mxu1  ;;  %v1082_v39 = vld [vmem:[#allocation3 + $0x58] sm:$0xff] }
 0x215   : > { %v1222_v44 = vpop.f32.mrf.mxu0  ;;  %v1047_v47 = vadd.f32 %v1000_v43, %v886_v38  ;;  %v890_v43 = vld [vmem:[#allocation2 + $0x60] sm:$0xff] }
 0x216   : > { %1287 = vst.msk [vmem:[#allocation3 + $0x38] sm:$0xff] %vm876_vm4, %v1271_v40  ;;  %v1002_v49 = vpop.f32.mrf.mxu1 }
 0x217   : > { %1063 = vst.msk [vmem:[#allocation2 + $0x40] sm:$0xff] %vm876_vm4, %v1047_v47  ;;  %v1225_v53 = vpop.f32.mrf.mxu0 }
 0x218   : > { %v1272_v59 = vadd.f32 %v1225_v53, %v1079_v48  ;;  %v1005_v60 = vpop.f32.mrf.mxu1  ;;  %v1083_v53 = vld [vmem:[#allocation3 + $0x60] sm:$0xff] }
 0x219   : > { %v1227_v63 = vpop.f32.mrf.mxu0  ;;  %v1048_v4 = vadd.f32 %v1005_v60, %v887_v52  ;;  %v891_v60 = vld [vmem:[#allocation2 + $0x68] sm:$0xff] }
 0x21a   : > { %1288 = vst.msk [vmem:[#allocation3 + $0x40] sm:$0xff] %vm876_vm4, %v1272_v59  ;;  %v1007_v9 = vpop.f32.mrf.mxu1 }
 0x21b   : > { %1064 = vst.msk [vmem:[#allocation2 + $0x48] sm:$0xff] %vm876_vm4, %v1048_v4  ;;  %v1230_v56 = vpop.f32.mrf.mxu0 }
 0x21c   : > { %v1273_v57 = vadd.f32 %v1230_v56, %v1080_v55  ;;  %v1010_v18 = vpop.f32.mrf.mxu1  ;;  %v1084_v56 = vld [vmem:[#allocation3 + $0x68] sm:$0xff] }
 0x21d   : > { %v1232_v19 = vpop.f32.mrf.mxu0  ;;  %v1049_v20 = vadd.f32 %v1010_v18, %v888_v10  ;;  %v892_v18 = vld [vmem:[#allocation2 + $0x70] sm:$0xff] }
 0x21e   : > { %1289 = vst.msk [vmem:[#allocation3 + $0x48] sm:$0xff] %vm876_vm4, %v1273_v57  ;;  %v1012_v26 = vpop.f32.mrf.mxu1 }
 0x21f   : > { %1065 = vst.msk [vmem:[#allocation2 + $0x50] sm:$0xff] %vm876_vm4, %v1049_v20  ;;  %v1235_v30 = vpop.f32.mrf.mxu0 }
 0x220   : > { %v1274_v31 = vadd.f32 %v1235_v30, %v1081_v25  ;;  %v1015_v34 = vpop.f32.mrf.mxu1  ;;  %v1085_v30 = vld [vmem:[#allocation3 + $0x70] sm:$0xff] }
 0x221   : > { %v1237_v35 = vpop.f32.mrf.mxu0  ;;  %v1050_v38 = vadd.f32 %v1015_v34, %v889_v29  ;;  %v893_v34 = vld [vmem:[#allocation2 + $0x78] sm:$0xff] }
 0x222   : > { %1290 = vst.msk [vmem:[#allocation3 + $0x50] sm:$0xff] %vm876_vm4, %v1274_v31  ;;  %v1017_v40 = vpop.f32.mrf.mxu1 }
 0x223   : > { %1066 = vst.msk [vmem:[#allocation2 + $0x58] sm:$0xff] %vm876_vm4, %v1050_v38  ;;  %v1240_v44 = vpop.f32.mrf.mxu0 }
 0x224   : > { %v1275_v47 = vadd.f32 %v1240_v44, %v1082_v39  ;;  %v1020_v48 = vpop.f32.mrf.mxu1  ;;  %v1086_v44 = vld [vmem:[#allocation3 + $0x78] sm:$0xff] }
 0x225   : > { %v1242_v49 = vpop.f32.mrf.mxu0  ;;  %v1051_v52 = vadd.f32 %v1020_v48, %v890_v43 }
 0x226   : > { %1291 = vst.msk [vmem:[#allocation3 + $0x58] sm:$0xff] %vm876_vm4, %v1275_v47  ;;  %v1022_v59 = vpop.f32.mrf.mxu1 }
 0x227   : > { %1067 = vst.msk [vmem:[#allocation2 + $0x60] sm:$0xff] %vm876_vm4, %v1051_v52  ;;  %v1245_v63 = vpop.f32.mrf.mxu0 }
 0x228   : > { %v1276_v4 = vadd.f32 %v1245_v63, %v1083_v53  ;;  %v1025_v55 = vpop.f32.mrf.mxu1 }
 0x229   : > { %v1247_v9 = vpop.f32.mrf.mxu0  ;;  %v1052_v10 = vadd.f32 %v1025_v55, %v891_v60 }
 0x22a   : > { %1292 = vst.msk [vmem:[#allocation3 + $0x60] sm:$0xff] %vm876_vm4, %v1276_v4  ;;  %v1027_v57 = vpop.f32.mrf.mxu1 }
 0x22b   : > { %1068 = vst.msk [vmem:[#allocation2 + $0x68] sm:$0xff] %vm876_vm4, %v1052_v10  ;;  %v1250_v19 = vpop.f32.mrf.mxu0 }
 0x22c   : > { %v1277_v20 = vadd.f32 %v1250_v19, %v1084_v56  ;;  %v1030_v25 = vpop.f32.mrf.mxu1 }
 0x22d   : > { %v1252_v26 = vpop.f32.mrf.mxu0  ;;  %v1053_v29 = vadd.f32 %v1030_v25, %v892_v18 }
 0x22e   : > { %1293 = vst.msk [vmem:[#allocation3 + $0x68] sm:$0xff] %vm876_vm4, %v1277_v20  ;;  %v1032_v31 = vpop.f32.mrf.mxu1 }
 0x22f   : > { %1069 = vst.msk [vmem:[#allocation2 + $0x70] sm:$0xff] %vm876_vm4, %v1053_v29  ;;  %v1255_v35 = vpop.f32.mrf.mxu0 }
 0x230   : > { %v1278_v38 = vadd.f32 %v1255_v35, %v1085_v30  ;;  %v1035_v39 = vpop.f32.mrf.mxu1 }
 0x231   : > { %v1257_v40 = vpop.f32.mrf.mxu0  ;;  %v1054_v43 = vadd.f32 %v1035_v39, %v893_v34 }
 0x232   : > { %1294 = vst.msk [vmem:[#allocation3 + $0x70] sm:$0xff] %vm876_vm4, %v1278_v38  ;;  %v1037_v47 = vpop.f32.mrf.mxu1 }
 0x233   : > { %1070 = vst.msk [vmem:[#allocation2 + $0x78] sm:$0xff] %vm876_vm4, %v1054_v43  ;;  %v1260_v48 = vpop.f32.mrf.mxu0 }
 0x234   : > { %v1279_v49 = vadd.f32 %v1260_v48, %v1086_v44 }
 0x235   : > { %v1262_v52 = vpop.f32.mrf.mxu0 }
 0x236   : > { %1295 = vst.msk [vmem:[#allocation3 + $0x78] sm:$0xff] %vm876_vm4, %v1279_v49 }
 0x237 PF: > { %p2524_p13 = scmp.ne.s32.totalorder %s2757_s12, 1 }
 0x239   : > { %1299 = sbr.rel (%p2524_p13) target bundleno = 1407 (0x57f), region = 94 }
 0x23e   : > { %p2525_p0 = scmp.ne.s32.totalorder %s2753_s11, 0 }
 0x240   : > { %1303 = sbr.rel (%p2525_p0) target bundleno = 648 (0x288), region = 98 }
 0x245   : > { %v1304_v53 = vld [vmem:[#allocation6] sm:$0x1]  ;;  %vm1455_vm5 = vcmask 64512   ;;  %v2774_v60 = vmov 0.0   ;;  %v1307_v9 = vld [vmem:[#allocation2 + $0x8] sm:$0xff]  ;;  %v1308_v56 = vld [vmem:[#allocation2 + $0x10] sm:$0xff] }
 0x246   : > { %v1305_v59 = vmax.f32 %v1304_v53, 1.0  ;;  %1488 = vst.msk [vmem:[#allocation4] sm:$0xff] %vm1455_vm5, %v2774_v60  ;;  %1489 = vst.msk [vmem:[#allocation4 + $0x8] sm:$0xff] %vm1455_vm5, %v2774_v60  ;;  %v1306_v4 = vld [vmem:[#allocation2] sm:$0xff]  ;;  %v1344_v10 = vld [vmem:[#allocation3 + $0x8] sm:$0xff] }
 0x247   : > { %1490 = vst.msk [vmem:[#allocation4 + $0x10] sm:$0xff] %vm1455_vm5, %v2774_v60  ;;  %1491 = vst.msk [vmem:[#allocation4 + $0x18] sm:$0xff] %vm1455_vm5, %v2774_v60  ;;  %v1343_v55 = vld [vmem:[#allocation3] sm:$0xff]  ;;  %v1345_v57 = vld [vmem:[#allocation3 + $0x10] sm:$0xff] }
 0x248   : > { %1492 = vst.msk [vmem:[#allocation5] sm:$0xff] %vm1455_vm5, %v2774_v60  ;;  %1493 = vst.msk [vmem:[#allocation5 + $0x8] sm:$0xff] %vm1455_vm5, %v2774_v60  ;;  %v1325_v63 = vrot.slane %v1305_v59, %v2893_v12  ;;  %v1309_v18 = vld [vmem:[#allocation2 + $0x18] sm:$0xff]  ;;  %v1310_v25 = vld [vmem:[#allocation2 + $0x20] sm:$0xff] }
 0x249   : > { %1494 = vst.msk [vmem:[#allocation5 + $0x10] sm:$0xff] %vm1455_vm5, %v2774_v60  ;;  %1495 = vst.msk [vmem:[#allocation5 + $0x18] sm:$0xff] %vm1455_vm5, %v2774_v60  ;;  %v1346_v19 = vld [vmem:[#allocation3 + $0x18] sm:$0xff]  ;;  %v1347_v26 = vld [vmem:[#allocation3 + $0x20] sm:$0xff] }
 0x24a   : > { %2667 = vrcp.f32 %v1325_v63  ;;  %v1311_v35 = vld [vmem:[#allocation2 + $0x28] sm:$0xff]  ;;  %v1312_v47 = vld [vmem:[#allocation2 + $0x30] sm:$0xff] }
 0x24b   : > { %v1348_v38 = vld [vmem:[#allocation3 + $0x28] sm:$0xff]  ;;  %v1349_v59 = vld [vmem:[#allocation3 + $0x30] sm:$0xff] }
 0x257   : > { %v3252_v20 = vpop.eup %2667 }
 0x258   : > { %v1327_v29 = vmul.f32 %v3252_v20, %v1306_v4  ;;  %v1359_v30 = vmul.f32 %v3252_v20, %v1343_v55  ;;  %v1328_v31 = vmul.f32 %v3252_v20, %v1307_v9  ;;  %v1360_v34 = vmul.f32 %v3252_v20, %v1344_v10 }
 0x259   : > { %v1329_v39 = vmul.f32 %v3252_v20, %v1308_v56  ;;  %v1361_v40 = vmul.f32 %v3252_v20, %v1345_v57  ;;  %v1330_v43 = vmul.f32 %v3252_v20, %v1309_v18  ;;  %v1362_v44 = vmul.f32 %v3252_v20, %v1346_v19  ;;  %v1313_v18 = vld [vmem:[#allocation2 + $0x38] sm:$0xff] }
 0x25a   : > { %v1375_v48 = vmul.f32 %v1327_v29, %v1327_v29  ;;  %1456 = vst.msk [vmem:[%s3820_s6] sm:$0xff] %vm1455_vm5, %v1327_v29  ;;  %v1376_v49 = vmul.f32 %v1328_v31, %v1328_v31  ;;  %1457 = vst.msk [vmem:[%s3820_s6 + $0x8] sm:$0xff] %vm1455_vm5, %v1328_v31  ;;  %v1331_v52 = vmul.f32 %v3252_v20, %v1310_v25 }
 0x25b   : > { %v1363_v53 = vmul.f32 %v3252_v20, %v1347_v26  ;;  %v1377_v60 = vmul.f32 %v1329_v39, %v1329_v39  ;;  %1458 = vst.msk [vmem:[%s3820_s6 + $0x10] sm:$0xff] %vm1455_vm5, %v1329_v39  ;;  %v1378_v63 = vmul.f32 %v1330_v43, %v1330_v43  ;;  %1459 = vst.msk [vmem:[%s3820_s6 + $0x18] sm:$0xff] %vm1455_vm5, %v1330_v43 }
 0x25c   : > { %v1332_v4 = vmul.f32 %v3252_v20, %v1311_v35  ;;  %v1364_v55 = vmul.f32 %v3252_v20, %v1348_v38  ;;  %v1391_v9 = vsub.f32 %v1359_v30, %v1375_v48  ;;  %v1392_v10 = vsub.f32 %v1360_v34, %v1376_v49  ;;  %1460 = vst.msk [vmem:[%s3820_s6 + $0x20] sm:$0xff] %vm1455_vm5, %v1331_v52  ;;  %v1350_v38 = vld [vmem:[#allocation3 + $0x38] sm:$0xff] }
 0x25d   : > { %v1379_v56 = vmul.f32 %v1331_v52, %v1331_v52  ;;  %v1333_v57 = vmul.f32 %v3252_v20, %v1312_v47  ;;  %v1393_v19 = vsub.f32 %v1361_v40, %v1377_v60  ;;  %v1394_v25 = vsub.f32 %v1362_v44, %v1378_v63  ;;  %v1314_v47 = vld [vmem:[#allocation2 + $0x40] sm:$0xff] }
 0x25e   : > { %v1380_v26 = vmul.f32 %v1332_v4, %v1332_v4  ;;  %1461 = vst.msk [vmem:[%s3820_s6 + $0x28] sm:$0xff] %vm1455_vm5, %v1332_v4  ;;  %v1365_v29 = vmul.f32 %v3252_v20, %v1349_v59  ;;  %v1407_v30 = vmax.f32 %v1391_v9, 0.0  ;;  %v1408_v31 = vmax.f32 %v1392_v10, 0.0  ;;  %v1351_v60 = vld [vmem:[#allocation3 + $0x40] sm:$0xff]  ;;  %v1315_v10 = vld [vmem:[#allocation2 + $0x48] sm:$0xff] }
 0x25f   : > { %v1395_v34 = vsub.f32 %v1363_v53, %v1379_v56  ;;  %v1381_v35 = vmul.f32 %v1333_v57, %v1333_v57  ;;  %1462 = vst.msk [vmem:[%s3820_s6 + $0x30] sm:$0xff] %vm1455_vm5, %v1333_v57  ;;  %v1409_v39 = vmax.f32 %v1393_v19, 0.0  ;;  %v1410_v40 = vmax.f32 %v1394_v25, 0.0  ;;  %v1316_v19 = vld [vmem:[#allocation2 + $0x50] sm:$0xff] }
 0x260   : > { %v1396_v43 = vsub.f32 %v1364_v55, %v1380_v26  ;;  %v1334_v44 = vmul.f32 %v3252_v20, %v1313_v18  ;;  %v1423_v48 = vadd.f32 1e-05, %v1407_v30  ;;  %v1424_v49 = vadd.f32 1e-05, %v1408_v31  ;;  %v1352_v18 = vld [vmem:[#allocation3 + $0x48] sm:$0xff]  ;;  %v1353_v30 = vld [vmem:[#allocation3 + $0x50] sm:$0xff] }
 0x261   : > { %v1411_v52 = vmax.f32 %v1395_v34, 0.0  ;;  %v1397_v59 = vsub.f32 %v1365_v29, %v1381_v35  ;;  %v1425_v63 = vadd.f32 1e-05, %v1409_v39  ;;  %v1426_v53 = vadd.f32 1e-05, %v1410_v40 }
 0x262   : > { %v1412_v4 = vmax.f32 %v1396_v43, 0.0  ;;  %v1366_v9 = vmul.f32 %v3252_v20, %v1350_v38  ;;  %1463 = vst.msk [vmem:[%s3820_s6 + $0x38] sm:$0xff] %vm1455_vm5, %v1334_v44  ;;  %2669 = vrsqrt.f32 %v1423_v48  ;;  %v1382_v57 = vmul.f32 %v1334_v44, %v1334_v44  ;;  %v1317_v38 = vld [vmem:[#allocation2 + $0x58] sm:$0xff] }
 0x263   : > { %v1427_v55 = vadd.f32 1e-05, %v1411_v52  ;;  %v1413_v56 = vmax.f32 %v1397_v59, 0.0  ;;  %2671 = vrsqrt.f32 %v1424_v49  ;;  %v1335_v26 = vmul.f32 %v3252_v20, %v1314_v47  ;;  %v1354_v44 = vld [vmem:[#allocation3 + $0x58] sm:$0xff]  ;;  %v1318_v52 = vld [vmem:[#allocation2 + $0x60] sm:$0xff] }
 0x264   : > { %v1428_v25 = vadd.f32 1e-05, %v1412_v4  ;;  %v1367_v29 = vmul.f32 %v3252_v20, %v1351_v60  ;;  %2673 = vrsqrt.f32 %v1425_v63  ;;  %v1398_v34 = vsub.f32 %v1366_v9, %v1382_v57  ;;  %v1319_v4 = vld [vmem:[#allocation2 + $0x68] sm:$0xff] }
 0x265   : > { %v1429_v31 = vadd.f32 1e-05, %v1413_v56  ;;  %v1336_v35 = vmul.f32 %v3252_v20, %v1315_v10  ;;  %2675 = vrsqrt.f32 %v1426_v53  ;;  %v1383_v39 = vmul.f32 %v1335_v26, %v1335_v26  ;;  %1464 = vst.msk [vmem:[%s3820_s6 + $0x40] sm:$0xff] %vm1455_vm5, %v1335_v26  ;;  %v1355_v53 = vld [vmem:[#allocation3 + $0x60] sm:$0xff]  ;;  %v1320_v26 = vld [vmem:[#allocation2 + $0x70] sm:$0xff] }
 0x266   : > { %v1368_v40 = vmul.f32 %v3252_v20, %v1352_v18  ;;  %v1337_v43 = vmul.f32 %v3252_v20, %v1316_v19  ;;  %2677 = vrsqrt.f32 %v1427_v55  ;;  %v1414_v47 = vmax.f32 %v1398_v34, 0.0 }
 0x267   : > { %v1384_v48 = vmul.f32 %v1336_v35, %v1336_v35  ;;  %1465 = vst.msk [vmem:[%s3820_s6 + $0x48] sm:$0xff] %vm1455_vm5, %v1336_v35  ;;  %v1369_v49 = vmul.f32 %v3252_v20, %v1353_v30  ;;  %2679 = vrsqrt.f32 %v1428_v25  ;;  %v1399_v59 = vsub.f32 %v1367_v29, %v1383_v39  ;;  %v1356_v25 = vld [vmem:[#allocation3 + $0x68] sm:$0xff] }
 0x268   : > { %v1385_v60 = vmul.f32 %v1337_v43, %v1337_v43  ;;  %1466 = vst.msk [vmem:[%s3820_s6 + $0x50] sm:$0xff] %vm1455_vm5, %v1337_v43  ;;  %v1338_v63 = vmul.f32 %v3252_v20, %v1317_v38  ;;  %2681 = vrsqrt.f32 %v1429_v31  ;;  %v1430_v9 = vadd.f32 1e-05, %v1414_v47 }
 0x269   : > { %v1400_v10 = vsub.f32 %v1368_v40, %v1384_v48  ;;  %v1370_v55 = vmul.f32 %v3252_v20, %v1354_v44  ;;  %v1415_v56 = vmax.f32 %v1399_v59, 0.0  ;;  %v1339_v19 = vmul.f32 %v3252_v20, %v1318_v52  ;;  %v1357_v40 = vld [vmem:[#allocation3 + $0x70] sm:$0xff] }
 0x26a   : > { %v1401_v57 = vsub.f32 %v1369_v49, %v1385_v60  ;;  %v1386_v18 = vmul.f32 %v1338_v63, %v1338_v63  ;;  %1467 = vst.msk [vmem:[%s3820_s6 + $0x58] sm:$0xff] %vm1455_vm5, %v1338_v63  ;;  %2683 = vrsqrt.f32 %v1430_v9  ;;  %v1371_v30 = vmul.f32 %v3252_v20, %v1355_v53  ;;  %v1321_v49 = vld [vmem:[#allocation2 + $0x78] sm:$0xff] }
 0x26b   : > { %v1416_v29 = vmax.f32 %v1400_v10, 0.0  ;;  %v1340_v31 = vmul.f32 %v3252_v20, %v1319_v4  ;;  %v1431_v34 = vadd.f32 1e-05, %v1415_v56  ;;  %v1387_v39 = vmul.f32 %v1339_v19, %v1339_v19  ;;  %1468 = vst.msk [vmem:[%s3820_s6 + $0x60] sm:$0xff] %vm1455_vm5, %v1339_v19  ;;  %v1358_v63 = vld [vmem:[#allocation3 + $0x78] sm:$0xff] }
 0x26c   : > { %v1417_v35 = vmax.f32 %v1401_v57, 0.0  ;;  %v1402_v38 = vsub.f32 %v1370_v55, %v1386_v18  ;;  %v1372_v44 = vmul.f32 %v3252_v20, %v1356_v25  ;;  %v1341_v48 = vmul.f32 %v3252_v20, %v1320_v26 }
 0x26d   : > { %v1432_v43 = vadd.f32 1e-05, %v1416_v29  ;;  %v1388_v47 = vmul.f32 %v1340_v31, %v1340_v31  ;;  %1469 = vst.msk [vmem:[%s3820_s6 + $0x68] sm:$0xff] %vm1455_vm5, %v1340_v31  ;;  %2685 = vrsqrt.f32 %v1431_v34  ;;  %v1403_v60 = vsub.f32 %v1371_v30, %v1387_v39 }
 0x26e   : > { %v1433_v52 = vadd.f32 1e-05, %v1417_v35  ;;  %v1418_v59 = vmax.f32 %v1402_v38, 0.0  ;;  %v1373_v4 = vmul.f32 %v3252_v20, %v1357_v40  ;;  %v1389_v9 = vmul.f32 %v1341_v48, %v1341_v48  ;;  %1470 = vst.msk [vmem:[%s3820_s6 + $0x70] sm:$0xff] %vm1455_vm5, %v1341_v48 }
 0x26f   : > { %2687 = vrsqrt.f32 %v1432_v43  ;;  %v1404_v53 = vsub.f32 %v1372_v44, %v1388_v47  ;;  %v2670_v10 = vpop.eup %2669  ;;  %v1419_v56 = vmax.f32 %v1403_v60, 0.0  ;;  %v1342_v57 = vmul.f32 %v3252_v20, %v1321_v49 }
 0x270   : > { %2689 = vrsqrt.f32 %v1433_v52  ;;  %v1434_v55 = vadd.f32 1e-05, %v1418_v59  ;;  %v2672_v18 = vpop.eup %2671  ;;  %1472 = vst.msk [vmem:[%s3821_s7] sm:$0xff] %vm1455_vm5, %v2670_v10  ;;  %v1405_v25 = vsub.f32 %v1373_v4, %v1389_v9  ;;  %v1374_v26 = vmul.f32 %v3252_v20, %v1358_v63 }
 0x271   : > { %v1420_v19 = vmax.f32 %v1404_v53, 0.0  ;;  %v2674_v29 = vpop.eup %2673  ;;  %1473 = vst.msk [vmem:[%s3821_s7 + $0x8] sm:$0xff] %vm1455_vm5, %v2672_v18  ;;  %v1435_v30 = vadd.f32 1e-05, %v1419_v56  ;;  %v1390_v31 = vmul.f32 %v1342_v57, %v1342_v57  ;;  %1471 = vst.msk [vmem:[%s3820_s6 + $0x78] sm:$0xff] %vm1455_vm5, %v1342_v57 }
 0x272   : > { %2691 = vrsqrt.f32 %v1434_v55  ;;  %v2676_v34 = vpop.eup %2675  ;;  %1474 = vst.msk [vmem:[%s3821_s7 + $0x10] sm:$0xff] %vm1455_vm5, %v2674_v29  ;;  %v1421_v35 = vmax.f32 %v1405_v25, 0.0 }
 0x273   : > { %v1436_v20 = vadd.f32 1e-05, %v1420_v19  ;;  %v2678_v38 = vpop.eup %2677  ;;  %1475 = vst.msk [vmem:[%s3821_s7 + $0x18] sm:$0xff] %vm1455_vm5, %v2676_v34  ;;  %2693 = vrsqrt.f32 %v1435_v30  ;;  %v1406_v39 = vsub.f32 %v1374_v26, %v1390_v31 }
 0x274   : > { %v2680_v40 = vpop.eup %2679  ;;  %1476 = vst.msk [vmem:[%s3821_s7 + $0x20] sm:$0xff] %vm1455_vm5, %v2678_v38  ;;  %v1437_v43 = vadd.f32 1e-05, %v1421_v35 }
 0x275   : > { %2695 = vrsqrt.f32 %v1436_v20  ;;  %v2682_v44 = vpop.eup %2681  ;;  %1477 = vst.msk [vmem:[%s3821_s7 + $0x28] sm:$0xff] %vm1455_vm5, %v2680_v40  ;;  %v1422_v47 = vmax.f32 %v1406_v39, 0.0 }
 0x276   : > { %1478 = vst.msk [vmem:[%s3821_s7 + $0x30] sm:$0xff] %vm1455_vm5, %v2682_v44  ;;  %2697 = vrsqrt.f32 %v1437_v43 }
 0x277   : > { %v2684_v48 = vpop.eup %2683  ;;  %v1438_v49 = vadd.f32 1e-05, %v1422_v47 }
 0x278   : > { %1479 = vst.msk [vmem:[%s3821_s7 + $0x38] sm:$0xff] %vm1455_vm5, %v2684_v48 }
 0x279   : > { %2699 = vrsqrt.f32 %v1438_v49 }
 0x27a   : > { %v2686_v52 = vpop.eup %2685 }
 0x27b   : > { %1480 = vst.msk [vmem:[%s3821_s7 + $0x40] sm:$0xff] %vm1455_vm5, %v2686_v52 }
 0x27c   : > { %v2688_v59 = vpop.eup %2687 }
 0x27d   : > { %v2690_v60 = vpop.eup %2689  ;;  %1481 = vst.msk [vmem:[%s3821_s7 + $0x48] sm:$0xff] %vm1455_vm5, %v2688_v59 }
 0x27e   : > { %1482 = vst.msk [vmem:[%s3821_s7 + $0x50] sm:$0xff] %vm1455_vm5, %v2690_v60 }
 0x27f   : > { %v2692_v63 = vpop.eup %2691 }
 0x280   : > { %1483 = vst.msk [vmem:[%s3821_s7 + $0x58] sm:$0xff] %vm1455_vm5, %v2692_v63  ;;  %v2694_v53 = vpop.eup %2693 }
 0x281   : > { %1484 = vst.msk [vmem:[%s3821_s7 + $0x60] sm:$0xff] %vm1455_vm5, %v2694_v53 }
 0x282   : > { %v2696_v4 = vpop.eup %2695 }
 0x283   : > { %1485 = vst.msk [vmem:[%s3821_s7 + $0x68] sm:$0xff] %vm1455_vm5, %v2696_v4  ;;  %v2698_v9 = vpop.eup %2697 }
 0x284   : > { %1486 = vst.msk [vmem:[%s3821_s7 + $0x70] sm:$0xff] %vm1455_vm5, %v2698_v9 }
 0x286   : > { %v2700_v10 = vpop.eup %2699 }
 0x287   : > { %1487 = vst.msk [vmem:[%s3821_s7 + $0x78] sm:$0xff] %vm1455_vm5, %v2700_v10 }
 0x288 PF: > { %v1510_v55 = vld [vmem:[%s3820_s6 + $0x70] sm:$0xff]  ;;  %vm1512_vm6 = vcmask 64512   ;;  %v3825_v56 = vmov 1.0   ;;  %v2776_v57 = vmov 0.0   ;;  %v1496_v18 = vld [vmem:[%s3820_s6] sm:$0xff]  ;;  %v1511_v19 = vld [vmem:[%s3820_s6 + $0x78] sm:$0xff] }
 0x289   : > { %2580 = vmatprep.subr.msk.mxu1 %vm2903_vm1, %v3825_v56  ;;  %1709 = vmatprep.mubr.f32.mxu1 %v2776_v57  ;;  %v1497_v25 = vld [vmem:[%s3820_s6 + $0x8] sm:$0xff]  ;;  %v1722_v26 = vld [vmem:[%s3821_s7] sm:$0xff]  ;;  %v1498_v29 = vld [vmem:[%s3820_s6 + $0x10] sm:$0xff]  ;;  %p2568_p1 = scmp.ne.s32.totalorder %s2753_s11, 1 }
 0x28a   : > { %2581 = vmatpush1.msk.msra.mxu1 %vm2899_vm0, %v3825_v56  ;;  %2526 = vmatprep.subr.msk.mxu0 %vm2903_vm1, %v3825_v56  ;;  %v1723_v30 = vld [vmem:[%s3821_s7 + $0x8] sm:$0xff]  ;;  %v1499_v31 = vld [vmem:[%s3820_s6 + $0x18] sm:$0xff]  ;;  %v1724_v34 = vld [vmem:[%s3821_s7 + $0x10] sm:$0xff] }
 0x28b   : > { %2542 = vmatmul.mubr.msk.f32.vlgmr.msra.gmra.mxu1 %vm1512_vm6, %v1510_v55  ;;  %2527 = vmatpush1.msk.msra.mxu0 %vm2899_vm0, %v3825_v56  ;;  %v1500_v20 = vld [vmem:[%s3820_s6 + $0x20] sm:$0xff]  ;;  %v1725_v35 = vld [vmem:[%s3821_s7 + $0x18] sm:$0xff]  ;;  %v1501_v38 = vld [vmem:[%s3820_s6 + $0x28] sm:$0xff] }
 0x28c   : > { %1715 = vmatprep.mubr.f32.mxu1 %v2776_v57  ;;  %1625 = vmatprep.mubr.f32.mxu0 %v2776_v57  ;;  %v1726_v39 = vld [vmem:[%s3821_s7 + $0x20] sm:$0xff]  ;;  %v1502_v40 = vld [vmem:[%s3820_s6 + $0x30] sm:$0xff]  ;;  %v1727_v43 = vld [vmem:[%s3821_s7 + $0x28] sm:$0xff] }
 0x28d   : > { %2528 = vmatmul.mubr.msk.f32.vlgmr.msra.gmra.mxu0 %vm1512_vm6, %v1496_v18  ;;  %2544 = vmatprep.subr.msk.mxu1 %vm2903_vm1, %v3825_v56  ;;  %v1503_v44 = vld [vmem:[%s3820_s6 + $0x38] sm:$0xff]  ;;  %v1728_v47 = vld [vmem:[%s3821_s7 + $0x30] sm:$0xff]  ;;  %v1504_v48 = vld [vmem:[%s3820_s6 + $0x40] sm:$0xff] }
 0x28e   : > { %2545 = vmatpush1.msk.msra.mxu1 %vm2899_vm0, %v3825_v56  ;;  %1631 = vmatprep.mubr.f32.mxu0 %v2776_v57  ;;  %v1729_v49 = vld [vmem:[%s3821_s7 + $0x38] sm:$0xff]  ;;  %v1505_v52 = vld [vmem:[%s3820_s6 + $0x48] sm:$0xff]  ;;  %v1730_v59 = vld [vmem:[%s3821_s7 + $0x40] sm:$0xff] }
 0x28f   : > { %2543 = vmatmul.mubr.msk.f32.gmra.mxu1 %vm1512_vm6, %v1511_v19  ;;  %2564 = vmatprep.subr.msk.mxu1 %vm2903_vm1, %v3825_v56  ;;  %v1506_v60 = vld [vmem:[%s3820_s6 + $0x50] sm:$0xff]  ;;  %v1731_v63 = vld [vmem:[%s3821_s7 + $0x48] sm:$0xff]  ;;  %v1507_v53 = vld [vmem:[%s3820_s6 + $0x58] sm:$0xff] }
 0x290   : > { %1850 = vmatprep.mubr.f32.mxu1 %v2776_v57  ;;  %v1732_v4 = vld [vmem:[%s3821_s7 + $0x50] sm:$0xff]  ;;  %v1508_v9 = vld [vmem:[%s3820_s6 + $0x60] sm:$0xff]  ;;  %v1733_v10 = vld [vmem:[%s3821_s7 + $0x58] sm:$0xff] }
 0x291   : > { %2529 = vmatmul.mubr.msk.f32.gmra.mxu0 %vm1512_vm6, %v1497_v25  ;;  %v1509_v55 = vld [vmem:[%s3820_s6 + $0x68] sm:$0xff]  ;;  %v1734_v18 = vld [vmem:[%s3821_s7 + $0x60] sm:$0xff]  ;;  %v1736_v25 = vld [vmem:[%s3821_s7 + $0x70] sm:$0xff] }
 0x292   : > { %1637 = vmatprep.mubr.f32.mxu0 %v2776_v57  ;;  %v1735_v19 = vld [vmem:[%s3821_s7 + $0x68] sm:$0xff] }
 0x293   : > { %2546 = vmatmul.mubr.msk.f32.vlgmr.msra.gmra.mxu1 %vm1512_vm6, %v1722_v26  ;;  %v1737_v26 = vld [vmem:[%s3821_s7 + $0x78] sm:$0xff] }
 0x294   : > { %1856 = vmatprep.mubr.f32.mxu1 %v2776_v57  ;;  %2565 = vmatpush1.xpose.msk.msra.mxu1 %vm2899_vm0, %v3825_v56 }
 0x295   : > { %2530 = vmatmul.mubr.msk.f32.gmra.mxu0 %vm1512_vm6, %v1498_v29  ;;  %v3824_v29 = vmov 0  }
 0x296   : > { %1643 = vmatprep.mubr.f32.mxu0 %v2776_v57  ;;  %2701 = vset.pattern.permute.xlu0 %v3824_v29 }
 0x297   : > { %2547 = vmatmul.mubr.msk.f32.gmra.mxu1 %vm1512_vm6, %v1723_v30  ;;  %2702 = vset.pattern.permute.xlu1 %v3824_v29  ;;  %v2063_v30 = vld [vmem:[%s3819_s5] sm:$0xff] }
 0x298   : > { %1862 = vmatprep.mubr.f32.mxu1 %v2776_v57  ;;  %2069 = vperm.xlu0 %2701, %v2063_v30  }
 0x299   : > { %2531 = vmatmul.mubr.msk.f32.gmra.mxu0 %vm1512_vm6, %v1499_v31  ;;  %v2064_v31 = vld [vmem:[%s3819_s5 + $0x8] sm:$0xff] }
 0x29a   : > { %1649 = vmatprep.mubr.f32.mxu0 %v2776_v57 }
 0x29b   : > { %2548 = vmatmul.mubr.msk.f32.gmra.mxu1 %vm1512_vm6, %v1724_v34  ;;  %v2066_v34 = vld [vmem:[%s3819_s5 + $0x18] sm:$0xff] }
 0x29c   : > { %1868 = vmatprep.mubr.f32.mxu1 %v2776_v57  ;;  %2074 = vperm.xlu0 %2701, %v2064_v31  }
 0x29d   : > { %2532 = vmatmul.mubr.msk.f32.gmra.mxu0 %vm1512_vm6, %v1500_v20 }
 0x29e   : > { %1655 = vmatprep.mubr.f32.mxu0 %v2776_v57 }
 0x29f   : > { %2549 = vmatmul.mubr.msk.f32.gmra.mxu1 %vm1512_vm6, %v1725_v35 }
 0x2a0   : > { %1874 = vmatprep.mubr.f32.mxu1 %v2776_v57 }
 0x2a1   : > { %2533 = vmatmul.mubr.msk.f32.gmra.mxu0 %vm1512_vm6, %v1501_v38 }
 0x2a2   : > { %1661 = vmatprep.mubr.f32.mxu0 %v2776_v57 }
 0x2a3   : > { %2550 = vmatmul.mubr.msk.f32.gmra.mxu1 %vm1512_vm6, %v1726_v39 }
 0x2a4   : > { %1880 = vmatprep.mubr.f32.mxu1 %v2776_v57 }
 0x2a5   : > { %2534 = vmatmul.mubr.msk.f32.gmra.mxu0 %vm1512_vm6, %v1502_v40 }
 0x2a6   : > { %1667 = vmatprep.mubr.f32.mxu0 %v2776_v57 }
 0x2a7   : > { %2551 = vmatmul.mubr.msk.f32.gmra.mxu1 %vm1512_vm6, %v1727_v43 }
 0x2a8   : > { %1886 = vmatprep.mubr.f32.mxu1 %v2776_v57 }
 0x2a9   : > { %2535 = vmatmul.mubr.msk.f32.gmra.mxu0 %vm1512_vm6, %v1503_v44 }
 0x2aa   : > { %1673 = vmatprep.mubr.f32.mxu0 %v2776_v57 }
 0x2ab   : > { %2552 = vmatmul.mubr.msk.f32.gmra.mxu1 %vm1512_vm6, %v1728_v47 }
 0x2ac   : > { %1892 = vmatprep.mubr.f32.mxu1 %v2776_v57 }
 0x2ad   : > { %2536 = vmatmul.mubr.msk.f32.gmra.mxu0 %vm1512_vm6, %v1504_v48 }
 0x2ae   : > { %1679 = vmatprep.mubr.f32.mxu0 %v2776_v57 }
 0x2af   : > { %2553 = vmatmul.mubr.msk.f32.gmra.mxu1 %vm1512_vm6, %v1729_v49 }
 0x2b0   : > { %1898 = vmatprep.mubr.f32.mxu1 %v2776_v57 }
 0x2b1   : > { %2537 = vmatmul.mubr.msk.f32.gmra.mxu0 %vm1512_vm6, %v1505_v52 }
 0x2b2   : > { %1685 = vmatprep.mubr.f32.mxu0 %v2776_v57 }
 0x2b3   : > { %2554 = vmatmul.mubr.msk.f32.gmra.mxu1 %vm1512_vm6, %v1730_v59 }
 0x2b4   : > { %1904 = vmatprep.mubr.f32.mxu1 %v2776_v57 }
 0x2b5   : > { %2538 = vmatmul.mubr.msk.f32.gmra.mxu0 %vm1512_vm6, %v1506_v60 }
 0x2b6   : > { %1691 = vmatprep.mubr.f32.mxu0 %v2776_v57 }
 0x2b7   : > { %2555 = vmatmul.mubr.msk.f32.gmra.mxu1 %vm1512_vm6, %v1731_v63 }
 0x2b8   : > { %1910 = vmatprep.mubr.f32.mxu1 %v2776_v57 }
 0x2b9   : > { %2539 = vmatmul.mubr.msk.f32.gmra.mxu0 %vm1512_vm6, %v1507_v53 }
 0x2ba   : > { %1697 = vmatprep.mubr.f32.mxu0 %v2776_v57 }
 0x2bb   : > { %2556 = vmatmul.mubr.msk.f32.gmra.mxu1 %vm1512_vm6, %v1732_v4 }
 0x2bc   : > { %1916 = vmatprep.mubr.f32.mxu1 %v2776_v57 }
 0x2bd   : > { %2540 = vmatmul.mubr.msk.f32.gmra.mxu0 %vm1512_vm6, %v1508_v9 }
 0x2be   : > { %1703 = vmatprep.mubr.f32.mxu0 %v2776_v57 }
 0x2bf   : > { %2557 = vmatmul.mubr.msk.f32.gmra.mxu1 %vm1512_vm6, %v1733_v10 }
 0x2c0   : > { %1922 = vmatprep.mubr.f32.mxu1 %v2776_v57 }
 0x2c1   : > { %2541 = vmatmul.mubr.msk.f32.gmra.mxu0 %vm1512_vm6, %v1509_v55 }
 0x2c2   : > { %2131 = vmatprep.mubr.bf16.mxu0 %v3824_v29 }
 0x2c3   : > { %2558 = vmatmul.mubr.msk.f32.gmra.mxu1 %vm1512_vm6, %v1734_v18 }
 0x2c4   : > { %1928 = vmatprep.mubr.f32.mxu1 %v2776_v57 }
 0x2c7   : > { %2559 = vmatmul.mubr.msk.f32.gmra.mxu1 %vm1512_vm6, %v1735_v19 }
 0x2c8   : > { %1934 = vmatprep.mubr.f32.mxu1 %v2776_v57 }
 0x2cb   : > { %2560 = vmatmul.mubr.msk.f32.gmra.mxu1 %vm1512_vm6, %v1736_v25 }
 0x2cc   : > { %1940 = vmatprep.mubr.f32.mxu1 %v2776_v57  ;;  %v2065_v57 = vld [vmem:[%s3819_s5 + $0x10] sm:$0xff] }
 0x2cd   : > { %2079 = vperm.xlu1 %2702, %v2065_v57  }
 0x2cf   : > { %2561 = vmatmul.mubr.msk.f32.gmra.mxu1 %vm1512_vm6, %v1737_v26 }
 0x2d1   : > { %2084 = vperm.xlu1 %2702, %v2066_v34  }
 0x34b   : > { %v3613_v20 = vpop.f32.mrf.mxu1 }
 0x34d   : > { %v3615_v35 = vpop.f32.mrf.mxu1  ;;  %v1627_v38 = vpop.f32.mrf.mxu0 }
 0x34e   : > { %v1947_v43 = vsub.f32 %v2997_v61, %v1627_v38  ;;  %v1976_v45 = vsub.f32 %v3053_v1, %v3615_v35 }
 0x34f   : > { %v3617_v39 = vpop.f32.mrf.mxu1  ;;  %v1629_v40 = vpop.f32.mrf.mxu0 }
 0x350   : > { %v1948_v48 = vsub.f32 %v3001_v2, %v1629_v40 }
 0x351   : > { %v3620_v44 = vpop.f32.mrf.mxu1  ;;  %v1633_v47 = vpop.f32.mrf.mxu0 }
 0x352   : > { %v1949_v60 = vsub.f32 %v3005_v6, %v1633_v47 }
 0x353   : > { %v1852_v49 = vpop.f32.mrf.mxu1  ;;  %v1635_v52 = vpop.f32.mrf.mxu0 }
 0x354   : > { %v1979_v59 = vmul.f32 %v1947_v43, %v1852_v49  ;;  %v1950_v9 = vsub.f32 %v3009_v11, %v1635_v52 }
 0x355   : > { %v1854_v63 = vpop.f32.mrf.mxu1  ;;  %v1639_v53 = vpop.f32.mrf.mxu0 }
 0x356   : > { %v1980_v4 = vmul.f32 %v1948_v48, %v1854_v63  ;;  %v1951_v61 = vsub.f32 %v3013_v16, %v1639_v53  ;;  %v2011_v26 = vmax.f32 %v1979_v59, 0.0 }
 0x357   : > { %v1858_v10 = vpop.f32.mrf.mxu1  ;;  %v1641_v55 = vpop.f32.mrf.mxu0 }
 0x358   : > { %v1981_v18 = vmul.f32 %v1949_v60, %v1858_v10  ;;  %v1952_v57 = vsub.f32 %v3017_v23, %v1641_v55  ;;  %v2012_v31 = vmax.f32 %v1980_v4, 0.0 }
 0x359   : > { %v1860_v19 = vpop.f32.mrf.mxu1  ;;  %v1645_v25 = vpop.f32.mrf.mxu0 }
 0x35a   : > { %v2013_v30 = vmax.f32 %v1981_v18, 0.0  ;;  %v1982_v2 = vmul.f32 %v1950_v9, %v1860_v19  ;;  %v1953_v11 = vsub.f32 %v3021_v27, %v1645_v25 }
 0x35b   : > { %v1864_v34 = vpop.f32.mrf.mxu1  ;;  %v1647_v6 = vpop.f32.mrf.mxu0 }
 0x35c   : > { %v3627_v38 = vpack.c.bf16 %v2013_v30, %v2011_v26  ;;  %v2014_v40 = vmax.f32 %v1982_v2, 0.0  ;;  %v1983_v43 = vmul.f32 %v1951_v61, %v1864_v34  ;;  %v1954_v52 = vsub.f32 %v3025_v32, %v1647_v6 }
 0x35d   : > { %v1866_v47 = vpop.f32.mrf.mxu1  ;;  %v3630_v48 = vpop.f32.mrf.mxu0 }
 0x35e   : > { %3845 = vst [vmem:[#allocation15_spill] sm:$0xff] %v3627_v38  ;;  %3846 = vst [vmem:[#allocation16_spill] sm:$0xff] %v3630_v48  ;;  %v3632_v16 = vpack.c.bf16 %v2014_v40, %v2012_v31  ;;  %v1984_v49 = vmul.f32 %v1952_v57, %v1866_v47  ;;  %v2015_v4 = vmax.f32 %v1983_v43, 0.0  ;;  %v1975_v48 = vsub.f32 %v3048_v58, %v3613_v20 }
 0x35f   : > { %v1870_v59 = vpop.f32.mrf.mxu1  ;;  %v3635_v60 = vpop.f32.mrf.mxu0  ;;  %v1978_v58 = vsub.f32 %v3063_v15, %v3620_v44 }
 0x360   : > { %3847 = vst [vmem:[#allocation17_spill] sm:$0xff] %v3632_v16  ;;  %3848 = vst [vmem:[#allocation18_spill] sm:$0xff] %v3635_v60  ;;  %v1985_v23 = vmul.f32 %v1953_v11, %v1870_v59  ;;  %v2016_v18 = vmax.f32 %v1984_v49, 0.0 }
 0x361   : > { %v1872_v63 = vpop.f32.mrf.mxu1  ;;  %v3637_v53 = vpop.f32.mrf.mxu0 }
 0x362   : > { %3849 = vst [vmem:[#allocation19_spill] sm:$0xff] %v3637_v53  ;;  %v2017_v9 = vmax.f32 %v1985_v23, 0.0  ;;  %v1986_v10 = vmul.f32 %v1954_v52, %v1872_v63  ;;  %v1977_v53 = vsub.f32 %v3058_v8, %v3617_v39 }
 0x363   : > { %v3639_v55 = vpop.f32.mrf.mxu1  ;;  %v3641_v27 = vpop.f32.mrf.mxu0 }
 0x364   : > { %3850 = vst [vmem:[#allocation20_spill] sm:$0xff] %v3639_v55  ;;  %v3643_v61 = vpack.c.bf16 %v2017_v9, %v2015_v4  ;;  %v2018_v19 = vmax.f32 %v1986_v10, 0.0 }
 0x365   : > { %v3645_v25 = vpop.f32.mrf.mxu1  ;;  %v3647_v32 = vpop.f32.mrf.mxu0 }
 0x366   : > { %3851 = vst [vmem:[#allocation21_spill] sm:$0xff] %v3643_v61  ;;  %3852 = vst [vmem:[#allocation22_spill] sm:$0xff] %v3645_v25  ;;  %v3649_v26 = vpack.c.bf16 %v2018_v19, %v2016_v18 }
 0x367   : > { %3853 = vst [vmem:[#allocation23_spill] sm:$0xff] %v3647_v32  ;;  %v3651_v30 = vpop.f32.mrf.mxu1  ;;  %v3653_v2 = vpop.f32.mrf.mxu0 }
 0x368   : > { %3854 = vst [vmem:[#allocation24_spill] sm:$0xff] %v3649_v26  ;;  %3855 = vst [vmem:[#allocation25_spill] sm:$0xff] %v3651_v30 }
 0x369   : > { %v3655_v57 = vpop.f32.mrf.mxu1  ;;  %v3657_v31 = vpop.f32.mrf.mxu0 }
 0x36a   : > { %3856 = vst [vmem:[#allocation26_spill] sm:$0xff] %v3655_v57 }
 0x36b   : > { %v3659_v34 = vpop.f32.mrf.mxu1  ;;  %v3661_v6 = vpop.f32.mrf.mxu0 }
 0x36c   : > { %3857 = vst [vmem:[#allocation27_spill] sm:$0xff] %v3659_v34 }
 0x36d   : > { %v3663_v40 = vpop.f32.mrf.mxu1  ;;  %v3665_v43 = vpop.f32.mrf.mxu0 }
 0x36e   : > { %3858 = vst [vmem:[#allocation28_spill] sm:$0xff] %v3663_v40 }
 0x36f   : > { %v3667_v11 = vpop.f32.mrf.mxu1  ;;  %v3669_v47 = vpop.f32.mrf.mxu0 }
 0x370   : > { %3859 = vst [vmem:[#allocation29_spill] sm:$0xff] %v3667_v11 }
 0x371   : > { %v3671_v49 = vpop.f32.mrf.mxu1  ;;  %v3673_v52 = vpop.f32.mrf.mxu0 }
 0x373   : > { %v3675_v59 = vpop.f32.mrf.mxu1  ;;  %v1683_v23 = vpop.f32.mrf.mxu0 }
 0x374   : > { %3860 = vst [vmem:[#allocation30_spill] sm:$0xff] %v3675_v59 }
 0x375   : > { %v3677_v63 = vpop.f32.mrf.mxu1  ;;  %v3679_v4 = vpop.f32.mrf.mxu0 }
 0x377   : > { %v3681_v9 = vpop.f32.mrf.mxu1  ;;  %v1689_v10 = vpop.f32.mrf.mxu0 }
 0x378   : > { %v1968_v32 = vsub.f32 %v3019_v24, %v1689_v10  ;;  %v1967_v24 = vsub.f32 %v3015_v17, %v3679_v4  ;;  %v1963_v17 = vsub.f32 %v2999_v62, %v3665_v43  ;;  %v1958_v62 = vsub.f32 %v3041_v50, %v3641_v27  ;;  %v3861_v43 = vld [vmem:[#allocation23_spill] sm:$0xff]  ;;  %v3868_v50 = vld [vmem:[#allocation13_spill] sm:$0xff] }
 0x379   : > { %v1908_v18 = vpop.f32.mrf.mxu1  ;;  %v1693_v19 = vpop.f32.mrf.mxu0 }
 0x37b   : > { %v1912_v29 = vpop.f32.mrf.mxu1  ;;  %v1695_v56 = vpop.f32.mrf.mxu0 }
 0x37c   : > { %v1970_v60 = vsub.f32 %v3027_v33, %v1695_v56  ;;  %v1966_v33 = vsub.f32 %v3011_v13, %v1683_v23  ;;  %v1965_v13 = vsub.f32 %v3007_v7, %v3673_v52  ;;  %v3866_v23 = vld [vmem:[#allocation28_spill] sm:$0xff] }
 0x37d   : > { %v1914_v12 = vpop.f32.mrf.mxu1  ;;  %v1699_v21 = vpop.f32.mrf.mxu0 }
 0x37e   : > { %v1971_v1 = vsub.f32 %v3031_v37, %v1699_v21  ;;  %v1964_v21 = vsub.f32 %v3003_v3, %v3669_v47  ;;  %v2000_v37 = vmul.f32 %v1968_v32, %v1914_v12  ;;  %v1960_v12 = vsub.f32 %v3051_v0, %v3653_v2  ;;  %v3862_v0 = vld [vmem:[#allocation14_spill] sm:$0xff] }
 0x37f   : > { %v1918_v22 = vpop.f32.mrf.mxu1  ;;  %v1701_v16 = vpop.f32.mrf.mxu0  ;;  %v1997_v32 = vmul.f32 %v1965_v13, %v3681_v9  ;;  %v1959_v2 = vsub.f32 %v3862_v0, %v3861_v43  ;;  %v3867_v9 = vld [vmem:[#allocation19_spill] sm:$0xff] }
 0x380   : > { %v1972_v40 = vsub.f32 %v3035_v42, %v1701_v16  ;;  %v1996_v7 = vmul.f32 %v1964_v21, %v3677_v63  ;;  %v1992_v63 = vmul.f32 %v1960_v12, %v3866_v23  ;;  %v1957_v27 = vsub.f32 %v3868_v50, %v3867_v9 }
 0x381   : > { %v1920_v38 = vpop.f32.mrf.mxu1  ;;  %v1705_v26 = vpop.f32.mrf.mxu0 }
 0x382   : > { %v1973_v59 = vsub.f32 %v3039_v46, %v1705_v26  ;;  %v1969_v46 = vsub.f32 %v3023_v28, %v1693_v19  ;;  %v2002_v56 = vmul.f32 %v1970_v60, %v1920_v38  ;;  %v1962_v60 = vsub.f32 %v3061_v14, %v3661_v6 }
 0x383   : > { %v1924_v61 = vpop.f32.mrf.mxu1  ;;  %v1707_v25 = vpop.f32.mrf.mxu0  ;;  %v1961_v14 = vsub.f32 %v3056_v5, %v3657_v31  ;;  %v3865_v5 = vld [vmem:[#allocation12_spill] sm:$0xff]  ;;  %v2028_v4 = vmax.f32 %v1996_v7, 0.0  ;;  %v3883_v7 = vmov 0  }
 0x384   : > { %v1974_v57 = vsub.f32 %v3043_v51, %v1707_v25  ;;  %v2001_v28 = vmul.f32 %v1969_v46, %v1918_v22  ;;  %v2034_v26 = vmax.f32 %v2002_v56, 0.0  ;;  %v2032_v22 = vmax.f32 %v2000_v37, 0.0 }
 0x385   : > { %v1926_v55 = vpop.f32.mrf.mxu1  ;;  %v2024_v56 = vmax.f32 %v1992_v63, 0.0 }
 0x386   : > { %v2004_v8 = vmul.f32 %v1972_v40, %v1926_v55  ;;  %v1998_v55 = vmul.f32 %v1966_v33, %v1908_v18  ;;  %v2058_v40 = vpack.c.bf16 %v2034_v26, %v2032_v22  ;;  %v2029_v18 = vmax.f32 %v1997_v32, 0.0  ;;  %v3874_v33 = vld [vmem:[#allocation22_spill] sm:$0xff]  ;;  %v3878_v26 = vld [vmem:[#allocation21_spill] sm:$0xff]  ;;  %v2070_v32 = vpop.permute.xlu0 %2069 }
 0x387   : > { %v1930_v30 = vpop.f32.mrf.mxu1 }
 0x388   : > { %v2030_v6 = vmax.f32 %v1998_v55, 0.0  ;;  %v3877_v55 = vld [vmem:[#allocation24_spill] sm:$0xff] }
 0x389   : > { %v1932_v34 = vpop.f32.mrf.mxu1 }
 0x38a   : > { %v2006_v20 = vmul.f32 %v1974_v57, %v1932_v34  ;;  %v2033_v57 = vmax.f32 %v2001_v28, 0.0  ;;  %v2075_v43 = vpop.permute.xlu0 %2074 }
 0x38b   : > { %v1936_v36 = vpop.f32.mrf.mxu1 }
 0x38c   : > { %v2007_v41 = vmul.f32 %v1975_v48, %v1936_v36  ;;  %v2005_v48 = vmul.f32 %v1973_v59, %v1930_v30  ;;  %v2038_v16 = vmax.f32 %v2006_v20, 0.0  ;;  %v3864_v59 = vld [vmem:[#allocation18_spill] sm:$0xff] }
 0x38d   : > { %v1938_v11 = vpop.f32.mrf.mxu1  ;;  %v1956_v31 = vsub.f32 %v3865_v5, %v3864_v59 }
 0x38e   : > { %v2008_v51 = vmul.f32 %v1976_v45, %v1938_v11  ;;  %v2039_v39 = vmax.f32 %v2007_v41, 0.0  ;;  %v2036_v41 = vmax.f32 %v2004_v8, 0.0  ;;  %v2037_v38 = vmax.f32 %v2005_v48, 0.0  ;;  %v3863_v11 = vld [vmem:[#allocation30_spill] sm:$0xff]  ;;  %v3875_v48 = vld [vmem:[#allocation25_spill] sm:$0xff] }
 0x38f   : > { %v1942_v54 = vpop.f32.mrf.mxu1  ;;  %v1995_v47 = vmul.f32 %v1963_v17, %v3863_v11  ;;  %v1988_v46 = vmul.f32 %v1956_v31, %v3874_v33  ;;  %v2703_v17 = vld [vmem:[%s3818_s4] sm:$0xff]  }
 0x390   : > { %v2009_v25 = vmul.f32 %v1977_v53, %v1942_v54  ;;  %v2040_v15 = vmax.f32 %v2008_v51, 0.0  ;;  %v2003_v54 = vmul.f32 %v1971_v1, %v1924_v61  ;;  %v2060_v30 = vpack.c.bf16 %v2038_v16, %v2036_v41  ;;  %v3871_v1 = vld [vmem:[#allocation16_spill] sm:$0xff] }
 0x391   : > { %v1944_v35 = vpop.f32.mrf.mxu1  ;;  %v1999_v61 = vmul.f32 %v1967_v24, %v1912_v29  ;;  %v1994_v29 = vmul.f32 %v1962_v60, %v3671_v49  ;;  %v3869_v49 = vld [vmem:[#allocation29_spill] sm:$0xff]  ;;  %v1989_v16 = vmul.f32 %v1957_v27, %v3875_v48  ;;  %v2020_v41 = vmax.f32 %v1988_v46, 0.0 }
 0x392   : > { %v2041_v42 = vmax.f32 %v2009_v25, 0.0  ;;  %v2010_v36 = vmul.f32 %v1978_v58, %v1944_v35  ;;  %v2035_v3 = vmax.f32 %v2003_v54, 0.0  ;;  %v1993_v10 = vmul.f32 %v1961_v14, %v3869_v49  ;;  %v3870_v58 = vld [vmem:[#allocation26_spill] sm:$0xff]  ;;  %v3872_v35 = vld [vmem:[#allocation11_spill] sm:$0xff]  ;;  %v3876_v54 = vld [vmem:[#allocation20_spill] sm:$0xff] }
 0x393   : > { %v2031_v52 = vmax.f32 %v1999_v61, 0.0  ;;  %v1990_v20 = vmul.f32 %v1958_v62, %v3870_v58  ;;  %v2026_v51 = vmax.f32 %v1994_v29, 0.0  ;;  %v2056_v25 = vpack.c.bf16 %v2030_v6, %v2028_v4  ;;  %v3880_v61 = vld [vmem:[#allocation15_spill] sm:$0xff]  ;;  %v2704_v14 = vld [vmem:[%s3818_s4 + $0x8] sm:$0xff]  }
 0x394   : > { %v2061_v44 = vpack.c.bf16 %v2041_v42, %v2039_v39  ;;  %v2042_v45 = vmax.f32 %v2010_v36, 0.0  ;;  %v2059_v34 = vpack.c.bf16 %v2037_v38, %v2035_v3  ;;  %v1955_v8 = vsub.f32 %v3872_v35, %v3871_v1  ;;  %v3873_v39 = vld [vmem:[#allocation27_spill] sm:$0xff] }
 0x395   : > { %v2057_v19 = vpack.c.bf16 %v2033_v57, %v2031_v52  ;;  %v1991_v42 = vmul.f32 %v1959_v2, %v3873_v39  ;;  %v2027_v36 = vmax.f32 %v1995_v47, 0.0  ;;  %v2054_v24 = vpack.c.bf16 %v2026_v51, %v2024_v56  ;;  %v2080_v52 = vpop.permute.xlu1 %2079  ;;  %v2152_v51 = vld [vmem:[#allocation4] sm:$0xff]  ;;  %v2250_v56 = vld [vmem:[#allocation5 + $0x8] sm:$0xff] }
 0x396   : > { %v2062_v53 = vpack.c.bf16 %v2042_v45, %v2040_v15  ;;  %v2025_v15 = vmax.f32 %v1993_v10, 0.0  ;;  %v2022_v45 = vmax.f32 %v1990_v20, 0.0  ;;  %v1987_v21 = vmul.f32 %v1955_v8, %v3876_v54  ;;  %v2249_v1 = vld [vmem:[#allocation5] sm:$0xff] }
 0x397   : > { %v2023_v37 = vmax.f32 %v1991_v42, 0.0  ;;  %v3881_v3 = vmov 1.0   ;;  %v2153_v42 = vld [vmem:[#allocation4 + $0x8] sm:$0xff] }
 0x398   : > { %2099 = vmatprep.subr.bf16.mxu0 %v2062_v53  ;;  %v2021_v53 = vmax.f32 %v1989_v16, 0.0  ;;  %v2052_v28 = vpack.c.bf16 %v2022_v45, %v2020_v41  ;;  %v2019_v38 = vmax.f32 %v1987_v21, 0.0  ;;  %v2251_v21 = vld [vmem:[#allocation5 + $0x10] sm:$0xff] }
 0x399   : > { %2100 = vmatpush1.bf16.msra.mxu0 %v2061_v44  ;;  %v2055_v44 = vpack.c.bf16 %v2029_v18, %v2027_v36  ;;  %v2053_v13 = vpack.c.bf16 %v2025_v15, %v2023_v37  ;;  %v2085_v27 = vpop.permute.xlu1 %2084 }
 0x39a   : > { %2101 = vmatprep.subr.bf16.mxu0 %v2060_v30  ;;  %v2051_v60 = vpack.c.bf16 %v2021_v53, %v2019_v38  ;;  %v3879_v30 = vld [vmem:[#allocation17_spill] sm:$0xff] }
 0x39d   : > { %2102 = vmatpush1.bf16.msra.mxu0 %v2059_v34 }
 0x39e   : > { %2103 = vmatprep.subr.bf16.mxu0 %v2058_v40 }
 0x3a1   : > { %2104 = vmatpush1.bf16.msra.mxu0 %v2057_v19 }
 0x3a2   : > { %2105 = vmatprep.subr.bf16.mxu0 %v2056_v25 }
 0x3a5   : > { %2106 = vmatpush1.bf16.msra.mxu0 %v2055_v44  ;;  %v2154_v44 = vld [vmem:[#allocation4 + $0x10] sm:$0xff] }
 0x3a6   : > { %2107 = vmatprep.subr.bf16.mxu0 %v2054_v24 }
 0x3a9   : > { %2108 = vmatpush1.bf16.msra.mxu0 %v2053_v13  ;;  %v2155_v13 = vld [vmem:[#allocation4 + $0x18] sm:$0xff] }
 0x3aa   : > { %2109 = vmatprep.subr.bf16.mxu0 %v2052_v28 }
 0x3ad   : > { %2110 = vmatpush1.bf16.msra.mxu0 %v2051_v60 }
 0x3ae   : > { %2111 = vmatprep.subr.bf16.mxu0 %v3877_v55  ;;  %v2252_v55 = vld [vmem:[#allocation5 + $0x18] sm:$0xff] }
 0x3b1   : > { %2112 = vmatpush1.bf16.msra.mxu0 %v3878_v26 }
 0x3b2   : > { %2113 = vmatprep.subr.bf16.mxu0 %v3879_v30 }
 0x3b5   : > { %2114 = vmatpush1.bf16.msra.mxu0 %v3880_v61 }
 0x3b6   : > { %2566 = vmatprep.subr.msk.mxu0 %vm2903_vm1, %v3881_v3 }
 0x3b8   : > { %2132 = vmatmul.mubr.bf16.vlgmr.msra.gmra.mxu0 %v2703_v17 }
 0x3b9   : > { %2141 = vmatprep.mubr.bf16.mxu0 %v3883_v7  ;;  %2567 = vmatpush1.xpose.msk.msra.mxu0 %vm2899_vm0, %v3881_v3 }
 0x3c0   : > { %2142 = vmatmul.mubr.bf16.gmra.mxu0 %v2704_v14 }
 0x478   : > { %v2133_v57 = vpop.f32.mrf.mxu0 }
 0x479   : > { %v2134_v34 = vadd.f32 %v2133_v57, %v2070_v32 }
 0x47a   : > { %v2135_v62 = vpop.f32.mrf.mxu0 }
 0x47b   : > { %v2136_v29 = vadd.f32 %v2135_v62, %v2070_v32  ;;  %v2253_v0 = vmul.f32 %v2134_v34, %v2134_v34 }
 0x47c   : > { %v2137_v6 = vpop.f32.mrf.mxu0 }
 0x47d   : > { %v2254_v40 = vmul.f32 %v2136_v29, %v2136_v29  ;;  %2220 = vmatprep.mubr.f32.mxu1 %v2136_v29  ;;  %v2138_v2 = vadd.f32 %v2137_v6, %v2075_v43 }
 0x47e   : > { %v2139_v11 = vpop.f32.mrf.mxu0  ;;  %2221 = vmatmul.mubr.f32.vlgmr.msra.gmra.mxu1 %v2134_v34 }
 0x47f   : > { %v2140_v47 = vadd.f32 %v2139_v11, %v2075_v43  ;;  %2325 = vmatprep.mubr.f32.mxu0 %v2254_v40  ;;  %v2255_v31 = vmul.f32 %v2138_v2, %v2138_v2 }
 0x480   : > { %v2143_v59 = vpop.f32.mrf.mxu0  ;;  %2326 = vmatmul.mubr.f32.vlgmr.msra.gmra.mxu0 %v2253_v0 }
 0x481   : > { %v2256_v5 = vmul.f32 %v2140_v47, %v2140_v47  ;;  %2225 = vmatprep.mubr.f32.mxu1 %v2140_v47  ;;  %v2144_v23 = vadd.f32 %v2143_v59, %v2080_v52 }
 0x482   : > { %v2145_v63 = vpop.f32.mrf.mxu0  ;;  %2226 = vmatmul.mubr.f32.gmra.mxu1 %v2138_v2 }
 0x483   : > { %v2146_v4 = vadd.f32 %v2145_v63, %v2080_v52  ;;  %2330 = vmatprep.mubr.f32.mxu0 %v2256_v5  ;;  %v2257_v49 = vmul.f32 %v2144_v23, %v2144_v23 }
 0x484   : > { %v2147_v9 = vpop.f32.mrf.mxu0  ;;  %2331 = vmatmul.mubr.f32.gmra.mxu0 %v2255_v31 }
 0x485   : > { %v2258_v50 = vmul.f32 %v2146_v4, %v2146_v4  ;;  %2230 = vmatprep.mubr.f32.mxu1 %v2146_v4  ;;  %v2148_v10 = vadd.f32 %v2147_v9, %v2085_v27 }
 0x486   : > { %v2149_v18 = vpop.f32.mrf.mxu0  ;;  %2231 = vmatmul.mubr.f32.gmra.mxu1 %v2144_v23 }
 0x487   : > { %v2150_v19 = vadd.f32 %v2149_v18, %v2085_v27  ;;  %2335 = vmatprep.mubr.f32.mxu0 %v2258_v50  ;;  %v2259_v20 = vmul.f32 %v2148_v10, %v2148_v10 }
 0x488   : > { %2336 = vmatmul.mubr.f32.gmra.mxu0 %v2257_v49 }
 0x489   : > { %v2260_v58 = vmul.f32 %v2150_v19, %v2150_v19  ;;  %2235 = vmatprep.mubr.f32.mxu1 %v2150_v19 }
 0x48a   : > { %2236 = vmatmul.mubr.f32.gmra.mxu1 %v2148_v10 }
 0x48b   : > { %2340 = vmatprep.mubr.f32.mxu0 %v2260_v58 }
 0x48c   : > { %2341 = vmatmul.mubr.f32.gmra.mxu0 %v2259_v20 }
 0x53e   : > { %v2222_v25 = vpop.f32.mrf.mxu1 }
 0x53f   : > { %v2241_v35 = vadd.f32 %v2222_v25, %v2152_v51 }
 0x540   : > { %v2224_v8 = vpop.f32.mrf.mxu1  ;;  %v2327_v39 = vpop.f32.mrf.mxu0 }
 0x541   : > { %2245 = vst.msk [vmem:[#allocation4] sm:$0xff] %vm1512_vm6, %v2241_v35  ;;  %v2346_v36 = vadd.f32 %v2327_v39, %v2249_v1 }
 0x542   : > { %v2227_v33 = vpop.f32.mrf.mxu1  ;;  %v2329_v46 = vpop.f32.mrf.mxu0 }
 0x543   : > { %2350 = vst.msk [vmem:[#allocation5] sm:$0xff] %vm1512_vm6, %v2346_v36  ;;  %v2242_v48 = vadd.f32 %v2227_v33, %v2153_v42 }
 0x544   : > { %v2229_v16 = vpop.f32.mrf.mxu1  ;;  %v2332_v15 = vpop.f32.mrf.mxu0 }
 0x545   : > { %2246 = vst.msk [vmem:[#allocation4 + $0x8] sm:$0xff] %vm1512_vm6, %v2242_v48  ;;  %v2347_v45 = vadd.f32 %v2332_v15, %v2250_v56 }
 0x546   : > { %v2232_v24 = vpop.f32.mrf.mxu1  ;;  %v2334_v54 = vpop.f32.mrf.mxu0 }
 0x547   : > { %2351 = vst.msk [vmem:[#allocation5 + $0x8] sm:$0xff] %vm1512_vm6, %v2347_v45  ;;  %v2243_v37 = vadd.f32 %v2232_v24, %v2154_v44 }
 0x548   : > { %v2234_v41 = vpop.f32.mrf.mxu1  ;;  %v2337_v53 = vpop.f32.mrf.mxu0 }
 0x549   : > { %2247 = vst.msk [vmem:[#allocation4 + $0x10] sm:$0xff] %vm1512_vm6, %v2243_v37  ;;  %v2348_v28 = vadd.f32 %v2337_v53, %v2251_v21 }
 0x54a   : > { %v2237_v38 = vpop.f32.mrf.mxu1  ;;  %v2339_v60 = vpop.f32.mrf.mxu0 }
 0x54b   : > { %2352 = vst.msk [vmem:[#allocation5 + $0x10] sm:$0xff] %vm1512_vm6, %v2348_v28  ;;  %v2244_v26 = vadd.f32 %v2237_v38, %v2155_v13  ;;  %2357 = sbr.rel (%p2568_p1) target bundleno = 1407 (0x57f), region = 102 }
 0x54c   : > { %v2239_v30 = vpop.f32.mrf.mxu1  ;;  %v2342_v17 = vpop.f32.mrf.mxu0 }
 0x54d   : > { %2248 = vst.msk [vmem:[#allocation4 + $0x18] sm:$0xff] %vm1512_vm6, %v2244_v26  ;;  %v2349_v61 = vadd.f32 %v2342_v17, %v2252_v55 }
 0x54e   : > { %v2344_v3 = vpop.f32.mrf.mxu0 }
 0x54f   : > { %2353 = vst.msk [vmem:[#allocation5 + $0x18] sm:$0xff] %vm1512_vm6, %v2349_v61 }
 0x550   : > { %v2358_v12 = vld [vmem:[#allocation6] sm:$0x1]  ;;  %v3885_v22 = vld [vmem:[#allocation8_spill] sm:$0xff]  ;;  %v2362_v34 = vld [vmem:[#allocation4 + $0x10] sm:$0xff] }
 0x551   : > { %v2359_v7 = vmax.f32 %v2358_v12, 1.0  ;;  %v2360_v32 = vld [vmem:[#allocation4] sm:$0xff]  ;;  %v2361_v57 = vld [vmem:[#allocation4 + $0x8] sm:$0xff] }
 0x552   : > { %v2373_v29 = vld [vmem:[#allocation5] sm:$0xff]  ;;  %v2374_v6 = vld [vmem:[#allocation5 + $0x8] sm:$0xff]  ;;  %v2375_v40 = vld [vmem:[#allocation5 + $0x10] sm:$0xff] }
 0x553   : > { %v2367_v14 = vrot.slane %v2359_v7, %v3885_v22 }
 0x554   : > { %v2363_v62 = vld [vmem:[#allocation4 + $0x18] sm:$0xff] }
 0x555   : > { %2705 = vrcp.f32 %v2367_v14 }
 0x556   : > { %v2376_v43 = vld [vmem:[#allocation5 + $0x18] sm:$0xff] }
 0x562   : > { %v2706_v0 = vpop.eup %2705 }
 0x563   : > { %v2369_v2 = vmul.f32 %v2706_v0, %v2360_v32  ;;  %v2370_v11 = vmul.f32 %v2706_v0, %v2361_v57  ;;  %v2371_v47 = vmul.f32 %v2706_v0, %v2362_v34  ;;  %v2372_v52 = vmul.f32 %v2706_v0, %v2363_v62 }
 0x564   : > { %v2377_v59 = vmul.f32 %v2706_v0, %v2373_v29  ;;  %v2378_v5 = vmul.f32 %v2706_v0, %v2374_v6  ;;  %v2379_v31 = vmul.f32 %v2706_v0, %v2375_v40  ;;  %v2380_v23 = vmul.f32 %v2706_v0, %v2376_v43 }
 0x565   : > { %v2381_v63 = vmul.f32 %v2369_v2, %v2369_v2  ;;  %2401 = vst.msk [vmem:[%s3822_s8] sm:$0xff] %vm1512_vm6, %v2369_v2  ;;  %v2382_v4 = vmul.f32 %v2370_v11, %v2370_v11  ;;  %2402 = vst.msk [vmem:[%s3822_s8 + $0x8] sm:$0xff] %vm1512_vm6, %v2370_v11  ;;  %v2383_v9 = vmul.f32 %v2371_v47, %v2371_v47 }
 0x566   : > { %2403 = vst.msk [vmem:[%s3822_s8 + $0x10] sm:$0xff] %vm1512_vm6, %v2371_v47  ;;  %v2384_v50 = vmul.f32 %v2372_v52, %v2372_v52  ;;  %2404 = vst.msk [vmem:[%s3822_s8 + $0x18] sm:$0xff] %vm1512_vm6, %v2372_v52 }
 0x567   : > { %v2385_v27 = vsub.f32 %v2377_v59, %v2381_v63  ;;  %v2386_v49 = vsub.f32 %v2378_v5, %v2382_v4  ;;  %v2387_v10 = vsub.f32 %v2379_v31, %v2383_v9 }
 0x568   : > { %v2388_v18 = vsub.f32 %v2380_v23, %v2384_v50 }
 0x569   : > { %v2389_v19 = vmax.f32 %v2385_v27, 0.0  ;;  %v2390_v58 = vmax.f32 %v2386_v49, 0.0  ;;  %v2391_v20 = vmax.f32 %v2387_v10, 0.0 }
 0x56a   : > { %v2392_v51 = vmax.f32 %v2388_v18, 0.0 }
 0x56b   : > { %v2393_v25 = vadd.f32 1e-05, %v2389_v19  ;;  %v2394_v1 = vadd.f32 1e-05, %v2390_v58  ;;  %v2395_v35 = vadd.f32 1e-05, %v2391_v20 }
 0x56c   : > { %v2396_v8 = vadd.f32 1e-05, %v2392_v51 }
 0x56d   : > { %2707 = vrsqrt.f32 %v2393_v25 }
 0x56e   : > { %2709 = vrsqrt.f32 %v2394_v1 }
 0x56f   : > { %2711 = vrsqrt.f32 %v2395_v35 }
 0x570   : > { %2713 = vrsqrt.f32 %v2396_v8 }
 0x57a   : > { %v2708_v39 = vpop.eup %2707 }
 0x57b   : > { %v2710_v42 = vpop.eup %2709  ;;  %2405 = vst.msk [vmem:[%s3823_s9] sm:$0xff] %vm1512_vm6, %v2708_v39 }
 0x57c   : > { %v2712_v36 = vpop.eup %2711  ;;  %2406 = vst.msk [vmem:[%s3823_s9 + $0x8] sm:$0xff] %vm1512_vm6, %v2710_v42 }
 0x57d   : > { %v2714_v33 = vpop.eup %2713  ;;  %2407 = vst.msk [vmem:[%s3823_s9 + $0x10] sm:$0xff] %vm1512_vm6, %v2712_v36 }
 0x57e   : > { %2408 = vst.msk [vmem:[%s3823_s9 + $0x18] sm:$0xff] %vm1512_vm6, %v2714_v33 }
 0x57f PF: > { %s20_s15 = sadd.s32 1, %s2769_s15   ;;  %s3886_s30 = smov %s2749_s10 }
 0x580   : > { %p17_p2 = scmp.ge.s32.totalorder %s20_s15, 6   ;;  %s3887_s10 = smov %s2877_s20 }
 0x581   : > { %s3888_s11 = smov %s2761_s13  ;;  %s3889_s12 = smov %s2765_s14 }
 0x582   : > { %s3890_s13 = smov %s3893_s16  ;;  %s3891_s14 = smov %s3897_s17 }
 0x583   :  { %19 = sbr.rel (!%p17_p2) target bundleno = 4 (0x4), region = 160 }

</bundles_post_ra>
